<compile_context>
chip_gen: v7x
topology: tpu7x:2x2x1
jax: 0.10.0
libtpu: 0.0.40
codegen_flags: <defaults>
</compile_context>

<pallas_src>
import functools

import jax
import jax.numpy as jnp
from jax.experimental import pallas as pl
from jax.experimental.pallas import tpu as pltpu


def _round_up(x, m):
    return ((x + m - 1) // m) * m


def _softplus(x):
    # Numerically-stable softplus, computed in f32 (EUP exp/log1p).
    return jnp.maximum(x, 0.0) + jnp.log1p(jnp.exp(-jnp.abs(x)))


def _mlp_encoder_kernel(num_body_layers, bias_slices, compute_dtype,
                        x_ref, *refs):
    """One (batch tile, layer-0 K tile) grid step.

    refs layout:
      [w0,                    # layer-0 weight K tile (tk, H0_pad), bf16
       w1 ... w_{L-1},        # remaining body linears (full, resident, bf16)
       w_heads,               # fused (mu | log_sigma) head weight (resident, bf16)
       b_packed,              # all biases concatenated, (1, total) f32 (resident)
       out_ref,               # lane-dense [TILE_B, HEAD_PAD] f32 output
       acc_ref]               # layer-0 f32 accumulator scratch [TILE_B, H0_pad]
    """
    n_w = num_body_layers + 1
    w_refs = refs[:n_w]
    b_ref = refs[n_w]
    out_ref = refs[n_w + 1]
    acc_ref = refs[n_w + 2]

    k = pl.program_id(1)

    @pl.when(k == 0)
    def _():
        acc_ref[...] = jnp.zeros_like(acc_ref)

    # Layer-0 partial product for this K tile.  The input stays f32 in HBM and
    # is cast to the MXU dtype on the VPU here (no separate wrapper cast pass).
    # TODO(synk): bf16 is exact only for bag-of-words counts < 256; keep x in
    # f32 for layer 0 (cast only the weight) if exact large counts matter.
    acc_ref[...] += jnp.dot(x_ref[...].astype(compute_dtype), w_refs[0][...],
                            preferred_element_type=jnp.float32)

    @pl.when(k == pl.num_programs(1) - 1)
    def _():
        # Finish layer 0, then run the remaining (small, resident) layers and
        # the fused heads only once per batch tile.
        off, width = bias_slices[0]
        h = _softplus(acc_ref[...] + b_ref[0:1, off:off + width]).astype(compute_dtype)
        for i in range(1, num_body_layers):
            off, width = bias_slices[i]
            z = jnp.dot(h, w_refs[i][...],
                        preferred_element_type=jnp.float32) + b_ref[0:1, off:off + width]
            h = _softplus(z).astype(compute_dtype)
        off, width = bias_slices[num_body_layers]
        # Output kept f32 (PyTorch module semantics); it is tiny (128 lanes) so
        # the writeback cost is negligible next to the layer-0 matmul.
        out_ref[...] = jnp.dot(h, w_refs[num_body_layers][...],
                               preferred_element_type=jnp.float32) + b_ref[0:1, off:off + width]


class MLPEncoderPallas:
    """JAX/Pallas port of MLPEncoder.

    Parameters are initialized deterministically (PyTorch-style uniform
    U(-1/sqrt(fan_in), 1/sqrt(fan_in))) from a PRNG key.
    """
    # TODO(synk): the PyTorch module takes arbitrary `activations` callables;
    # softplus is hard-coded here.

    LANE = 128

    def __init__(self, input_dim, num_topics, num_hidden_layers, hidden_sizes,
                 batch_size, key, compute_dtype=jnp.bfloat16, tile_b=None):
        self.input_dim = input_dim
        self.num_topics = num_topics
        self.num_hidden_layers = num_hidden_layers
        self.hidden_sizes = list(hidden_sizes)
        self.batch_size = batch_size
        self.compute_dtype = compute_dtype
        self.tile_b = tile_b  # None -> auto-pick per batch

        # ---- PyTorch-style f32 parameters (kept for the pure-JAX reference) ----
        dims = [input_dim] + self.hidden_sizes[:num_hidden_layers]
        self.body_params = []  # list of (w [in,out], b [out]) in f32
        k = key
        for i in range(num_hidden_layers):
            k, kw, kb = jax.random.split(k, 3)
            fan_in, fan_out = dims[i], dims[i + 1]
            bound = 1.0 / (fan_in ** 0.5)
            w = jax.random.uniform(kw, (fan_in, fan_out), jnp.float32, -bound, bound)
            b = jax.random.uniform(kb, (fan_out,), jnp.float32, -bound, bound)
            self.body_params.append((w, b))

        fan_in = dims[-1]
        bound = 1.0 / (fan_in ** 0.5)
        heads = []
        for _ in range(2):  # mu_layer, sigma_layer
            k, kw, kb = jax.random.split(k, 3)
            w = jax.random.uniform(kw, (fan_in, num_topics), jnp.float32, -bound, bound)
            b = jax.random.uniform(kb, (num_topics,), jnp.float32, -bound, bound)
            heads.append((w, b))
        self.head_params = heads

        # ---- Packed / padded / bf16 parameters for the kernel ----
        self.dims_pad = [_round_up(d, self.LANE) for d in dims]
        self.head_width = 2 * num_topics
        self.head_pad = _round_up(self.head_width, self.LANE)

        self.kernel_weights = []
        for i in range(num_hidden_layers):
            w, _ = self.body_params[i]
            wp = jnp.zeros((self.dims_pad[i], self.dims_pad[i + 1]), compute_dtype)
            wp = wp.at[:dims[i], :dims[i + 1]].set(w.astype(compute_dtype))
            self.kernel_weights.append(wp)
        # Fused (mu | log_sigma) head weight, zero-padded to 128 lanes.
        w_heads = jnp.concatenate([heads[0][0], heads[1][0]], axis=1)  # [fan_in, 2T]
        whp = jnp.zeros((self.dims_pad[-1], self.head_pad), compute_dtype)
        whp = whp.at[:fan_in, :self.head_width].set(w_heads.astype(compute_dtype))
        self.kernel_weights.append(whp)
        # TODO(synk): on v7x, layer-0 weights could optionally be stored fp8
        # with a per-tensor scale to halve layer-0 weight DMA at large vocab.

        # All biases packed into one (1, total) f32 array with 128-aligned segments.
        seg_widths = [self.dims_pad[i + 1] for i in range(num_hidden_layers)] + [self.head_pad]
        offsets, off = [], 0
        for wdt in seg_widths:
            offsets.append(off)
            off += wdt
        b_packed = jnp.zeros((1, off), jnp.float32)
        for i in range(num_hidden_layers):
            _, b = self.body_params[i]
            b_packed = b_packed.at[0, offsets[i]:offsets[i] + dims[i + 1]].set(b)
        b_heads = jnp.concatenate([heads[0][1], heads[1][1]])
        b_packed = b_packed.at[0, offsets[-1]:offsets[-1] + self.head_width].set(b_heads)
        self.kernel_bias = b_packed
        self.bias_slices = tuple(
            (offsets[i], seg_widths[i]) for i in range(len(seg_widths)))

    # ---- tile selection -------------------------------------------------
    @staticmethod
    def _pick_tile_b(B):
        # Largest batch tile (more MXU rows / fewer per-step overheads) that
        # still leaves >= 2 parallel grid steps, so both v7x TensorCores get
        # work and intra-core pipelining has something to overlap.
        for tb in (512, 256, 128):
            if B >= 2 * tb:
                return tb
        return 128

    @staticmethod
    def _pick_tk(D_pad):
        # Largest K tile dividing the padded vocab; bounds layer-0 weight /
        # input VMEM at production vocab while letting their DMA pipeline
        # behind the MXU.
        for tk in (1024, 512, 256, 128):
            if D_pad % tk == 0:
                return tk
        return D_pad

    def _vmem_limit_bytes(self, tile_b, tk):
        bpe = jnp.dtype(self.compute_dtype).itemsize
        h0 = self.dims_pad[1]
        w0_tile = 2 * tk * h0 * bpe                                   # double-buffered over k
        resident = 2 * sum(int(w.size) * bpe for w in self.kernel_weights[1:])  # worst case
        bias = 2 * int(self.kernel_bias.size) * 4
        x_tile = 2 * tile_b * tk * 4                                  # f32 input, double-buffered
        out_tile = 2 * tile_b * self.head_pad * 4
        acc = tile_b * h0 * 4
        widest = max(self.dims_pad[1:] + [self.head_pad])
        interm = 4 * tile_b * widest * 4                              # f32 softplus temporaries
        est = w0_tile + resident + bias + x_tile + out_tile + acc + interm
        # Generous headroom for compiler scratch; cap at v7x's 64 MiB physical VMEM.
        return min(max(int(est * 1.5) + (4 << 20), 8 << 20), 64 << 20)

    # ---- forward --------------------------------------------------------
    def _forward(self, x, B_pad, D_pad, tile_b, tk, single_buffer):
        h0_pad = self.dims_pad[1]
        kernel = functools.partial(_mlp_encoder_kernel, self.num_hidden_layers,
                                   self.bias_slices, self.compute_dtype)

        grid = (B_pad // tile_b, D_pad // tk)

        x_spec = pl.BlockSpec((tile_b, tk), lambda i, k: (i, k))
        w0_spec = pl.BlockSpec((tk, h0_pad), lambda i, k: (k, 0))

        def resident_spec(shape):
            # Constant block index -> stays resident in VMEM across the grid.
            # Single-buffer it (double-buffering buys nothing, halves VMEM use).
            if single_buffer:
                return pl.BlockSpec(shape, lambda i, k: (0, 0),
                                    pipeline_mode=pl.Buffered(1))
            return pl.BlockSpec(shape, lambda i, k: (0, 0))

        w_specs = [w0_spec] + [resident_spec(w.shape) for w in self.kernel_weights[1:]]
        b_spec = resident_spec(self.kernel_bias.shape)
        out_spec = pl.BlockSpec((tile_b, self.head_pad), lambda i, k: (i, 0))

        return pl.pallas_call(
            kernel,
            out_shape=jax.ShapeDtypeStruct((B_pad, self.head_pad), jnp.float32),
            grid=grid,
            in_specs=[x_spec] + w_specs + [b_spec],
            out_specs=out_spec,
            scratch_shapes=[pltpu.VMEM((tile_b, h0_pad), jnp.float32)],
            compiler_params=pltpu.CompilerParams(
                dimension_semantics=("parallel", "arbitrary"),
                vmem_limit_bytes=self._vmem_limit_bytes(tile_b, tk)),
        )(x, *self.kernel_weights, self.kernel_bias)

    def __call__(self, doc_batch):
        """doc_batch: [B, input_dim] float32 bag-of-words counts."""
        B, D = doc_batch.shape
        assert D == self.input_dim
        D_pad = self.dims_pad[0]
        tile_b = self.tile_b if self.tile_b is not None else self._pick_tile_b(B)
        B_pad = _round_up(B, tile_b)
        tk = self._pick_tk(D_pad)

        # No wrapper-side dtype cast (the kernel casts on the VPU); only pad
        # when the shapes actually need it.
        x = doc_batch
        if (B_pad, D_pad) != (B, D):
            x = jnp.pad(x, ((0, B_pad - B), (0, D_pad - D)))

        try:
            out = self._forward(x, B_pad, D_pad, tile_b, tk, single_buffer=True)
        except Exception:
            # pl.Buffered(1) single-buffering is a newer Pallas feature; fall
            # back to default double-buffered resident specs if unsupported.
            out = self._forward(x, B_pad, D_pad, tile_b, tk, single_buffer=False)

        mu = out[:B, :self.num_topics]
        log_sigma = out[:B, self.num_topics:2 * self.num_topics]
        return mu, log_sigma

    # Pure-JAX reference for correctness checking (same bf16 rounding of
    # matmul inputs as the kernel so the comparison is tight).
    def reference(self, doc_batch):
        cd = self.compute_dtype
        h = doc_batch.astype(jnp.float32)
        for w, b in self.body_params:
            z = jnp.dot(h.astype(cd), w.astype(cd),
                        preferred_element_type=jnp.float32) + b
            h = jax.nn.softplus(z)
        h = h.astype(cd)
        (w_mu, b_mu), (w_sg, b_sg) = self.head_params
        mu = jnp.dot(h, w_mu.astype(cd), preferred_element_type=jnp.float32) + b_mu
        log_sigma = jnp.dot(h, w_sg.astype(cd), preferred_element_type=jnp.float32) + b_sg
        return mu, log_sigma


if __name__ == "__main__":
    key = jax.random.PRNGKey(0)
    k_param, k_data = jax.random.split(key)

    # Small demo shapes consistent with the module; batch large enough that
    # the parallel batch-tile grid is actually exercised (>= 2 steps).
    batch_size = 256
    input_dim = 512          # bag-of-words vocabulary size
    num_topics = 16
    num_hidden_layers = 2
    hidden_sizes = [256, 128]

    # TODO(synk): utils.doc_batch_to_vec_tensor (raw docs -> BoW counts) is
    # host-side glue; we synthesize an equivalent dense count tensor directly.
    doc_batch = jax.random.randint(
        k_data, (batch_size, input_dim), minval=0, maxval=5).astype(jnp.float32)

    enc = MLPEncoderPallas(input_dim, num_topics, num_hidden_layers,
                           hidden_sizes, batch_size, k_param)

    mu, log_sigma = enc(doc_batch)
    jax.block_until_ready((mu, log_sigma))

    mu_ref, log_sigma_ref = enc.reference(doc_batch)
    assert mu.shape == (batch_size, num_topics)
    assert log_sigma.shape == (batch_size, num_topics)
    assert jnp.allclose(mu, mu_ref, atol=1e-2, rtol=1e-2)
    assert jnp.allclose(log_sigma, log_sigma_ref, atol=1e-2, rtol=1e-2)

    print("KERNEL_OK")
</pallas_src>

<mosaic_0001>
module attributes {stable_mosaic.version = 11 : i64} {
  func.func @_mlp_encoder_kernel(%arg0: i32, %arg1: i32, %arg2: memref<128x512xf32, #tpu.memory_space<vmem>>, %arg3: memref<512x256xbf16, #tpu.memory_space<vmem>>, %arg4: memref<256x128xbf16, #tpu.memory_space<vmem>>, %arg5: memref<128x128xbf16, #tpu.memory_space<vmem>>, %arg6: memref<1x512xf32, #tpu.memory_space<vmem>>, %arg7: memref<128x128xf32, #tpu.memory_space<vmem>>, %arg8: memref<128x256xf32, #tpu.memory_space<vmem>>) attributes {dimension_semantics = [#tpu.dimension_semantics<parallel>, #tpu.dimension_semantics<arbitrary>], iteration_bounds = array<i64: 2, 1>, scalar_prefetch = 0 : i64, scratch_operands = 1 : i64, tpu.core_type = #tpu.core_type<tc>, window_params = [{transform_indices = @transform_0, window_bounds = array<i64: 128, 512>}, {transform_indices = @transform_1, window_bounds = array<i64: 512, 256>}, {pipeline_mode = #tpu.pipeline_mode<synchronous>, transform_indices = @transform_2, window_bounds = array<i64: 256, 128>}, {pipeline_mode = #tpu.pipeline_mode<synchronous>, transform_indices = @transform_3, window_bounds = array<i64: 128, 128>}, {pipeline_mode = #tpu.pipeline_mode<synchronous>, transform_indices = @transform_4, window_bounds = array<i64: 1, 512>}, {transform_indices = @transform_5, window_bounds = array<i64: 128, 128>}]} {
    %c0_i32 = arith.constant 0 : i32
    %0 = arith.cmpi eq, %arg1, %c0_i32 : i32
    %1 = arith.extui %0 : i1 to i32
    %c0_i32_0 = arith.constant 0 : i32
    %2 = arith.cmpi ne, %1, %c0_i32_0 : i32
    scf.if %2 {
      %cst_10 = arith.constant 0.000000e+00 : f32
      %13 = vector.broadcast %cst_10 : f32 to vector<128x256xf32>
      %c0_11 = arith.constant 0 : index
      %c0_12 = arith.constant 0 : index
      %14 = vector.load %arg8[%c0_11, %c0_12] : memref<128x256xf32, #tpu.memory_space<vmem>>, vector<128x256xf32>
      tpu.vector_store %arg8[%c0_11, %c0_12], %13 {strides = array<i32>} : memref<128x256xf32, #tpu.memory_space<vmem>>, vector<128x256xf32>,
    } else {
    }
    %c0 = arith.constant 0 : index
    %c0_1 = arith.constant 0 : index
    %3 = vector.load %arg8[%c0, %c0_1] : memref<128x256xf32, #tpu.memory_space<vmem>>, vector<128x256xf32>
    %c0_2 = arith.constant 0 : index
    %c0_3 = arith.constant 0 : index
    %4 = vector.load %arg2[%c0_2, %c0_3] : memref<128x512xf32, #tpu.memory_space<vmem>>, vector<128x512xf32>
    %5 = arith.truncf %4 : vector<128x512xf32> to vector<128x512xbf16>
    %c0_4 = arith.constant 0 : index
    %c0_5 = arith.constant 0 : index
    %6 = vector.load %arg3[%c0_4, %c0_5] : memref<512x256xbf16, #tpu.memory_space<vmem>>, vector<512x256xbf16>
    %cst = arith.constant dense<0.000000e+00> : vector<128x256xf32>
    %7 = tpu.matmul %5, %6, %cst {dimension_numbers = #tpu.dot_dimension_numbers<[1], [0], [0], [1], [0, 0, 1, 1], [], []>} : vector<128x512xbf16>, vector<512x256xbf16>, vector<128x256xf32> -> vector<128x256xf32>
    %8 = arith.addf %3, %7 : vector<128x256xf32>
    %c0_6 = arith.constant 0 : index
    %c0_7 = arith.constant 0 : index
    %9 = vector.load %arg8[%c0_6, %c0_7] : memref<128x256xf32, #tpu.memory_space<vmem>>, vector<128x256xf32>
    tpu.vector_store %arg8[%c0_6, %c0_7], %8 {strides = array<i32>} : memref<128x256xf32, #tpu.memory_space<vmem>>, vector<128x256xf32>,
    %c0_i32_8 = arith.constant 0 : i32
    %10 = arith.cmpi eq, %arg1, %c0_i32_8 : i32
    %11 = arith.extui %10 : i1 to i32
    %c0_i32_9 = arith.constant 0 : i32
    %12 = arith.cmpi ne, %11, %c0_i32_9 : i32
    scf.if %12 {
      %c0_10 = arith.constant 0 : index
      %c0_11 = arith.constant 0 : index
      %13 = vector.load %arg8[%c0_10, %c0_11] : memref<128x256xf32, #tpu.memory_space<vmem>>, vector<128x256xf32>
      %c0_12 = arith.constant 0 : index
      %c0_13 = arith.constant 0 : index
      %14 = vector.load %arg6[%c0_12, %c0_13] : memref<1x512xf32, #tpu.memory_space<vmem>>, vector<1x256xf32>
      %15 = vector.broadcast %14 : vector<1x256xf32> to vector<128x256xf32>
      %16 = arith.addf %13, %15 : vector<128x256xf32>
      %cst_14 = arith.constant 0.000000e+00 : f32
      %17 = vector.broadcast %cst_14 : f32 to vector<128x256xf32>
      %18 = arith.maximumf %16, %17 : vector<128x256xf32>
      %19 = math.absf %16 : vector<128x256xf32>
      %cst_15 = arith.constant 0.000000e+00 : f32
      %20 = vector.broadcast %cst_15 : f32 to vector<128x256xf32>
      %21 = arith.subf %20, %19 : vector<128x256xf32>
      %22 = math.exp %21 : vector<128x256xf32>
      %23 = math.log1p %22 : vector<128x256xf32>
      %24 = arith.addf %18, %23 : vector<128x256xf32>
      %25 = arith.truncf %24 : vector<128x256xf32> to vector<128x256xbf16>
      %c0_16 = arith.constant 0 : index
      %c0_17 = arith.constant 0 : index
      %26 = vector.load %arg4[%c0_16, %c0_17] : memref<256x128xbf16, #tpu.memory_space<vmem>>, vector<256x128xbf16>
      %cst_18 = arith.constant dense<0.000000e+00> : vector<128x128xf32>
      %27 = tpu.matmul %25, %26, %cst_18 {dimension_numbers = #tpu.dot_dimension_numbers<[1], [0], [0], [1], [0, 0, 1, 1], [], []>} : vector<128x256xbf16>, vector<256x128xbf16>, vector<128x128xf32> -> vector<128x128xf32>
      %c0_19 = arith.constant 0 : index
      %c256 = arith.constant 256 : index
      %28 = vector.load %arg6[%c0_19, %c256] : memref<1x512xf32, #tpu.memory_space<vmem>>, vector<1x128xf32>
      %29 = vector.broadcast %28 : vector<1x128xf32> to vector<128x128xf32>
      %30 = arith.addf %27, %29 : vector<128x128xf32>
      %cst_20 = arith.constant 0.000000e+00 : f32
      %31 = vector.broadcast %cst_20 : f32 to vector<128x128xf32>
      %32 = arith.maximumf %30, %31 : vector<128x128xf32>
      %33 = math.absf %30 : vector<128x128xf32>
      %cst_21 = arith.constant 0.000000e+00 : f32
      %34 = vector.broadcast %cst_21 : f32 to vector<128x128xf32>
      %35 = arith.subf %34, %33 : vector<128x128xf32>
      %36 = math.exp %35 : vector<128x128xf32>
      %37 = math.log1p %36 : vector<128x128xf32>
      %38 = arith.addf %32, %37 : vector<128x128xf32>
      %39 = arith.truncf %38 : vector<128x128xf32> to vector<128x128xbf16>
      %c0_22 = arith.constant 0 : index
      %c0_23 = arith.constant 0 : index
      %40 = vector.load %arg5[%c0_22, %c0_23] : memref<128x128xbf16, #tpu.memory_space<vmem>>, vector<128x128xbf16>
      %cst_24 = arith.constant dense<0.000000e+00> : vector<128x128xf32>
      %41 = tpu.matmul %39, %40, %cst_24 {dimension_numbers = #tpu.dot_dimension_numbers<[1], [0], [0], [1], [0, 0, 1, 1], [], []>} : vector<128x128xbf16>, vector<128x128xbf16>, vector<128x128xf32> -> vector<128x128xf32>
      %c0_25 = arith.constant 0 : index
      %c384 = arith.constant 384 : index
      %42 = vector.load %arg6[%c0_25, %c384] : memref<1x512xf32, #tpu.memory_space<vmem>>, vector<1x128xf32>
      %43 = vector.broadcast %42 : vector<1x128xf32> to vector<128x128xf32>
      %44 = arith.addf %41, %43 : vector<128x128xf32>
      %c0_26 = arith.constant 0 : index
      %c0_27 = arith.constant 0 : index
      %45 = vector.load %arg7[%c0_26, %c0_27] : memref<128x128xf32, #tpu.memory_space<vmem>>, vector<128x128xf32>
      tpu.vector_store %arg7[%c0_26, %c0_27], %44 {strides = array<i32>} : memref<128x128xf32, #tpu.memory_space<vmem>>, vector<128x128xf32>,
    } else {
    }
    return
  }
  func.func @transform_0(%arg0: i32, %arg1: i32) -> (i32, i32) {
    %c0_i32 = arith.constant 0 : i32
    return %arg0, %arg1 : i32, i32
  }
  func.func @transform_1(%arg0: i32, %arg1: i32) -> (i32, i32) {
    %c0_i32 = arith.constant 0 : i32
    %c0_i32_0 = arith.constant 0 : i32
    return %arg1, %c0_i32 : i32, i32
  }
  func.func @transform_2(%arg0: i32, %arg1: i32) -> (i32, i32) {
    %c0_i32 = arith.constant 0 : i32
    %c0_i32_0 = arith.constant 0 : i32
    %c0_i32_1 = arith.constant 0 : i32
    return %c0_i32, %c0_i32_0 : i32, i32
  }
  func.func @transform_3(%arg0: i32, %arg1: i32) -> (i32, i32) {
    %c0_i32 = arith.constant 0 : i32
    %c0_i32_0 = arith.constant 0 : i32
    %c0_i32_1 = arith.constant 0 : i32
    return %c0_i32, %c0_i32_0 : i32, i32
  }
  func.func @transform_4(%arg0: i32, %arg1: i32) -> (i32, i32) {
    %c0_i32 = arith.constant 0 : i32
    %c0_i32_0 = arith.constant 0 : i32
    %c0_i32_1 = arith.constant 0 : i32
    return %c0_i32, %c0_i32_0 : i32, i32
  }
  func.func @transform_5(%arg0: i32, %arg1: i32) -> (i32, i32) {
    %c0_i32 = arith.constant 0 : i32
    %c0_i32_0 = arith.constant 0 : i32
    return %arg0, %c0_i32 : i32, i32
  }
}

module attributes {stable_mosaic.version = 11 : i64} {
  func.func @_mlp_encoder_kernel(%arg0: i32, %arg1: i32, %arg2: memref<128x512xf32, #tpu.memory_space<vmem>>, %arg3: memref<512x256xbf16, #tpu.memory_space<vmem>>, %arg4: memref<256x128xbf16, #tpu.memory_space<vmem>>, %arg5: memref<128x128xbf16, #tpu.memory_space<vmem>>, %arg6: memref<1x512xf32, #tpu.memory_space<vmem>>, %arg7: memref<128x128xf32, #tpu.memory_space<vmem>>, %arg8: memref<128x256xf32, #tpu.memory_space<vmem>>) attributes {dimension_semantics = [#tpu.dimension_semantics<parallel>, #tpu.dimension_semantics<arbitrary>], iteration_bounds = array<i64: 2, 1>, scalar_prefetch = 0 : i64, scratch_operands = 1 : i64, tpu.core_type = #tpu.core_type<tc>, window_params = [{transform_indices = @transform_0, window_bounds = array<i64: 128, 512>}, {transform_indices = @transform_1, window_bounds = array<i64: 512, 256>}, {pipeline_mode = #tpu.pipeline_mode<synchronous>, transform_indices = @transform_2, window_bounds = array<i64: 256, 128>}, {pipeline_mode = #tpu.pipeline_mode<synchronous>, transform_indices = @transform_3, window_bounds = array<i64: 128, 128>}, {pipeline_mode = #tpu.pipeline_mode<synchronous>, transform_indices = @transform_4, window_bounds = array<i64: 1, 512>}, {transform_indices = @transform_5, window_bounds = array<i64: 128, 128>}]} {
    %c0_i32 = arith.constant 0 : i32
    %0 = arith.cmpi eq, %arg1, %c0_i32 : i32
    %1 = arith.extui %0 : i1 to i32
    %c0_i32_0 = arith.constant 0 : i32
    %2 = arith.cmpi ne, %1, %c0_i32_0 : i32
    scf.if %2 {
      %cst_10 = arith.constant 0.000000e+00 : f32
      %13 = vector.broadcast %cst_10 : f32 to vector<128x256xf32>
      %c0_11 = arith.constant 0 : index
      %c0_12 = arith.constant 0 : index
      %14 = vector.load %arg8[%c0_11, %c0_12] : memref<128x256xf32, #tpu.memory_space<vmem>>, vector<128x256xf32>
      tpu.vector_store %arg8[%c0_11, %c0_12], %13 {strides = array<i32>} : memref<128x256xf32, #tpu.memory_space<vmem>>, vector<128x256xf32>,
    } else {
    }
    %c0 = arith.constant 0 : index
    %c0_1 = arith.constant 0 : index
    %3 = vector.load %arg8[%c0, %c0_1] : memref<128x256xf32, #tpu.memory_space<vmem>>, vector<128x256xf32>
    %c0_2 = arith.constant 0 : index
    %c0_3 = arith.constant 0 : index
    %4 = vector.load %arg2[%c0_2, %c0_3] : memref<128x512xf32, #tpu.memory_space<vmem>>, vector<128x512xf32>
    %5 = arith.truncf %4 : vector<128x512xf32> to vector<128x512xbf16>
    %c0_4 = arith.constant 0 : index
    %c0_5 = arith.constant 0 : index
    %6 = vector.load %arg3[%c0_4, %c0_5] : memref<512x256xbf16, #tpu.memory_space<vmem>>, vector<512x256xbf16>
    %cst = arith.constant dense<0.000000e+00> : vector<128x256xf32>
    %7 = tpu.matmul %5, %6, %cst {dimension_numbers = #tpu.dot_dimension_numbers<[1], [0], [0], [1], [0, 0, 1, 1], [], []>} : vector<128x512xbf16>, vector<512x256xbf16>, vector<128x256xf32> -> vector<128x256xf32>
    %8 = arith.addf %3, %7 : vector<128x256xf32>
    %c0_6 = arith.constant 0 : index
    %c0_7 = arith.constant 0 : index
    %9 = vector.load %arg8[%c0_6, %c0_7] : memref<128x256xf32, #tpu.memory_space<vmem>>, vector<128x256xf32>
    tpu.vector_store %arg8[%c0_6, %c0_7], %8 {strides = array<i32>} : memref<128x256xf32, #tpu.memory_space<vmem>>, vector<128x256xf32>,
    %c0_i32_8 = arith.constant 0 : i32
    %10 = arith.cmpi eq, %arg1, %c0_i32_8 : i32
    %11 = arith.extui %10 : i1 to i32
    %c0_i32_9 = arith.constant 0 : i32
    %12 = arith.cmpi ne, %11, %c0_i32_9 : i32
    scf.if %12 {
      %c0_10 = arith.constant 0 : index
      %c0_11 = arith.constant 0 : index
      %13 = vector.load %arg8[%c0_10, %c0_11] : memref<128x256xf32, #tpu.memory_space<vmem>>, vector<128x256xf32>
      %c0_12 = arith.constant 0 : index
      %c0_13 = arith.constant 0 : index
      %14 = vector.load %arg6[%c0_12, %c0_13] : memref<1x512xf32, #tpu.memory_space<vmem>>, vector<1x256xf32>
      %15 = vector.broadcast %14 : vector<1x256xf32> to vector<128x256xf32>
      %16 = arith.addf %13, %15 : vector<128x256xf32>
      %cst_14 = arith.constant 0.000000e+00 : f32
      %17 = vector.broadcast %cst_14 : f32 to vector<128x256xf32>
      %18 = arith.maximumf %16, %17 : vector<128x256xf32>
      %19 = math.absf %16 : vector<128x256xf32>
      %cst_15 = arith.constant 0.000000e+00 : f32
      %20 = vector.broadcast %cst_15 : f32 to vector<128x256xf32>
      %21 = arith.subf %20, %19 : vector<128x256xf32>
      %22 = math.exp %21 : vector<128x256xf32>
      %23 = math.log1p %22 : vector<128x256xf32>
      %24 = arith.addf %18, %23 : vector<128x256xf32>
      %25 = arith.truncf %24 : vector<128x256xf32> to vector<128x256xbf16>
      %c0_16 = arith.constant 0 : index
      %c0_17 = arith.constant 0 : index
      %26 = vector.load %arg4[%c0_16, %c0_17] : memref<256x128xbf16, #tpu.memory_space<vmem>>, vector<256x128xbf16>
      %cst_18 = arith.constant dense<0.000000e+00> : vector<128x128xf32>
      %27 = tpu.matmul %25, %26, %cst_18 {dimension_numbers = #tpu.dot_dimension_numbers<[1], [0], [0], [1], [0, 0, 1, 1], [], []>} : vector<128x256xbf16>, vector<256x128xbf16>, vector<128x128xf32> -> vector<128x128xf32>
      %c0_19 = arith.constant 0 : index
      %c256 = arith.constant 256 : index
      %28 = vector.load %arg6[%c0_19, %c256] : memref<1x512xf32, #tpu.memory_space<vmem>>, vector<1x128xf32>
      %29 = vector.broadcast %28 : vector<1x128xf32> to vector<128x128xf32>
      %30 = arith.addf %27, %29 : vector<128x128xf32>
      %cst_20 = arith.constant 0.000000e+00 : f32
      %31 = vector.broadcast %cst_20 : f32 to vector<128x128xf32>
      %32 = arith.maximumf %30, %31 : vector<128x128xf32>
      %33 = math.absf %30 : vector<128x128xf32>
      %cst_21 = arith.constant 0.000000e+00 : f32
      %34 = vector.broadcast %cst_21 : f32 to vector<128x128xf32>
      %35 = arith.subf %34, %33 : vector<128x128xf32>
      %36 = math.exp %35 : vector<128x128xf32>
      %37 = math.log1p %36 : vector<128x128xf32>
      %38 = arith.addf %32, %37 : vector<128x128xf32>
      %39 = arith.truncf %38 : vector<128x128xf32> to vector<128x128xbf16>
      %c0_22 = arith.constant 0 : index
      %c0_23 = arith.constant 0 : index
      %40 = vector.load %arg5[%c0_22, %c0_23] : memref<128x128xbf16, #tpu.memory_space<vmem>>, vector<128x128xbf16>
      %cst_24 = arith.constant dense<0.000000e+00> : vector<128x128xf32>
      %41 = tpu.matmul %39, %40, %cst_24 {dimension_numbers = #tpu.dot_dimension_numbers<[1], [0], [0], [1], [0, 0, 1, 1], [], []>} : vector<128x128xbf16>, vector<128x128xbf16>, vector<128x128xf32> -> vector<128x128xf32>
      %c0_25 = arith.constant 0 : index
      %c384 = arith.constant 384 : index
      %42 = vector.load %arg6[%c0_25, %c384] : memref<1x512xf32, #tpu.memory_space<vmem>>, vector<1x128xf32>
      %43 = vector.broadcast %42 : vector<1x128xf32> to vector<128x128xf32>
      %44 = arith.addf %41, %43 : vector<128x128xf32>
      %c0_26 = arith.constant 0 : index
      %c0_27 = arith.constant 0 : index
      %45 = vector.load %arg7[%c0_26, %c0_27] : memref<128x128xf32, #tpu.memory_space<vmem>>, vector<128x128xf32>
      tpu.vector_store %arg7[%c0_26, %c0_27], %44 {strides = array<i32>} : memref<128x128xf32, #tpu.memory_space<vmem>>, vector<128x128xf32>,
    } else {
    }
    return
  }
  func.func @transform_0(%arg0: i32, %arg1: i32) -> (i32, i32) {
    %c0_i32 = arith.constant 0 : i32
    return %arg0, %arg1 : i32, i32
  }
  func.func @transform_1(%arg0: i32, %arg1: i32) -> (i32, i32) {
    %c0_i32 = arith.constant 0 : i32
    %c0_i32_0 = arith.constant 0 : i32
    return %arg1, %c0_i32 : i32, i32
  }
  func.func @transform_2(%arg0: i32, %arg1: i32) -> (i32, i32) {
    %c0_i32 = arith.constant 0 : i32
    %c0_i32_0 = arith.constant 0 : i32
    %c0_i32_1 = arith.constant 0 : i32
    return %c0_i32, %c0_i32_0 : i32, i32
  }
  func.func @transform_3(%arg0: i32, %arg1: i32) -> (i32, i32) {
    %c0_i32 = arith.constant 0 : i32
    %c0_i32_0 = arith.constant 0 : i32
    %c0_i32_1 = arith.constant 0 : i32
    return %c0_i32, %c0_i32_0 : i32, i32
  }
  func.func @transform_4(%arg0: i32, %arg1: i32) -> (i32, i32) {
    %c0_i32 = arith.constant 0 : i32
    %c0_i32_0 = arith.constant 0 : i32
    %c0_i32_1 = arith.constant 0 : i32
    return %c0_i32, %c0_i32_0 : i32, i32
  }
  func.func @transform_5(%arg0: i32, %arg1: i32) -> (i32, i32) {
    %c0_i32 = arith.constant 0 : i32
    %c0_i32_0 = arith.constant 0 : i32
    return %arg0, %c0_i32 : i32, i32
  }
}

</mosaic_0001>

<bundles_post_ra>
// kernel: tpu_custom_call.1
= control target key start
LH: loop header
LB: loop body
LE: loop exit
PB: predicated region body
PF: predicated region fallthrough
CT: control target
= control target key end

     0   :  { %s4746_s0 = inlined_call_operand.hbm [shape: f32[256,512], index: 0, kind: input, shape index: {}]   ;;  %s4747_s1 = inlined_call_operand.hbm [shape: bf16[512,256], index: 1, kind: input, shape index: {}]   ;;  %s4748_s2 = inlined_call_operand.hbm [shape: bf16[256,128], index: 2, kind: input, shape index: {}]   ;;  %s4749_s3 = inlined_call_operand.hbm [shape: bf16[128,128], index: 3, kind: input, shape index: {}]   ;;  %s4750_s4 = inlined_call_operand.vmem [shape: f32[1,512], index: 4, kind: input, shape index: {}]   ;;  %s4751_s5 = inlined_call_operand.hbm [shape: f32[256,128], index: 5, kind: output, shape index: {}]  }
   0x1   :  { %4765 = sst [smem:[#allocation27_spill]] %s4747_s1 }
   0x2   :  { %10 = vsyncpa [#allocation4], 0 }
   0x3   :  { %12 = vsyncpa [#allocation4 + $0x1], 0 }
   0x4   :  { %13 = vsyncpa [#allocation7], 0 }
   0x5   :  { %14 = vsyncpa [#allocation10], 0 }
   0x6   :  { %15 = vsyncpa [#allocation5], 0 }
   0x7   :  { %17 = vsyncpa [#allocation5 + $0x1], 0  ;;  %s3445_s18 = smov 0   ;;  %s3447_s19 = smov 0  }
   0x8   :  { %s3449_s20 = smov 0   ;;  %s3451_s21 = smov 0  }
   0x9   :  { %s3453_s22 = smov 0   ;;  %s3455_s23 = smov 0  }
   0xa LB: > { %s2524_s24 = sadd.s32 4294967295, %s3400_s23   ;;  %s2525_s25 = sadd.s32 4294967294, %s3400_s23   ;;  %s3400_s23 = sphi %s3455_s23, %s23_s23   ;;  %s3396_s22 = sphi %s3453_s22, %s4900_s22   ;;  %s3392_s21 = sphi %s3451_s21, %s4899_s21   ;;  %s3388_s20 = sphi %s3449_s20, %s4898_s20   ;;  %s3384_s19 = sphi %s3447_s19, %s4897_s19   ;;  %s3380_s18 = sphi %s3445_s18, %s4896_s18  }
   0xb   : > { %p57_p0 = scmp.ne.s32.totalorder %s3384_s19, %s3380_s18  ;;  %p3479_p1 = scmp.eq.s32.totalorder %s2524_s24, 0 }
   0xc   : > { %p3483_p2 = scmp.eq.s32.totalorder %s2524_s24, 1  ;;  %p176_p3 = scmp.eq.s32.totalorder %s2525_s25, 1 }
   0xd   : > { %s4766_s26 = scalar_select %p3479_p1, 1, 0 }
   0xe   : > { %s4767_s27 = scalar_select %p3483_p2, 1, 0 }
   0xf   : > { %p3489_p4 = por %p3479_p1, %p57_p0  ;;  %p2526_p5 = scmp.ge.s32.totalorder %s3400_s23, 1 }
  0x10   : > { %p3494_p6 = por %p176_p3, %p57_p0  ;;  %p183_p7 = scmp.lt.s32.totalorder %s3400_s23, 3 }
  0x11   : > { %s4768_s28 = scalar_select %p3489_p4, 1, 0 }
  0x12   : > { %s4769_s29 = scalar_select %p3494_p6, 1, 0 }
  0x13   : > { %p3499_p8 = pnand %p2526_p5, %p183_p7  ;;  %s3402_s6 = smov [#allocation6]  }
  0x14   : > { %4770 = sst [smem:[#allocation16_spill]] %s4769_s29  ;;  %s199_s7 = sshll.u32 %s3402_s6, 4  ;;  %s3503_s7 = int_to_ptr.vmem [resolvable:$true] %s199_s7 }
  0x15   : > { %s4771_s30 = scalar_select %p3499_p8, 1, 0 }
  0x16   : > { %p2799_p9 = pneg %p3499_p8  ;;  %s3403_s9 = smov [#allocation8]  }
  0x17   : > { %s212_s10 = sshll.u32 %s3403_s9, 4  ;;  %s4773_s1 = sld [smem:[#allocation27_spill]]  ;;  %s3514_s10 = int_to_ptr.vmem [resolvable:$true] %s212_s10 }
  0x18   : > { %p3510_p11 = pnand %p2799_p9, %p3479_p1 }
  0x1a   : > { %p3524_p13 = pneg %p3510_p11 }
  0x1d   : > { %s3196_s13 = scalar_lea.hbm %s4773_s1, 8192 }
  0x1e   : > { %p3197_p12 = scmp.ne.s32.totalorder %s4773_s1, %s3196_s13  ;;  %p3203_p5 = scmp.lt.u32.totalorder %s3196_s13, %s4773_s1 }
  0x20   : > { %p3199_p0 = pnand %p3524_p13, %p3197_p12 }
  0x22   : > { %p3200_p3 = pneg %p3199_p0 }
  0x24   : > { %p3205_p7 = pnand %p3203_p5, %p3200_p3 }
  0x26   : > { %3208 = shalt.err (!%p3205_p7)
}
  0x27   : > { %s3209_s25 = scalar_lea.vmem %s3503_s7, 8192  ;;  %p3217_p1 = scmp.lt.s32.totalorder %s3503_s7, %s3503_s7 }
  0x28   : > { %p3210_p9 = scmp.ne.s32.totalorder %s3503_s7, %s3209_s25  ;;  %p3218_p4 = scmp.lt.s32.totalorder %s3209_s25, %s3209_s25 }
  0x2a   : > { %p3212_p10 = pnand %p3210_p9, %p3524_p13  ;;  %p3219_p12 = por %p3218_p4, %p3217_p1 }
  0x2c   : > { %p3213_p6 = pneg %p3212_p10 }
  0x2e   : > { %p3220_p0 = pnand %p3219_p12, %p3213_p6 }
  0x30   : > { %3223 = shalt.err (!%p3220_p0)
}
  0x31   : > { %s3404_s6 = smov 128   ;;  %s3405_s9 = smov 8  }
  0x32   : > { %2802 = dma.hbm_to_vmem [thread:$0]  (!%p3510_p11), %s4773_s1, 8192, %s3503_s7, [#allocation7], %s3404_s6, %s3404_s6, %s3405_s9  }
  0x33   : > { %s3224_s15 = scalar_lea.hbm %s4748_s2, 2048 }
  0x34   : > { %p3225_p1 = scmp.ne.s32.totalorder %s4748_s2, %s3224_s15  ;;  %p3231_p10 = scmp.lt.u32.totalorder %s3224_s15, %s4748_s2 }
  0x36   : > { %p3227_p4 = pnand %p3225_p1, %p3524_p13 }
  0x38   : > { %p3228_p6 = pneg %p3227_p4 }
  0x3a   : > { %p3233_p3 = pnand %p3231_p10, %p3228_p6 }
  0x3c   : > { %3236 = shalt.err (!%p3233_p3)
}
  0x3d   : > { %s3237_s7 = scalar_lea.vmem %s3514_s10, 2048  ;;  %p3245_p12 = scmp.lt.s32.totalorder %s3514_s10, %s3514_s10 }
  0x3e   : > { %p3238_p5 = scmp.ne.s32.totalorder %s3514_s10, %s3237_s7  ;;  %p3246_p0 = scmp.lt.s32.totalorder %s3237_s7, %s3237_s7 }
  0x40   : > { %p3240_p7 = pnand %p3238_p5, %p3524_p13  ;;  %p3247_p1 = por %p3246_p0, %p3245_p12 }
  0x42   : > { %p3241_p9 = pneg %p3240_p7 }
  0x44   : > { %p3248_p4 = pnand %p3247_p1, %p3241_p9 }
  0x46   : > { %3251 = shalt.err (!%p3248_p4)
}
  0x47   : > { %s3406_s6 = smov 64   ;;  %s3407_s29 = smov 4  }
  0x48   : > { %2805 = dma.hbm_to_vmem [thread:$0]  (!%p3510_p11), %s4748_s2, 2048, %s3514_s10, [#allocation7], %s3406_s6, %s3406_s6, %s3407_s29  }
  0x49   : > { %s3408_s12 = smov [#allocation9]   ;;  %s3252_s17 = scalar_lea.hbm %s4749_s3, 1024 }
  0x4a   : > { %s225_s13 = sshll.u32 %s3408_s12, 4  ;;  %p3253_p6 = scmp.ne.s32.totalorder %s4749_s3, %s3252_s17  ;;  %s226_s13 = int_to_ptr.vmem [resolvable:$true] %s225_s13 }
  0x4b   : > { %p3259_p5 = scmp.lt.u32.totalorder %s3252_s17, %s4749_s3 }
  0x4c   : > { %p3255_p10 = pnand %p3253_p6, %p3524_p13 }
  0x4e   : > { %p3256_p3 = pneg %p3255_p10 }
  0x50   : > { %p3261_p7 = pnand %p3259_p5, %p3256_p3 }
  0x52   : > { %3264 = shalt.err (!%p3261_p7)
}
  0x53   : > { %s3265_s10 = scalar_lea.vmem %s226_s13, 1024  ;;  %p3273_p1 = scmp.lt.s32.totalorder %s226_s13, %s226_s13 }
  0x54   : > { %p3266_p9 = scmp.ne.s32.totalorder %s226_s13, %s3265_s10  ;;  %p3274_p4 = scmp.lt.s32.totalorder %s3265_s10, %s3265_s10 }
  0x56   : > { %p3268_p12 = pnand %p3266_p9, %p3524_p13  ;;  %p3275_p8 = por %p3274_p4, %p3273_p1 }
  0x58   : > { %p3269_p0 = pneg %p3268_p12 }
  0x5a   : > { %p3276_p2 = pnand %p3275_p8, %p3269_p0 }
  0x5c   : > { %3279 = shalt.err (!%p3276_p2)
}
  0x5d   : > { %2808 = dma.hbm_to_vmem [thread:$0]  (!%p3510_p11), %s4749_s3, 1024, %s226_s13, [#allocation10], %s3406_s6, %s3406_s6, %s3407_s29  }
  0x5e   : > { %s35_s1 = sadd.s32 1, %s3396_s22  ;;  %s44_s16 = sadd.s32 1, %s3388_s20 }
  0x5f   : > { %p37_p8 = scmp.ge.s32.totalorder %s35_s1, 2  ;;  %p51_p2 = scmp.ne.s32.totalorder %s3388_s20, %s3384_s19 }
  0x60   : > { %p52_p13 = scmp.eq.s32.totalorder %s3400_s23, 0  ;;  %p4776_p10 = scmp.ne.s32.totalorder %s4767_s27, 0 }
  0x61   : > { %s4902_s1 = smov (%p37_p8, %s35_s1), 0  ;;  %p2820_p11 = scmp.lt.s32.totalorder %s3400_s23, 2 }
  0x62   : > { %p3593_p6 = por %p52_p13, %p51_p2  ;;  %p3599_p3 = por %p4776_p10, %p51_p2 }
  0x63   : > { %s39_s14 = ssub.s32 %s3396_s22, %s4902_s1  ;;  %s242_s6 = sand.u32 1, %s3388_s20  }
  0x64   : > { %p42_p5 = scmp.eq.s32.totalorder %s39_s14, 0  ;;  %s2531_s29 = sshll.u32 %s242_s6, 9 }
  0x65   : > { %s2637_s15 = sshll.u32 %s3396_s22, 13  ;;  %s246_s27 = scalar_lea.vmem [#allocation3], %s2531_s29 }
  0x66   : > { %s3608_s13 = scalar_select %p42_p5, %s3388_s20, %s44_s16  }
  0x67   : > { %s3614_s25 = scalar_lea.hbm %s4746_s0, %s2637_s15  ;;  %s256_s7 = sshll.u32 %s246_s27, 4  ;;  %s3616_s7 = int_to_ptr.vmem [resolvable:$true] %s256_s7 }
  0x68   : > { %p3620_p7 = pnand %p2820_p11, %p3593_p6  ;;  %s3624_s9 = scalar_lea.sflag [#allocation4], %s242_s6 }
  0x69   : > { %s3280_s11 = scalar_lea.hbm %s3614_s25, 8192  ;;  %s3285_s8 = scalar_lea.hbm %s4746_s0, 16384 }
  0x6a   : > { %p3281_p9 = scmp.ne.s32.totalorder %s3614_s25, %s3280_s11  ;;  %p3282_p12 = pneg %p3620_p7 }
  0x6b   : > { %p3286_p4 = scmp.lt.u32.totalorder %s3614_s25, %s4746_s0  ;;  %p3287_p8 = scmp.lt.u32.totalorder %s3285_s8, %s3280_s11 }
  0x6c   : > { %p3283_p0 = pnand %p3282_p12, %p3281_p9  ;;  %p3289_p13 = scmp.lt.u32.totalorder %s3280_s11, %s3614_s25 }
  0x6d   : > { %p3288_p2 = por %p3287_p8, %p3286_p4 }
  0x6e   : > { %p3284_p1 = pneg %p3283_p0 }
  0x6f   : > { %p3290_p6 = por %p3289_p13, %p3288_p2 }
  0x71   : > { %p3291_p10 = pnand %p3290_p6, %p3284_p1 }
  0x73   : > { %3294 = shalt.err (!%p3291_p10)
}
  0x74   : > { %s3295_s6 = scalar_lea.vmem %s3616_s7, 8192  ;;  %s3409_s17 = smov [#allocation3]  }
  0x75   : > { %p3296_p11 = scmp.ne.s32.totalorder %s3616_s7, %s3295_s6  ;;  %s3300_s24 = sshll.u32 %s3409_s17, 4  ;;  %s3301_s24 = int_to_ptr.vmem [resolvable:$false] %s3300_s24 }
  0x76   : > { %s3302_s27 = scalar_lea.vmem %s3301_s24, 16384  ;;  %p3303_p0 = scmp.lt.s32.totalorder %s3616_s7, %s3301_s24 }
  0x77   : > { %p3298_p5 = pnand %p3296_p11, %p3282_p12  ;;  %p3304_p4 = scmp.lt.s32.totalorder %s3302_s27, %s3295_s6 }
  0x79   : > { %p3299_p9 = pneg %p3298_p5  ;;  %p3305_p8 = por %p3304_p4, %p3303_p0 }
  0x7b   : > { %p3306_p2 = pnand %p3305_p8, %p3299_p9 }
  0x7d   : > { %3309 = shalt.err (!%p3306_p2)
}
  0x7e   : > { %s3410_s11 = smov 512   ;;  %s3411_s16 = smov 32  }
  0x7f   : > { %2812 = dma.hbm_to_vmem [thread:$0]  (!%p3620_p7), %s3614_s25, 8192, %s3616_s7, %s3624_s9, %s3410_s11, %s3410_s11, %s3411_s16  }
  0x80   : > { %p4779_p12 = scmp.ne.s32.totalorder %s4771_s30, 0 }
  0x82   : > { %268 = sbr.rel (%p4779_p12) target bundleno = 1138 (0x472), region = 40 }
  0x89   : > { %s3655_s14 = sand.u32 1, %s3384_s19   ;;  %p4780_p1 = scmp.ne.s32.totalorder %s4768_s28, 0 }
  0x8a   : > { %s2536_s8 = sshll.u32 %s3655_s14, 9  ;;  %s271_s29 = scalar_lea.sflag [#allocation4], %s3655_s14 }
  0x8b   : > { %s3659_s15 = scalar_lea.vmem [#allocation3], %s2536_s8 }
  0x8c   : > { %3363 = dma.done.wait (%p4780_p1), %s271_s29, 8192  }
  0x8d   : > { %3365 = vsyncadd (%p4780_p1), %s271_s29, 4294959104  ;;  %p4781_p7 = scmp.ne.s32.totalorder %s4766_s26, 0 }
  0x8f   : > { %3367 = dma.done.wait (%p4781_p7), [#allocation7], 10240  }
  0x90   : > { %3369 = vsyncadd (%p4781_p7), [#allocation7], 4294957056 }
  0x91   : > { %3371 = dma.done.wait (%p4781_p7), [#allocation10], 1024  }
  0x92   : > { %3373 = vsyncadd (%p4781_p7), [#allocation10], 4294966272  ;;  %v2884_v0 = vld [vmem:[#allocation6 + $0x4] ss:$8 sps:$4 sm:$0xff]   ;;  %v2886_v1 = vld [vmem:[#allocation6] ss:$8 sps:$4 sm:$0xff]  }
  0x93   : > { %866 = vmatprep.subr.bf16.mxu0 %v2884_v0  ;;  %v2887_v2 = vld [vmem:[#allocation6 + $0x14] ss:$8 sps:$4 sm:$0xff]   ;;  %v2889_v3 = vld [vmem:[#allocation6 + $0x10] ss:$8 sps:$4 sm:$0xff]   ;;  %v2890_v4 = vld [vmem:[#allocation6 + $0x24] ss:$8 sps:$4 sm:$0xff]  }
  0x94   : > { %867 = vmatpush1.bf16.msra.mxu0 %v2886_v1  ;;  %v2892_v5 = vld [vmem:[#allocation6 + $0x20] ss:$8 sps:$4 sm:$0xff]   ;;  %v2893_v6 = vld [vmem:[#allocation6 + $0x34] ss:$8 sps:$4 sm:$0xff]   ;;  %v2895_v7 = vld [vmem:[#allocation6 + $0x30] ss:$8 sps:$4 sm:$0xff]  }
  0x95   : > { %868 = vmatprep.subr.bf16.mxu0 %v2887_v2  ;;  %v2896_v8 = vld [vmem:[#allocation6 + $0x44] ss:$8 sps:$4 sm:$0xff]   ;;  %v2898_v9 = vld [vmem:[#allocation6 + $0x40] ss:$8 sps:$4 sm:$0xff]   ;;  %v2899_v10 = vld [vmem:[#allocation6 + $0x54] ss:$8 sps:$4 sm:$0xff]  }
  0x96   : > { %v2901_v11 = vld [vmem:[#allocation6 + $0x50] ss:$8 sps:$4 sm:$0xff]   ;;  %v2902_v12 = vld [vmem:[#allocation6 + $0x64] ss:$8 sps:$4 sm:$0xff]   ;;  %v2904_v16 = vld [vmem:[#allocation6 + $0x60] ss:$8 sps:$4 sm:$0xff]  }
  0x97   : > { %v387_v13 = vld [vmem:[%s3659_s15 + $0x8] sm:$0xff]  ;;  %v2905_v17 = vld [vmem:[#allocation6 + $0x74] ss:$8 sps:$4 sm:$0xff]   ;;  %v2907_v18 = vld [vmem:[#allocation6 + $0x70] ss:$8 sps:$4 sm:$0xff]   ;;  %s2540_s7 = sshll.u32 %s3655_s14, 7 }
  0x98   : > { %869 = vmatpush1.bf16.msra.mxu0 %v2889_v3  ;;  %v391_v14 = vld [vmem:[%s3659_s15 + $0x28] sm:$0xff]  ;;  %v2911_v21 = vld [vmem:[#allocation6 + $0x94] ss:$8 sps:$4 sm:$0xff]   ;;  %v2913_v22 = vld [vmem:[#allocation6 + $0x90] ss:$8 sps:$4 sm:$0xff]   ;;  %s4672_s6 = scalar_lea.vmem [#allocation11], %s2540_s7 }
  0x99   : > { %870 = vmatprep.subr.bf16.mxu0 %v2890_v4  ;;  %v451_v15 = vpack.c.bf16 %v391_v14, %v387_v13  ;;  %v2908_v19 = vld [vmem:[#allocation6 + $0x84] ss:$8 sps:$4 sm:$0xff]   ;;  %v2910_v20 = vld [vmem:[#allocation6 + $0x80] ss:$8 sps:$4 sm:$0xff]   ;;  %v2917_v25 = vld [vmem:[#allocation6 + $0xb4] ss:$8 sps:$4 sm:$0xff]  }
  0x9a   : > { %v2914_v23 = vld [vmem:[#allocation6 + $0xa4] ss:$8 sps:$4 sm:$0xff]   ;;  %v2916_v24 = vld [vmem:[#allocation6 + $0xa0] ss:$8 sps:$4 sm:$0xff]   ;;  %v2919_v26 = vld [vmem:[#allocation6 + $0xb0] ss:$8 sps:$4 sm:$0xff]  }
  0x9b   : > { %898 = vmatprep.mubr.bf16.mxu0 %v451_v15  ;;  %v2920_v27 = vld [vmem:[#allocation6 + $0xc4] ss:$8 sps:$4 sm:$0xff]   ;;  %v2922_v28 = vld [vmem:[#allocation6 + $0xc0] ss:$8 sps:$4 sm:$0xff]   ;;  %v2923_v29 = vld [vmem:[#allocation6 + $0xd4] ss:$8 sps:$4 sm:$0xff]  }
  0x9c   : > { %871 = vmatpush1.bf16.msra.mxu0 %v2892_v5  ;;  %v2925_v30 = vld [vmem:[#allocation6 + $0xd0] ss:$8 sps:$4 sm:$0xff]   ;;  %v2926_v31 = vld [vmem:[#allocation6 + $0xe4] ss:$8 sps:$4 sm:$0xff]   ;;  %v2928_v32 = vld [vmem:[#allocation6 + $0xe0] ss:$8 sps:$4 sm:$0xff]  }
  0x9d   : > { %872 = vmatprep.subr.bf16.mxu0 %v2893_v6  ;;  %v2929_v33 = vld [vmem:[#allocation6 + $0xf4] ss:$8 sps:$4 sm:$0xff]   ;;  %v2931_v34 = vld [vmem:[#allocation6 + $0xf0] ss:$8 sps:$4 sm:$0xff]   ;;  %v386_v35 = vld [vmem:[%s3659_s15] sm:$0xff]  ;;  %s2638_s17 = sshll.u32 %s3392_s21, 11 }
  0x9e   : > { %v390_v36 = vld [vmem:[%s3659_s15 + $0x20] sm:$0xff]  ;;  %v395_v38 = vld [vmem:[%s3659_s15 + $0x48] sm:$0xff]  ;;  %v2937_v42 = vld [vmem:[#allocation6 + $0x114] ss:$8 sps:$4 sm:$0xff]   ;;  %s2409_s24 = sshll.u32 %s4672_s6, 4  ;;  %s4692_s16 = scalar_lea.hbm %s4751_s5, %s2638_s17  ;;  %s4694_s24 = int_to_ptr.vmem [resolvable:$true] %s2409_s24 }
  0x9f   : > { %v2934_v37 = vld [vmem:[#allocation6 + $0x104] ss:$8 sps:$4 sm:$0xff]   ;;  %v450_v40 = vpack.c.bf16 %v390_v36, %v386_v35  ;;  %v2932_v41 = vld [vmem:[#allocation6 + $0x100] ss:$8 sps:$4 sm:$0xff]   ;;  %v2935_v44 = vld [vmem:[#allocation6 + $0x110] ss:$8 sps:$4 sm:$0xff]  }
  0xa0   : > { %873 = vmatpush1.bf16.msra.mxu0 %v2895_v7  ;;  %v399_v39 = vld [vmem:[%s3659_s15 + $0x68] sm:$0xff]  ;;  %v394_v45 = vld [vmem:[%s3659_s15 + $0x40] sm:$0xff]  ;;  %v2943_v52 = vld [vmem:[#allocation6 + $0x134] ss:$8 sps:$4 sm:$0xff]   ;;  %s2396_s21 = scalar_lea.sflag [#allocation5], %s3655_s14  ;;  %s3310_s8 = scalar_lea.vmem %s4694_s24, 2048 }
  0xa1   : > { %874 = vmatprep.subr.bf16.mxu0 %v2896_v8  ;;  %v455_v43 = vpack.c.bf16 %v399_v39, %v395_v38  ;;  %v398_v46 = vld [vmem:[%s3659_s15 + $0x60] sm:$0xff]  ;;  %v403_v48 = vld [vmem:[%s3659_s15 + $0x88] sm:$0xff]  ;;  %v2941_v54 = vld [vmem:[#allocation6 + $0x130] ss:$8 sps:$4 sm:$0xff]   ;;  %p3311_p13 = scmp.ne.s32.totalorder %s4694_s24, %s3310_s8  ;;  %s3412_s29 = smov [#allocation11]  }
  0xa2   : > { %v2940_v47 = vld [vmem:[#allocation6 + $0x124] ss:$8 sps:$4 sm:$0xff]   ;;  %v2938_v50 = vld [vmem:[#allocation6 + $0x120] ss:$8 sps:$4 sm:$0xff]   ;;  %v454_v51 = vpack.c.bf16 %v398_v46, %v394_v45  ;;  %v2949_v63 = vld [vmem:[#allocation6 + $0x154] ss:$8 sps:$4 sm:$0xff]  }
  0xa3   : > { %v407_v49 = vld [vmem:[%s3659_s15 + $0xa8] sm:$0xff]  ;;  %v402_v55 = vld [vmem:[%s3659_s15 + $0x80] sm:$0xff]  ;;  %v2947_v0 = vld [vmem:[#allocation6 + $0x150] ss:$8 sps:$4 sm:$0xff]   ;;  %p3312_p6 = pnand %p3311_p13, %p3599_p3 }
  0xa4   : > { %875 = vmatpush1.bf16.msra.mxu0 %v2898_v9  ;;  %v459_v53 = vpack.c.bf16 %v407_v49, %v403_v48  ;;  %v406_v56 = vld [vmem:[%s3659_s15 + $0xa0] sm:$0xff]  ;;  %v411_v58 = vld [vmem:[%s3659_s15 + $0xc8] sm:$0xff]  ;;  %v2955_v9 = vld [vmem:[#allocation6 + $0x174] ss:$8 sps:$4 sm:$0xff]  }
  0xa5   : > { %876 = vmatprep.subr.bf16.mxu0 %v2899_v10  ;;  %v2946_v57 = vld [vmem:[#allocation6 + $0x144] ss:$8 sps:$4 sm:$0xff]   ;;  %v2944_v60 = vld [vmem:[#allocation6 + $0x140] ss:$8 sps:$4 sm:$0xff]   ;;  %v458_v61 = vpack.c.bf16 %v406_v56, %v402_v55  ;;  %v2953_v10 = vld [vmem:[#allocation6 + $0x170] ss:$8 sps:$4 sm:$0xff]   ;;  %p3313_p10 = pneg %p3312_p6 }
  0xa6   : > { %v415_v59 = vld [vmem:[%s3659_s15 + $0xe8] sm:$0xff]  ;;  %v410_v1 = vld [vmem:[%s3659_s15 + $0xc0] sm:$0xff]  ;;  %v2973_v39 = vld [vmem:[#allocation6 + $0x1d4] ss:$8 sps:$4 sm:$0xff]  }
  0xa7   : > { %v463_v62 = vpack.c.bf16 %v415_v59, %v411_v58  ;;  %v414_v2 = vld [vmem:[%s3659_s15 + $0xe0] sm:$0xff]  ;;  %v419_v4 = vld [vmem:[%s3659_s15 + $0x108] sm:$0xff]  ;;  %v393_v45 = vld [vmem:[%s3659_s15 + $0x38] sm:$0xff] }
  0xa8   : > { %877 = vmatpush1.bf16.msra.mxu0 %v2901_v11  ;;  %v2952_v3 = vld [vmem:[#allocation6 + $0x164] ss:$8 sps:$4 sm:$0xff]   ;;  %v462_v6 = vpack.c.bf16 %v414_v2, %v410_v1  ;;  %v2950_v7 = vld [vmem:[#allocation6 + $0x160] ss:$8 sps:$4 sm:$0xff]   ;;  %v2979_v49 = vld [vmem:[#allocation6 + $0x1f4] ss:$8 sps:$4 sm:$0xff]  }
  0xa9   : > { %878 = vmatprep.subr.bf16.mxu0 %v2902_v12  ;;  %v423_v5 = vld [vmem:[%s3659_s15 + $0x128] sm:$0xff]  ;;  %v418_v11 = vld [vmem:[%s3659_s15 + $0x100] sm:$0xff]  ;;  %v400_v58 = vld [vmem:[%s3659_s15 + $0x70] sm:$0xff] }
  0xaa   : > { %v467_v8 = vpack.c.bf16 %v423_v5, %v419_v4  ;;  %v422_v12 = vld [vmem:[%s3659_s15 + $0x120] sm:$0xff]  ;;  %v427_v14 = vld [vmem:[%s3659_s15 + $0x148] sm:$0xff]  ;;  %v405_v59 = vld [vmem:[%s3659_s15 + $0x98] sm:$0xff] }
  0xab   : > { %v2958_v13 = vld [vmem:[#allocation6 + $0x184] ss:$8 sps:$4 sm:$0xff]   ;;  %v413_v1 = vld [vmem:[%s3659_s15 + $0xd8] sm:$0xff]  ;;  %v412_v5 = vld [vmem:[%s3659_s15 + $0xd0] sm:$0xff] }
  0xac   : > { %879 = vmatpush1.bf16.msra.mxu0 %v2904_v16  ;;  %v431_v15 = vld [vmem:[%s3659_s15 + $0x168] sm:$0xff]  ;;  %v466_v16 = vpack.c.bf16 %v422_v12, %v418_v11  ;;  %v417_v2 = vld [vmem:[%s3659_s15 + $0xf8] sm:$0xff]  ;;  %v420_v11 = vld [vmem:[%s3659_s15 + $0x110] sm:$0xff] }
  0xad   : > { %880 = vmatprep.subr.bf16.mxu0 %v2905_v17  ;;  %v2956_v17 = vld [vmem:[#allocation6 + $0x180] ss:$8 sps:$4 sm:$0xff]   ;;  %v465_v4 = vpack.c.bf16 %v417_v2, %v413_v1  ;;  %v424_v12 = vld [vmem:[%s3659_s15 + $0x130] sm:$0xff] }
  0xae   : > { %v447_v35 = vld [vmem:[%s3659_s15 + $0x1e8] sm:$0xff] }
  0xb0   : > { %881 = vmatpush1.bf16.msra.mxu0 %v2907_v18  ;;  %v471_v18 = vpack.c.bf16 %v431_v15, %v427_v14  ;;  %v433_v14 = vld [vmem:[%s3659_s15 + $0x178] sm:$0xff]  ;;  %v468_v15 = vpack.c.bf16 %v424_v12, %v420_v11 }
  0xb1   : > { %882 = vmatprep.subr.bf16.mxu0 %v2908_v19  ;;  %v2961_v19 = vld [vmem:[#allocation6 + $0x194] ss:$8 sps:$4 sm:$0xff]  }
  0xb4   : > { %883 = vmatpush1.bf16.msra.mxu0 %v2910_v20  ;;  %v2959_v20 = vld [vmem:[#allocation6 + $0x190] ss:$8 sps:$4 sm:$0xff]  }
  0xb5   : > { %884 = vmatprep.subr.bf16.mxu0 %v2911_v21  ;;  %v426_v21 = vld [vmem:[%s3659_s15 + $0x140] sm:$0xff] }
  0xb8   : > { %885 = vmatpush1.bf16.msra.mxu0 %v2913_v22  ;;  %v430_v22 = vld [vmem:[%s3659_s15 + $0x160] sm:$0xff] }
  0xb9   : > { %886 = vmatprep.subr.bf16.mxu0 %v2914_v23  ;;  %v2964_v23 = vld [vmem:[#allocation6 + $0x1a4] ss:$8 sps:$4 sm:$0xff]  }
  0xbc   : > { %887 = vmatpush1.bf16.msra.mxu0 %v2916_v24  ;;  %v435_v24 = vld [vmem:[%s3659_s15 + $0x188] sm:$0xff] }
  0xbd   : > { %888 = vmatprep.subr.bf16.mxu0 %v2917_v25  ;;  %v439_v25 = vld [vmem:[%s3659_s15 + $0x1a8] sm:$0xff] }
  0xc0   : > { %889 = vmatpush1.bf16.msra.mxu0 %v2919_v26  ;;  %v470_v26 = vpack.c.bf16 %v430_v22, %v426_v21 }
  0xc1   : > { %890 = vmatprep.subr.bf16.mxu0 %v2920_v27  ;;  %v2962_v27 = vld [vmem:[#allocation6 + $0x1a0] ss:$8 sps:$4 sm:$0xff]  }
  0xc4   : > { %891 = vmatpush1.bf16.msra.mxu0 %v2922_v28  ;;  %v475_v28 = vpack.c.bf16 %v439_v25, %v435_v24  ;;  %v440_v24 = vld [vmem:[%s3659_s15 + $0x1b0] sm:$0xff]  ;;  %v445_v25 = vld [vmem:[%s3659_s15 + $0x1d8] sm:$0xff] }
  0xc5   : > { %892 = vmatprep.subr.bf16.mxu0 %v2923_v29  ;;  %v2967_v29 = vld [vmem:[#allocation6 + $0x1b4] ss:$8 sps:$4 sm:$0xff]  }
  0xc8   : > { %893 = vmatpush1.bf16.msra.mxu0 %v2925_v30  ;;  %v2965_v30 = vld [vmem:[#allocation6 + $0x1b0] ss:$8 sps:$4 sm:$0xff]  }
  0xc9   : > { %894 = vmatprep.subr.bf16.mxu0 %v2926_v31  ;;  %v434_v31 = vld [vmem:[%s3659_s15 + $0x180] sm:$0xff] }
  0xcc   : > { %895 = vmatpush1.bf16.msra.mxu0 %v2928_v32  ;;  %v438_v32 = vld [vmem:[%s3659_s15 + $0x1a0] sm:$0xff] }
  0xcd   : > { %896 = vmatprep.subr.bf16.mxu0 %v2929_v33  ;;  %v2970_v33 = vld [vmem:[#allocation6 + $0x1c4] ss:$8 sps:$4 sm:$0xff]   ;;  %v474_v36 = vpack.c.bf16 %v438_v32, %v434_v31 }
  0xce   : > { %v2980_v32 = vld [vmem:[#allocation8 + $0x40] sm:$0xff]  }
  0xcf   : > { %2639 = vmatprep.subr.bf16.mxu1 %v2980_v32 }
  0xd0   : > { %897 = vmatpush1.bf16.msra.mxu0 %v2931_v34  ;;  %v443_v34 = vld [vmem:[%s3659_s15 + $0x1c8] sm:$0xff] }
  0xd1   : > { %979 = vmatprep.subr.bf16.mxu0 %v2934_v37  ;;  %v2968_v37 = vld [vmem:[#allocation6 + $0x1c0] ss:$8 sps:$4 sm:$0xff]   ;;  %v479_v38 = vpack.c.bf16 %v447_v35, %v443_v34 }
  0xd2   : > { %v2982_v34 = vld [vmem:[#allocation8 + $0x48] sm:$0xff]  }
  0xd3   : > { %899 = vmatmul.mubr.bf16.vlgmr.msra.gmra.mrb[0].mxu0 %v450_v40  ;;  %v2971_v40 = vld [vmem:[#allocation6 + $0x1d0] ss:$8 sps:$4 sm:$0xff]   ;;  %v2983_v35 = vld [vmem:[#allocation8 + $0x8] sm:$0xff]  }
  0xd4   : > { %980 = vmatpush1.bf16.msra.mxu0 %v2932_v41  ;;  %908 = vmatprep.mubr.bf16.mxu0 %v455_v43  ;;  %v442_v41 = vld [vmem:[%s3659_s15 + $0x1c0] sm:$0xff] }
  0xd5   : > { %981 = vmatprep.subr.bf16.mxu0 %v2937_v42  ;;  %v446_v42 = vld [vmem:[%s3659_s15 + $0x1e0] sm:$0xff] }
  0xd6   : > { %v2976_v43 = vld [vmem:[#allocation6 + $0x1e4] ss:$8 sps:$4 sm:$0xff]   ;;  %v478_v46 = vpack.c.bf16 %v446_v42, %v442_v41 }
  0xd7   : > { %v2989_v41 = vld [vmem:[#allocation8 + $0x20] sm:$0xff]   ;;  %v2990_v42 = vld [vmem:[#allocation8 + $0x68] sm:$0xff]  }
  0xd8   : > { %982 = vmatpush1.bf16.msra.mxu0 %v2935_v44  ;;  %v389_v44 = vld [vmem:[%s3659_s15 + $0x18] sm:$0xff] }
  0xd9   : > { %983 = vmatprep.subr.bf16.mxu0 %v2940_v47  ;;  %v2974_v47 = vld [vmem:[#allocation6 + $0x1e0] ss:$8 sps:$4 sm:$0xff]   ;;  %v453_v48 = vpack.c.bf16 %v393_v45, %v389_v44  ;;  %v2992_v44 = vld [vmem:[#allocation8 + $0x70] sm:$0xff]  }
  0xda   : > { %v2993_v45 = vld [vmem:[#allocation8 + $0x30] sm:$0xff]  }
  0xdb   : > { %909 = vmatmul.mubr.bf16.gmra.mrb[4].mxu0 %v454_v51  ;;  %v388_v51 = vld [vmem:[%s3659_s15 + $0x10] sm:$0xff] }
  0xdc   : > { %984 = vmatpush1.bf16.msra.mxu0 %v2938_v50  ;;  %918 = vmatprep.mubr.bf16.mxu0 %v459_v53  ;;  %v2977_v50 = vld [vmem:[#allocation6 + $0x1f0] ss:$8 sps:$4 sm:$0xff]  }
  0xdd   : > { %985 = vmatprep.subr.bf16.mxu0 %v2943_v52  ;;  %v392_v52 = vld [vmem:[%s3659_s15 + $0x30] sm:$0xff]  ;;  %v397_v53 = vld [vmem:[%s3659_s15 + $0x58] sm:$0xff] }
  0xde   : > { %v452_v55 = vpack.c.bf16 %v392_v52, %v388_v51  ;;  %v1191_v51 = vld [vmem:[%s4750_s4] sm:$0x3] }
  0xe0   : > { %986 = vmatpush1.bf16.msra.mxu0 %v2941_v54  ;;  %v401_v54 = vld [vmem:[%s3659_s15 + $0x78] sm:$0xff] }
  0xe1   : > { %987 = vmatprep.subr.bf16.mxu0 %v2946_v57  ;;  %v457_v56 = vpack.c.bf16 %v401_v54, %v397_v53  ;;  %v396_v57 = vld [vmem:[%s3659_s15 + $0x50] sm:$0xff] }
  0xe3   : > { %919 = vmatmul.mubr.bf16.gmra.mrb[8].mxu0 %v458_v61  ;;  %v456_v61 = vpack.c.bf16 %v400_v58, %v396_v57 }
  0xe4   : > { %988 = vmatpush1.bf16.msra.mxu0 %v2944_v60  ;;  %928 = vmatprep.mubr.bf16.mxu0 %v463_v62  ;;  %v409_v60 = vld [vmem:[%s3659_s15 + $0xb8] sm:$0xff] }
  0xe5   : > { %989 = vmatprep.subr.bf16.mxu0 %v2949_v63  ;;  %v461_v62 = vpack.c.bf16 %v409_v60, %v405_v59  ;;  %v404_v63 = vld [vmem:[%s3659_s15 + $0x90] sm:$0xff] }
  0xe8   : > { %990 = vmatpush1.bf16.msra.mxu0 %v2947_v0  ;;  %v408_v0 = vld [vmem:[%s3659_s15 + $0xb0] sm:$0xff] }
  0xe9   : > { %991 = vmatprep.subr.bf16.mxu0 %v2952_v3  ;;  %v460_v3 = vpack.c.bf16 %v408_v0, %v404_v63 }
  0xeb   : > { %929 = vmatmul.mubr.bf16.gmra.mrb[12].mxu0 %v462_v6  ;;  %v416_v6 = vld [vmem:[%s3659_s15 + $0xf0] sm:$0xff] }
  0xec   : > { %992 = vmatpush1.bf16.msra.mxu0 %v2950_v7  ;;  %938 = vmatprep.mubr.bf16.mxu0 %v467_v8  ;;  %v421_v7 = vld [vmem:[%s3659_s15 + $0x118] sm:$0xff] }
  0xed   : > { %993 = vmatprep.subr.bf16.mxu0 %v2955_v9  ;;  %v425_v8 = vld [vmem:[%s3659_s15 + $0x138] sm:$0xff]  ;;  %v464_v9 = vpack.c.bf16 %v416_v6, %v412_v5 }
  0xf0   : > { %994 = vmatpush1.bf16.msra.mxu0 %v2953_v10  ;;  %v469_v10 = vpack.c.bf16 %v425_v8, %v421_v7 }
  0xf1   : > { %995 = vmatprep.subr.bf16.mxu0 %v2958_v13  ;;  %v429_v13 = vld [vmem:[%s3659_s15 + $0x158] sm:$0xff] }
  0xf3   : > { %939 = vmatmul.mubr.bf16.gmra.mrb[16].mxu0 %v466_v16  ;;  %v473_v16 = vpack.c.bf16 %v433_v14, %v429_v13 }
  0xf4   : > { %996 = vmatpush1.bf16.msra.mxu0 %v2956_v17  ;;  %948 = vmatprep.mubr.bf16.mxu0 %v471_v18  ;;  %v428_v17 = vld [vmem:[%s3659_s15 + $0x150] sm:$0xff] }
  0xf5   : > { %997 = vmatprep.subr.bf16.mxu0 %v2961_v19  ;;  %v432_v18 = vld [vmem:[%s3659_s15 + $0x170] sm:$0xff]  ;;  %v437_v19 = vld [vmem:[%s3659_s15 + $0x198] sm:$0xff] }
  0xf6   : > { %v472_v21 = vpack.c.bf16 %v432_v18, %v428_v17 }
  0xf8   : > { %998 = vmatpush1.bf16.msra.mxu0 %v2959_v20  ;;  %v441_v20 = vld [vmem:[%s3659_s15 + $0x1b8] sm:$0xff] }
  0xf9   : > { %999 = vmatprep.subr.bf16.mxu0 %v2964_v23  ;;  %v477_v22 = vpack.c.bf16 %v441_v20, %v437_v19  ;;  %v436_v23 = vld [vmem:[%s3659_s15 + $0x190] sm:$0xff] }
  0xfb   : > { %949 = vmatmul.mubr.bf16.gmra.mrb[20].mxu0 %v470_v26  ;;  %v449_v26 = vld [vmem:[%s3659_s15 + $0x1f8] sm:$0xff] }
  0xfc   : > { %1000 = vmatpush1.bf16.msra.mxu0 %v2962_v27  ;;  %958 = vmatprep.mubr.bf16.mxu0 %v475_v28  ;;  %v476_v27 = vpack.c.bf16 %v440_v24, %v436_v23  ;;  %v481_v28 = vpack.c.bf16 %v449_v26, %v445_v25 }
  0xfd   : > { %1001 = vmatprep.subr.bf16.mxu0 %v2967_v29  ;;  %v444_v29 = vld [vmem:[%s3659_s15 + $0x1d0] sm:$0xff] }
 0x100   : > { %1002 = vmatpush1.bf16.msra.mxu0 %v2965_v30  ;;  %v448_v30 = vld [vmem:[%s3659_s15 + $0x1f0] sm:$0xff]  ;;  %s3314_s15 = sshll.u32 %s3412_s29, 4  ;;  %s3315_s15 = int_to_ptr.vmem [resolvable:$false] %s3314_s15 }
 0x101   : > { %1003 = vmatprep.subr.bf16.mxu0 %v2970_v33  ;;  %v480_v31 = vpack.c.bf16 %v448_v30, %v444_v29  ;;  %v2981_v33 = vld [vmem:[#allocation8] sm:$0xff]   ;;  %s3316_s26 = scalar_lea.vmem %s3315_s15, 4096  ;;  %p3317_p11 = scmp.lt.s32.totalorder %s4694_s24, %s3315_s15 }
 0x102   : > { %2640 = vmatpush3.bf16.msra.mxu1 %v2981_v33  ;;  %p3318_p5 = scmp.lt.s32.totalorder %s3316_s26, %s3310_s8 }
 0x103   : > { %959 = vmatmul.mubr.bf16.gmra.mrb[24].mxu0 %v474_v36  ;;  %2641 = vmatprep.subr.bf16.mxu1 %v2982_v34  ;;  %v2984_v36 = vld [vmem:[#allocation8 + $0x50] sm:$0xff]  }
 0x104   : > { %1004 = vmatpush1.bf16.msra.mxu0 %v2968_v37  ;;  %968 = vmatprep.mubr.bf16.mxu0 %v479_v38  ;;  %v2985_v37 = vld [vmem:[#allocation8 + $0x10] sm:$0xff]   ;;  %v2986_v38 = vld [vmem:[#allocation8 + $0x58] sm:$0xff]   ;;  %p3319_p9 = por %p3318_p5, %p3317_p11 }
 0x105   : > { %1005 = vmatprep.subr.bf16.mxu0 %v2973_v39  ;;  %v2987_v39 = vld [vmem:[#allocation8 + $0x18] sm:$0xff]  }
 0x106   : > { %2642 = vmatpush3.bf16.msra.mxu1 %v2983_v35  ;;  %p3320_p0 = pnand %p3319_p9, %p3313_p10 }
 0x107   : > { %2643 = vmatprep.subr.bf16.mxu1 %v2984_v36 }
 0x108   : > { %1006 = vmatpush1.bf16.msra.mxu0 %v2971_v40  ;;  %v2988_v40 = vld [vmem:[#allocation8 + $0x60] sm:$0xff]  }
 0x109   : > { %1007 = vmatprep.subr.bf16.mxu0 %v2976_v43  ;;  %v2991_v43 = vld [vmem:[#allocation8 + $0x28] sm:$0xff]  }
 0x10a   : > { %2644 = vmatpush3.bf16.msra.mxu1 %v2985_v37 }
 0x10b   : > { %969 = vmatmul.mubr.bf16.gmra.mrb[28].mxu0 %v478_v46  ;;  %2645 = vmatprep.subr.bf16.mxu1 %v2986_v38  ;;  %v2994_v46 = vld [vmem:[#allocation8 + $0x78] sm:$0xff]  }
 0x10c   : > { %1008 = vmatpush1.bf16.msra.mxu0 %v2974_v47  ;;  %1011 = vmatprep.mubr.bf16.mxu0 %v453_v48  ;;  %v2995_v47 = vld [vmem:[#allocation8 + $0x38] sm:$0xff]   ;;  %v1193_v48 = vlaneseq }
 0x10d   : > { %1009 = vmatprep.subr.bf16.mxu0 %v2979_v49 }
 0x10e   : > { %2646 = vmatpush3.bf16.msra.mxu1 %v2987_v39  ;;  %v1194_v49 = vshrl.u32 %v1193_v48, 7 }
 0x10f   : > { %2647 = vmatprep.subr.bf16.mxu1 %v2988_v40 }
 0x110   : > { %1010 = vmatpush1.bf16.msra.mxu0 %v2977_v50  ;;  %v1195_v50 = vsub.s32 0, %v1194_v49  ;;  %v1199_v60 = vsub.s32 1, %v1194_v49 }
 0x112   : > { %2648 = vmatpush3.bf16.msra.mxu1 %v2989_v41  ;;  %v3740_v52 = vrot.slane %v1191_v51, %v1195_v50  ;;  %v3750_v1 = vrot.slane %v1191_v51, %v1199_v60 }
 0x113   : > { %1012 = vmatmul.mubr.bf16.vlgmr.msra.gmra.mrb[0].mxu0 %v452_v55  ;;  %2649 = vmatprep.subr.bf16.mxu1 %v2990_v42 }
 0x114   : > { %1021 = vmatprep.mubr.bf16.mxu0 %v457_v56 }
 0x116   : > { %2650 = vmatpush3.bf16.msra.mxu1 %v2991_v43 }
 0x117   : > { %2651 = vmatprep.subr.bf16.mxu1 %v2992_v44 }
 0x11a   : > { %2652 = vmatpush3.bf16.msra.mxu1 %v2993_v45 }
 0x11b   : > { %1022 = vmatmul.mubr.bf16.gmra.mrb[4].mxu0 %v456_v61  ;;  %2653 = vmatprep.subr.bf16.mxu1 %v2994_v46 }
 0x11c   : > { %1031 = vmatprep.mubr.bf16.mxu0 %v461_v62 }
 0x11e   : > { %2654 = vmatpush3.bf16.msra.mxu1 %v2995_v47 }
 0x123   : > { %1032 = vmatmul.mubr.bf16.gmra.mrb[8].mxu0 %v460_v3 }
 0x124   : > { %1041 = vmatprep.mubr.bf16.mxu0 %v465_v4 }
 0x12b   : > { %1042 = vmatmul.mubr.bf16.gmra.mrb[12].mxu0 %v464_v9 }
 0x12c   : > { %1051 = vmatprep.mubr.bf16.mxu0 %v469_v10 }
 0x133   : > { %1052 = vmatmul.mubr.bf16.gmra.mrb[16].mxu0 %v468_v15 }
 0x134   : > { %1061 = vmatprep.mubr.bf16.mxu0 %v473_v16 }
 0x13b   : > { %1062 = vmatmul.mubr.bf16.gmra.mrb[20].mxu0 %v472_v21 }
 0x13c   : > { %1071 = vmatprep.mubr.bf16.mxu0 %v477_v22 }
 0x143   : > { %1072 = vmatmul.mubr.bf16.gmra.mrb[24].mxu0 %v476_v27 }
 0x144   : > { %1081 = vmatprep.mubr.bf16.mxu0 %v481_v28 }
 0x14b   : > { %1082 = vmatmul.mubr.bf16.gmra.mrb[28].mxu0 %v480_v31 }
 0x1e6   : > { %v1013_v53 = vpop.f32.mrb[0].mxu0 }
 0x1e7   : > { %v3743_v54 = vadd.f32 %v3740_v52, %v1013_v53  ;;  %v1015_v55 = vpop.f32.mrb[1].mxu0 }
 0x1e8   : > { %v1017_v56 = vpop.f32.mrb[2].mxu0  ;;  %v3763_v11 = vadd.f32 %v3750_v1, %v1015_v55 }
 0x1e9   : > { %v1267_v57 = vand.u32 2147483647, %v3743_v54  ;;  %v3747_v58 = vadd.f32 %v3740_v52, %v1017_v56  ;;  %v1019_v59 = vpop.f32.mrb[3].mxu0 }
 0x1ea   : > { %v1268_v20 = vand.u32 2147483647, %v3763_v11  ;;  %v3773_v21 = vadd.f32 %v3750_v1, %v1019_v59 }
 0x1eb   : > { %v1299_v61 = vsub.f32 0.0, %v1267_v57  ;;  %v1269_v62 = vand.u32 2147483647, %v3747_v58 }
 0x1ec   : > { %4782 = vst [vmem:[#allocation17_spill] sm:$0xff] %v3773_v21  ;;  %v1300_v33 = vsub.f32 0.0, %v1268_v20  ;;  %v1270_v34 = vand.u32 2147483647, %v3773_v21 }
 0x1ed   : > { %v1331_v63 = vmul.f32 1.442695, %v1299_v61  ;;  %v1301_v0 = vsub.f32 0.0, %v1269_v62  ;;  %v1235_v61 = vmax.f32 %v3743_v54, 0.0 }
 0x1ee   : > { %v1023_v2 = vpop.f32.mrb[4].mxu0  ;;  %v1333_v43 = vmul.f32 1.442695, %v1300_v33  ;;  %v1302_v44 = vsub.f32 0.0, %v1270_v34 }
 0x1ef   : > { %3004 = vpow2.f32 %v1331_v63  ;;  %v1335_v3 = vmul.f32 1.442695, %v1301_v0  ;;  %v3753_v4 = vadd.f32 %v3740_v52, %v1023_v2  ;;  %v1025_v5 = vpop.f32.mrb[5].mxu0  ;;  %v1237_v0 = vmax.f32 %v3747_v58, 0.0 }
 0x1f0   : > { %v3756_v6 = vadd.f32 %v3750_v1, %v1025_v5  ;;  %v1027_v7 = vpop.f32.mrb[6].mxu0  ;;  %v1337_v59 = vmul.f32 1.442695, %v1302_v44 }
 0x1f1   : > { %v1271_v8 = vand.u32 2147483647, %v3753_v4  ;;  %v3760_v9 = vadd.f32 %v3740_v52, %v1027_v7  ;;  %v1029_v10 = vpop.f32.mrb[7].mxu0  ;;  %3006 = vpow2.f32 %v1335_v3 }
 0x1f2   : > { %v1272_v12 = vand.u32 2147483647, %v3756_v6  ;;  %v3767_v13 = vadd.f32 %v3750_v1, %v1029_v10 }
 0x1f3   : > { %v1303_v14 = vsub.f32 0.0, %v1271_v8  ;;  %v1273_v15 = vand.u32 2147483647, %v3760_v9 }
 0x1f4   : > { %v1304_v16 = vsub.f32 0.0, %v1272_v12  ;;  %v1274_v17 = vand.u32 2147483647, %v3767_v13 }
 0x1f5   : > { %v1339_v18 = vmul.f32 1.442695, %v1303_v14  ;;  %v1305_v19 = vsub.f32 0.0, %v1273_v15 }
 0x1f6   : > { %v1341_v22 = vmul.f32 1.442695, %v1304_v16  ;;  %v1306_v23 = vsub.f32 0.0, %v1274_v17  ;;  %v1033_v24 = vpop.f32.mrb[8].mxu0 }
 0x1f7   : > { %v1343_v25 = vmul.f32 1.442695, %v1305_v19  ;;  %v3776_v26 = vadd.f32 %v3740_v52, %v1033_v24  ;;  %v1035_v27 = vpop.f32.mrb[9].mxu0  ;;  %3008 = vpow2.f32 %v1339_v18 }
 0x1f8   : > { %v3779_v28 = vadd.f32 %v3750_v1, %v1035_v27  ;;  %v1037_v29 = vpop.f32.mrb[10].mxu0  ;;  %3010 = vpow2.f32 %v1341_v22  ;;  %v1345_v35 = vmul.f32 1.442695, %v1306_v23 }
 0x1f9   : > { %v3781_v30 = vpop.eup %3004  ;;  %v1275_v31 = vand.u32 2147483647, %v3776_v26  ;;  %v1039_v32 = vpop.f32.mrb[11].mxu0  ;;  %3012 = vpow2.f32 %v1343_v25  ;;  %v3787_v38 = vadd.f32 %v3740_v52, %v1037_v29 }
 0x1fa   : > { %v1276_v37 = vand.u32 2147483647, %v3779_v28  ;;  %v1395_v40 = vadd.f32 1.0, %v3781_v30  ;;  %v3793_v45 = vadd.f32 %v3750_v1, %v1039_v32  ;;  %3014 = vpow2.f32 %v1345_v35 }
 0x1fb   : > { %v1307_v36 = vsub.f32 0.0, %v1275_v31  ;;  %v3789_v39 = vpop.eup %3006  ;;  %v1277_v48 = vand.u32 2147483647, %v3787_v38  ;;  %v1398_v57 = vmul.f32 -0.5, %v3781_v30  ;;  %v1401_v5 = vand.u32 2147483647, %v3781_v30 }
 0x1fc   : > { %v1308_v42 = vsub.f32 0.0, %v1276_v37  ;;  %v1413_v47 = vadd.f32 1.0, %v3789_v39  ;;  %3016 = vlog2.f32 %v1395_v40  ;;  %v1278_v53 = vand.u32 2147483647, %v3793_v45 }
 0x1fd   : > { %v1347_v41 = vmul.f32 1.442695, %v1307_v36  ;;  %v1309_v62 = vsub.f32 0.0, %v1277_v48  ;;  %v1399_v12 = vadd.f32 1.0, %v1398_v57  ;;  %v1416_v14 = vmul.f32 -0.5, %v3789_v39 }
 0x1fe   : > { %v1043_v46 = vpop.f32.mrb[12].mxu0  ;;  %v1349_v50 = vmul.f32 1.442695, %v1308_v42  ;;  %v1310_v10 = vsub.f32 0.0, %v1278_v53  ;;  %v1419_v23 = vand.u32 2147483647, %v3789_v39 }
 0x1ff   : > { %v1045_v49 = vpop.f32.mrb[13].mxu0  ;;  %3018 = vpow2.f32 %v1347_v41  ;;  %v1351_v20 = vmul.f32 1.442695, %v1309_v62  ;;  %vm3829_vm0 = vcmp.lt.f32.partialorder %v1401_v5, 0.0004427343  ;;  %v1400_v36 = vmul.f32 %v3781_v30, %v1399_v12 }
 0x200   : > { %v1047_v51 = vpop.f32.mrb[14].mxu0  ;;  %3020 = vpow2.f32 %v1333_v43  ;;  %v1353_v33 = vmul.f32 1.442695, %v1310_v10  ;;  %v1417_v37 = vadd.f32 1.0, %v1416_v14  ;;  %v3838_v40 = vadd.f32 %v3740_v52, %v1043_v46 }
 0x201   : > { %v3798_v55 = vpop.f32.mrb[15].mxu0  ;;  %v3800_v56 = vpop.eup %3008  ;;  %3022 = vlog2.f32 %v1413_v47  ;;  %vm3849_vm1 = vcmp.lt.f32.partialorder %v1419_v23, 0.0004427343  ;;  %v3856_v53 = vadd.f32 %v3750_v1, %v1045_v49  ;;  %v3860_v5 = vadd.f32 %v3740_v52, %v1047_v51 }
 0x202   : > { %v3803_v60 = vpop.eup %3010  ;;  %3024 = vpow2.f32 %v1349_v50  ;;  %v1431_v8 = vadd.f32 1.0, %v3800_v56  ;;  %v1434_v43 = vmul.f32 -0.5, %v3800_v56  ;;  %v1437_v62 = vand.u32 2147483647, %v3800_v56 }
 0x203   : > { %v3809_v3 = vpop.eup %3012  ;;  %3026 = vpow2.f32 %v1337_v59  ;;  %v1440_v15 = vadd.f32 1.0, %v3803_v60  ;;  %v1443_v44 = vmul.f32 -0.5, %v3803_v60  ;;  %v1418_v10 = vmul.f32 %v3789_v39, %v1417_v37 }
 0x204   : > { %v1449_v24 = vadd.f32 1.0, %v3809_v3  ;;  %v3827_v29 = vpop.eup %3014  ;;  %3028 = vlog2.f32 %v1431_v8  ;;  %v1452_v46 = vmul.f32 -0.5, %v3809_v3  ;;  %v1446_v12 = vand.u32 2147483647, %v3803_v60 }
 0x205   : > { %3030 = vlog2.f32 %v1440_v15  ;;  %v1458_v50 = vadd.f32 1.0, %v3827_v29  ;;  %v1279_v15 = vand.u32 2147483647, %v3838_v40  ;;  %v1444_v23 = vadd.f32 1.0, %v1443_v44 }
 0x206   : > { %v3816_v16 = vpop.f32.mrb[16].mxu0  ;;  %v3017_v35 = vpop.eup %3016  ;;  %3032 = vpow2.f32 %v1351_v20  ;;  %v1435_v20 = vadd.f32 1.0, %v1434_v43  ;;  %v1280_v39 = vand.u32 2147483647, %v3856_v53  ;;  %v1281_v43 = vand.u32 2147483647, %v3860_v5 }
 0x207   : > { %v3821_v22 = vpop.f32.mrb[17].mxu0  ;;  %3034 = vlog2.f32 %v1449_v24  ;;  %v1397_v59 = vmul.f32 0.6931472, %v3017_v35  ;;  %v1455_v24 = vand.u32 2147483647, %v3809_v3  ;;  %v1453_v35 = vadd.f32 1.0, %v1452_v46 }
 0x208   : > { %v3834_v34 = vpop.f32.mrb[18].mxu0  ;;  %3036 = vpow2.f32 %v1353_v33  ;;  %v1461_v33 = vmul.f32 -0.5, %v3827_v29  ;;  %v1311_v2 = vsub.f32 0.0, %v1279_v15  ;;  %vm3881_vm2 = vcmp.lt.f32.partialorder %v1437_v62, 0.0004427343 }
 0x209   : > { %v3840_v41 = vpop.f32.mrb[19].mxu0  ;;  %v3842_v42 = vpop.eup %3018  ;;  %3038 = vlog2.f32 %v1458_v50  ;;  %v1403_v37 = vsel %vm3829_vm0, %v1400_v36, %v1397_v59  ;;  %v1312_v15 = vsub.f32 0.0, %v1280_v39  ;;  %v3889_v36 = vmul.f32 %v3800_v56, %v1435_v20 }
 0x20a   : > { %v3847_v48 = vpop.eup %3020  ;;  %v1467_v14 = vadd.f32 1.0, %v3842_v42  ;;  %v1470_v46 = vmul.f32 -0.5, %v3842_v42  ;;  %v1355_v50 = vmul.f32 1.442695, %v1311_v2  ;;  %vm3891_vm3 = vcmp.lt.f32.partialorder %v1446_v12, 0.0004427343 }
 0x20b   : > { %v3023_v57 = vpop.eup %3022  ;;  %v1462_v59 = vadd.f32 1.0, %v1461_v33  ;;  %v1313_v62 = vsub.f32 0.0, %v1281_v43  ;;  %v1464_v2 = vand.u32 2147483647, %v3827_v29  ;;  %v1357_v39 = vmul.f32 1.442695, %v1312_v15 }
 0x20c   : > { %v3862_v8 = vpop.eup %3024  ;;  %v1415_v63 = vmul.f32 0.6931472, %v3023_v57  ;;  %3040 = vlog2.f32 %v1467_v14  ;;  %v3898_v14 = vmul.f32 %v3803_v60, %v1444_v23  ;;  %v3903_v18 = vadd.f32 %v3750_v1, %v3798_v55 }
 0x20d   : > { %v3872_v51 = vpop.eup %3026  ;;  %v1476_v47 = vadd.f32 1.0, %v3862_v8  ;;  %v3909_v12 = vadd.f32 %v1403_v37, %v1235_v61  ;;  %v3914_v33 = vmul.f32 %v3809_v3, %v1453_v35  ;;  %vm3916_vm4 = vcmp.lt.f32.partialorder %v1455_v24, 0.0004427343 }
 0x20e   : > { %v3868_v49 = vpop.f32.mrb[20].mxu0  ;;  %v3029_v31 = vpop.eup %3028  ;;  %v1421_v20 = vsel %vm3849_vm1, %v1418_v10, %v1415_v63  ;;  %v1471_v43 = vadd.f32 1.0, %v1470_v46  ;;  %v1473_v15 = vand.u32 2147483647, %v3842_v42  ;;  %v3926_v63 = vmul.f32 %v3827_v29, %v1462_v59 }
 0x20f   : > { %v3879_v44 = vpop.f32.mrb[21].mxu0  ;;  %v3031_v19 = vpop.eup %3030  ;;  %3042 = vlog2.f32 %v1476_v47  ;;  %v1433_v55 = vmul.f32 0.6931472, %v3029_v31  ;;  %v1479_v3 = vmul.f32 -0.5, %v3862_v8  ;;  %v1359_v30 = vmul.f32 1.442695, %v1313_v62 }
 0x210   : > { %v3886_v27 = vpop.f32.mrb[22].mxu0  ;;  %v3905_v56 = vpop.eup %3032  ;;  %3044 = vpow2.f32 %v1355_v50  ;;  %v1282_v10 = vand.u32 2147483647, %v3903_v18  ;;  %v1442_v47 = vmul.f32 0.6931472, %v3031_v19  ;;  %v3939_v46 = vadd.f32 %v3740_v52, %v3816_v16 }
 0x211   : > { %v3895_v25 = vpop.f32.mrb[23].mxu0  ;;  %v3035_v23 = vpop.eup %3034  ;;  %vm3932_vm5 = vcmp.lt.f32.partialorder %v1464_v2, 0.0004427343  ;;  %v1485_v37 = vadd.f32 1.0, %v3905_v56  ;;  %3046 = vpow2.f32 %v1357_v39  ;;  %v3945_v50 = vadd.f32 %v1421_v20, %v1237_v0 }
 0x212   : > { %v3923_v61 = vpop.eup %3036  ;;  %4795 = vst [vmem:[#allocation18_spill] sm:$0xff] %v3939_v46  ;;  %v1482_v31 = vand.u32 2147483647, %v3862_v8  ;;  %v3951_v59 = vadd.f32 %v3750_v1, %v3821_v22  ;;  %v1451_v39 = vmul.f32 0.6931472, %v3035_v23  ;;  %v1472_v16 = vmul.f32 %v3842_v42, %v1471_v43 }
 0x213   : > { %v1494_v19 = vadd.f32 1.0, %v3923_v61  ;;  %v3039_v2 = vpop.eup %3038  ;;  %vm3956_vm6 = vcmp.lt.f32.partialorder %v1473_v15, 0.0004427343  ;;  %v1314_v0 = vsub.f32 0.0, %v1282_v10  ;;  %v1439_v20 = vsel %vm3881_vm2, %v3889_v36, %v1433_v55 }
 0x214   : > { %4796 = vst [vmem:[#allocation19_spill] sm:$0xff] %v3951_v59  ;;  %v1480_v7 = vadd.f32 1.0, %v1479_v3  ;;  %3048 = vpow2.f32 %v1359_v30  ;;  %v1448_v42 = vsel %vm3891_vm3, %v3898_v14, %v1442_v47  ;;  %v1283_v43 = vand.u32 2147483647, %v3939_v46 }
 0x215   : > { %3050 = vlog2.f32 %v1485_v37  ;;  %v1361_v23 = vmul.f32 1.442695, %v1314_v0  ;;  %v1460_v15 = vmul.f32 0.6931472, %v3039_v2  ;;  %vm3969_vm7 = vcmp.lt.f32.partialorder %v1482_v31, 0.0004427343 }
 0x216   : > { %v3921_v54 = vpop.f32.mrb[24].mxu0  ;;  %v3041_v21 = vpop.eup %3040  ;;  %3052 = vlog2.f32 %v1494_v19  ;;  %v1284_v32 = vand.u32 2147483647, %v3951_v59  ;;  %v3976_v36 = vadd.f32 %v3740_v52, %v3834_v34  ;;  %v1457_v57 = vsel %vm3916_vm4, %v3914_v33, %v1451_v39 }
 0x217   : > { %v3930_v24 = vpop.f32.mrb[25].mxu0  ;;  %v1488_v14 = vmul.f32 -0.5, %v3905_v56  ;;  %3054 = vpow2.f32 %v1361_v23  ;;  %v1315_v55 = vsub.f32 0.0, %v1283_v43  ;;  %v1469_v47 = vmul.f32 0.6931472, %v3041_v21 }
 0x218   : > { %v3941_v29 = vpop.f32.mrb[26].mxu0  ;;  %v1481_v37 = vmul.f32 %v3862_v8, %v1480_v7  ;;  %v1316_v19 = vsub.f32 0.0, %v1284_v32  ;;  %v4801_v60 = vmax.f32 %v3753_v4, 0.0  ;;  %v1285_v0 = vand.u32 2147483647, %v3976_v36 }
 0x219   : > { %v3953_v62 = vpop.f32.mrb[27].mxu0  ;;  %v3043_v30 = vpop.eup %3042  ;;  %v1363_v39 = vmul.f32 1.442695, %v1315_v55  ;;  %v3997_v23 = vadd.f32 %v3750_v1, %v3840_v41  ;;  %v4802_v21 = vmax.f32 %v3756_v6, 0.0  ;;  %v4803_v8 = vmax.f32 %v3760_v9, 0.0 }
 0x21a   : > { %v3988_v34 = vpop.eup %3044  ;;  %v3992_v33 = vadd.f32 %v1439_v20, %v4801_v60  ;;  %v1466_v4 = vsel %vm3932_vm5, %v3926_v63, %v1460_v15  ;;  %v1365_v20 = vmul.f32 1.442695, %v1316_v19  ;;  %v1478_v60 = vmul.f32 0.6931472, %v3043_v30 }
 0x21b   : > { %v4001_v7 = vadd.f32 %v1448_v42, %v4802_v21  ;;  %v4005_v43 = vadd.f32 %v1457_v57, %v4803_v8  ;;  %v4012_v55 = vpop.eup %3046  ;;  %v1489_v41 = vadd.f32 1.0, %v1488_v14  ;;  %v1491_v31 = vand.u32 2147483647, %v3905_v56 }
 0x21c   : > { %3056 = vpow2.f32 %v1363_v39  ;;  %v1475_v9 = vsel %vm3956_vm6, %v1472_v16, %v1469_v47  ;;  %v1497_v42 = vmul.f32 -0.5, %v3923_v61  ;;  %v1503_v35 = vadd.f32 1.0, %v3988_v34 }
 0x21d   : > { %v1317_v63 = vsub.f32 0.0, %v1285_v0  ;;  %v1500_v15 = vand.u32 2147483647, %v3923_v61  ;;  %3058 = vpow2.f32 %v1365_v20  ;;  %v1286_v57 = vand.u32 2147483647, %v3997_v23 }
 0x21e   : > { %v3982_v3 = vpop.f32.mrb[28].mxu0  ;;  %v4025_v14 = vadd.f32 %v3740_v52, %v3868_v49  ;;  %v4027_v30 = vpop.eup %3048  ;;  %v4805_v19 = vmax.f32 %v3767_v13, 0.0  ;;  %v1512_v16 = vadd.f32 1.0, %v4012_v55  ;;  %v4806_v21 = vmax.f32 %v3776_v26, 0.0 }
 0x21f   : > { %v3986_v2 = vpop.f32.mrb[29].mxu0  ;;  %v1367_v39 = vmul.f32 1.442695, %v1317_v63  ;;  %v3051_v0 = vpop.eup %3050  ;;  %v1484_v49 = vsel %vm3969_vm7, %v1481_v37, %v1478_v60  ;;  %v1490_v20 = vmul.f32 %v3905_v56, %v1489_v41  ;;  %vm4042_vm8 = vcmp.lt.f32.partialorder %v1491_v31, 0.0004427343 }
 0x220   : > { %v4010_v32 = vpop.f32.mrb[30].mxu0  ;;  %4804 = vst [vmem:[#allocation20_spill] sm:$0xff] %v4025_v14  ;;  %v4031_v17 = vadd.f32 %v1466_v4, %v4805_v19  ;;  %v4037_v8 = vadd.f32 %v1475_v9, %v4806_v21  ;;  %v3053_v13 = vpop.eup %3052  ;;  %v1498_v4 = vadd.f32 1.0, %v1497_v42  ;;  %3060 = vlog2.f32 %v1503_v35 }
 0x221   : > { %v4015_v6 = vpop.f32.mrb[31].mxu0  ;;  %v1521_v19 = vadd.f32 1.0, %v4027_v30  ;;  %v1318_v63 = vsub.f32 0.0, %v1286_v57  ;;  %v4047_v47 = vpop.eup %3054  ;;  %vm4049_vm9 = vcmp.lt.f32.partialorder %v1500_v15, 0.0004427343  ;;  %v1506_v10 = vmul.f32 -0.5, %v3988_v34 }
 0x222   : > { %3062 = vpow2.f32 %v1367_v39  ;;  %v1287_v56 = vand.u32 2147483647, %v4025_v14  ;;  %v4811_v37 = vmax.f32 %v3779_v28, 0.0  ;;  %v1515_v60 = vmul.f32 -0.5, %v4012_v55 }
 0x223   : > { %3064 = vlog2.f32 %v1512_v16  ;;  %v1487_v9 = vmul.f32 0.6931472, %v3051_v0  ;;  %v1524_v42 = vmul.f32 -0.5, %v4027_v30  ;;  %v1530_v35 = vadd.f32 1.0, %v4047_v47 }
 0x224   : > { %v4057_v31 = vadd.f32 %v1484_v49, %v4811_v37  ;;  %v1369_v15 = vmul.f32 1.442695, %v1318_v63  ;;  %v1496_v57 = vmul.f32 0.6931472, %v3053_v13  ;;  %v1499_v39 = vmul.f32 %v3923_v61, %v1498_v4 }
 0x225   : > { %3066 = vlog2.f32 %v1521_v19  ;;  %v1507_v49 = vadd.f32 1.0, %v1506_v10  ;;  %v1509_v16 = vand.u32 2147483647, %v3988_v34  ;;  %v1319_v41 = vsub.f32 0.0, %v1287_v56 }
 0x226   : > { %v4065_v28 = vpop.eup %3056  ;;  %v1518_v0 = vand.u32 2147483647, %v4012_v55  ;;  %3068 = vpow2.f32 %v1369_v15  ;;  %v4073_v13 = vadd.f32 %v3750_v1, %v3879_v44  ;;  %v1493_v4 = vsel %vm4042_vm8, %v1490_v20, %v1487_v9 }
 0x227   : > { %v4075_v61 = vpop.eup %3058  ;;  %v1516_v19 = vadd.f32 1.0, %v1515_v60  ;;  %v1525_v63 = vadd.f32 1.0, %v1524_v42  ;;  %3070 = vlog2.f32 %v1530_v35  ;;  %v1502_v10 = vsel %vm4049_vm9, %v1499_v39, %v1496_v57 }
 0x228   : > { %4812 = vst [vmem:[#allocation21_spill] sm:$0xff] %v4073_v13  ;;  %v1527_v56 = vand.u32 2147483647, %v4027_v30  ;;  %v1533_v21 = vmul.f32 -0.5, %v4047_v47  ;;  %v1539_v15 = vadd.f32 1.0, %v4065_v28  ;;  %v1508_v44 = vmul.f32 %v3988_v34, %v1507_v49 }
 0x229   : > { %vm4085_vm10 = vcmp.lt.f32.partialorder %v1509_v16, 0.0004427343  ;;  %v1371_v22 = vmul.f32 1.442695, %v1319_v41  ;;  %v4091_v20 = vadd.f32 %v3740_v52, %v3886_v27  ;;  %v4815_v26 = vmax.f32 %v3787_v38, 0.0 }
 0x22a   : > { %v3061_v60 = vpop.eup %3060  ;;  %vm4097_vm11 = vcmp.lt.f32.partialorder %v1518_v0, 0.0004427343  ;;  %v1548_v34 = vadd.f32 1.0, %v4075_v61  ;;  %v1288_v57 = vand.u32 2147483647, %v4073_v13  ;;  %v4818_v27 = vmax.f32 %v3793_v45, 0.0 }
 0x22b   : > { %v4095_v9 = vadd.f32 %v1493_v4, %v4815_v26  ;;  %v1517_v38 = vmul.f32 %v4012_v55, %v1516_v19  ;;  %v1526_v49 = vmul.f32 %v4027_v30, %v1525_v63  ;;  %v1536_v16 = vand.u32 2147483647, %v4047_v47 }
 0x22c   : > { %v4104_v41 = vpop.eup %3062  ;;  %v4108_v39 = vadd.f32 %v1502_v10, %v4818_v27  ;;  %vm4113_vm12 = vcmp.lt.f32.partialorder %v1527_v56, 0.0004427343  ;;  %v1534_v26 = vadd.f32 1.0, %v1533_v21  ;;  %3072 = vlog2.f32 %v1539_v15 }
 0x22d   : > { %v3065_v0 = vpop.eup %3064  ;;  %v1542_v35 = vmul.f32 -0.5, %v4065_v28  ;;  %v1320_v58 = vsub.f32 0.0, %v1288_v57  ;;  %v1505_v14 = vmul.f32 0.6931472, %v3061_v60  ;;  %3074 = vpow2.f32 %v1371_v22 }
 0x22e   : > { %v1289_v45 = vand.u32 2147483647, %v4091_v20  ;;  %v4121_v55 = vadd.f32 %v3750_v1, %v3895_v25  ;;  %3076 = vlog2.f32 %v1548_v34  ;;  %v1551_v19 = vmul.f32 -0.5, %v4075_v61 }
 0x22f   : > { %v3067_v30 = vpop.eup %3066  ;;  %v1557_v63 = vadd.f32 1.0, %v4104_v41  ;;  %v1373_v10 = vmul.f32 1.442695, %v1320_v58  ;;  %v1514_v21 = vmul.f32 0.6931472, %v3065_v0  ;;  %v1543_v57 = vadd.f32 1.0, %v1542_v35 }
 0x230   : > { %vm4125_vm13 = vcmp.lt.f32.partialorder %v1536_v16, 0.0004427343  ;;  %v1321_v22 = vsub.f32 0.0, %v1289_v45  ;;  %v4130_v60 = vpop.eup %3068  ;;  %v1545_v25 = vand.u32 2147483647, %v4065_v28  ;;  %v1560_v34 = vmul.f32 -0.5, %v4104_v41 }
 0x231   : > { %3078 = vpow2.f32 %v1373_v10  ;;  %v3071_v27 = vpop.eup %3070  ;;  %v1511_v58 = vsel %vm4085_vm10, %v1508_v44, %v1505_v14  ;;  %v1523_v0 = vmul.f32 0.6931472, %v3067_v30  ;;  %v1290_v59 = vand.u32 2147483647, %v4121_v55  ;;  %v4871_v42 = vld [vmem:[#allocation21_spill] sm:$0xff] }
 0x232   : > { %v1375_v16 = vmul.f32 1.442695, %v1321_v22  ;;  %v1552_v46 = vadd.f32 1.0, %v1551_v19  ;;  %v1554_v15 = vand.u32 2147483647, %v4075_v61  ;;  %3080 = vlog2.f32 %v1557_v63 }
 0x233   : > { %v1404_v45 = vadd.f32 1.0, %v3847_v48  ;;  %v1520_v35 = vsel %vm4097_vm11, %v1517_v38, %v1514_v21  ;;  %v1566_v13 = vadd.f32 1.0, %v4130_v60  ;;  %v1322_v10 = vsub.f32 0.0, %v1290_v59 }
 0x234   : > { %3082 = vpow2.f32 %v1375_v16  ;;  %v4823_v37 = vmax.f32 %v3838_v40, 0.0  ;;  %v1532_v44 = vmul.f32 0.6931472, %v3071_v27  ;;  %v1535_v30 = vmul.f32 %v4047_v47, %v1534_v26 }
 0x235   : > { %v1561_v19 = vadd.f32 1.0, %v1560_v34  ;;  %v1529_v63 = vsel %vm4113_vm12, %v1526_v49, %v1523_v0  ;;  %v4150_v22 = vmul.f32 %v4065_v28, %v1543_v57  ;;  %vm4152_vm14 = vcmp.lt.f32.partialorder %v1545_v25, 0.0004427343 }
 0x236   : > { %v4144_v14 = vadd.f32 %v1511_v58, %v4823_v37  ;;  %v1569_v59 = vmul.f32 -0.5, %v4130_v60  ;;  %v3073_v38 = vpop.eup %3072  ;;  %v4827_v40 = vmax.f32 %v3856_v53, 0.0  ;;  %vm4161_vm15 = vcmp.lt.f32.partialorder %v1554_v15, 0.0004427343 }
 0x237   : > { %v1563_v49 = vand.u32 2147483647, %v4104_v41  ;;  %v1377_v4 = vmul.f32 1.442695, %v1322_v10  ;;  %3084 = vlog2.f32 %v1404_v45  ;;  %v4166_v28 = vpop.eup %3074  ;;  %v4169_v26 = vmul.f32 %v4075_v61, %v1552_v46 }
 0x238   : > { %4824 = vst [vmem:[#allocation22_spill] sm:$0xff] %v4144_v14  ;;  %v4159_v21 = vadd.f32 %v1520_v35, %v4827_v40  ;;  %3086 = vlog2.f32 %v1566_v13  ;;  %v1407_v53 = vmul.f32 -0.5, %v3847_v48  ;;  %v3077_v25 = vpop.eup %3076  ;;  %v4830_v15 = vmax.f32 %v3860_v5, 0.0 }
 0x239   : > { %v1538_v27 = vsel %vm4125_vm13, %v1535_v30, %v1532_v44  ;;  %v4180_v58 = vmul.f32 %v4104_v41, %v1561_v19  ;;  %3088 = vpow2.f32 %v1377_v4  ;;  %v4182_v0 = vmul.f32 0.6931472, %v3073_v38 }
 0x23a   : > { %v4175_v34 = vadd.f32 %v1529_v63, %v4830_v15  ;;  %v1570_v46 = vadd.f32 1.0, %v1569_v59  ;;  %v1572_v13 = vand.u32 2147483647, %v4130_v60  ;;  %v1422_v61 = vadd.f32 1.0, %v3872_v51 }
 0x23b   : > { %v4186_v16 = vpop.eup %3078  ;;  %vm4188_vm0 = vcmp.lt.f32.partialorder %v1563_v49, 0.0004427343  ;;  %v1575_v56 = vadd.f32 1.0, %v4166_v28  ;;  %v1578_v45 = vmul.f32 -0.5, %v4166_v28  ;;  %v4834_v10 = vmax.f32 %v3903_v18, 0.0 }
 0x23c   : > { %4831 = vst [vmem:[#allocation23_spill] sm:$0xff] %v4175_v34  ;;  %v4201_v44 = vmul.f32 0.6931472, %v3077_v25  ;;  %v1408_v30 = vadd.f32 1.0, %v1407_v53  ;;  %v4205_v19 = vadd.f32 %v3740_v52, %v3921_v54  ;;  %v3081_v63 = vpop.eup %3080  ;;  %v1584_v59 = vadd.f32 1.0, %v4186_v16 }
 0x23d   : > { %v4199_v37 = vadd.f32 %v1538_v27, %v4834_v10  ;;  %v1410_v38 = vand.u32 2147483647, %v3847_v48  ;;  %3090 = vlog2.f32 %v1422_v61  ;;  %v1425_v40 = vmul.f32 -0.5, %v3872_v51 }
 0x23e   : > { %4835 = vst [vmem:[#allocation24_spill] sm:$0xff] %v4201_v44  ;;  %4836 = vst [vmem:[#allocation25_spill] sm:$0xff] %v4205_v19  ;;  %v4210_v49 = vpop.eup %3082  ;;  %v4217_v4 = vmul.f32 %v4130_v60, %v1570_v46  ;;  %v1581_v54 = vand.u32 2147483647, %v4166_v28  ;;  %v4222_v53 = vadd.f32 %v3750_v1, %v3930_v24  ;;  %3092 = vlog2.f32 %v1575_v56 }
 0x23f   : > { %v1579_v25 = vadd.f32 1.0, %v1578_v45  ;;  %v1593_v15 = vadd.f32 1.0, %v4210_v49  ;;  %v1428_v27 = vand.u32 2147483647, %v3872_v51  ;;  %v4230_v10 = vmul.f32 0.6931472, %v3081_v63 }
 0x240   : > { %4837 = vst [vmem:[#allocation26_spill] sm:$0xff] %v4222_v53  ;;  %v1409_v60 = vmul.f32 %v3847_v48, %v1408_v30  ;;  %v1291_v46 = vand.u32 2147483647, %v4205_v19  ;;  %3094 = vlog2.f32 %v1584_v59  ;;  %v1587_v24 = vmul.f32 -0.5, %v4186_v16  ;;  %v4873_v47 = vld [vmem:[#allocation22_spill] sm:$0xff] }
 0x241   : > { %v3085_v18 = vpop.eup %3084  ;;  %vm4235_vm1 = vcmp.lt.f32.partialorder %v1410_v38, 0.0004427343  ;;  %v1426_v45 = vadd.f32 1.0, %v1425_v40  ;;  %3096 = vlog2.f32 %v1593_v15  ;;  %v1596_v57 = vmul.f32 -0.5, %v4210_v49  ;;  %v4847_v38 = vld [vmem:[#allocation17_spill] sm:$0xff] }
 0x242   : > { %v3087_v41 = vpop.eup %3086  ;;  %v1323_v61 = vsub.f32 0.0, %v1291_v46  ;;  %v1292_v63 = vand.u32 2147483647, %v4222_v53  ;;  %vm4243_vm2 = vcmp.lt.f32.partialorder %v1572_v13, 0.0004427343  ;;  %v4248_v30 = vmul.f32 %v4166_v28, %v1579_v25 }
 0x243   : > { %v4241_v35 = vpop.eup %3088  ;;  %vm4251_vm3 = vcmp.lt.f32.partialorder %v1428_v27, 0.0004427343  ;;  %v4257_v40 = vadd.f32 %v3740_v52, %v3941_v29  ;;  %v1406_v46 = vmul.f32 0.6931472, %v3085_v18  ;;  %v4264_v25 = vmul.f32 0.6931472, %v3087_v41 }
 0x244   : > { %v1602_v15 = vadd.f32 1.0, %v4241_v35  ;;  %v1379_v28 = vmul.f32 1.442695, %v1323_v61  ;;  %v1605_v27 = vmul.f32 -0.5, %v4241_v35  ;;  %v1324_v59 = vsub.f32 0.0, %v1292_v63 }
 0x245   : > { %v1293_v53 = vand.u32 2147483647, %v4257_v40  ;;  %v1588_v19 = vadd.f32 1.0, %v1587_v24  ;;  %v1597_v34 = vadd.f32 1.0, %v1596_v57  ;;  %v1427_v29 = vmul.f32 %v3872_v51, %v1426_v45 }
 0x246   : > { %3098 = vlog2.f32 %v1602_v15  ;;  %v1381_v44 = vmul.f32 1.442695, %v1324_v59  ;;  %v4271_v18 = vadd.f32 %v3750_v1, %v3953_v62  ;;  %v1412_v41 = vsel %vm4235_vm1, %v1409_v60, %v1406_v46 }
 0x247   : > { %v3091_v14 = vpop.eup %3090  ;;  %3100 = vpow2.f32 %v1379_v28  ;;  %v1325_v13 = vsub.f32 0.0, %v1293_v53  ;;  %v1718_v63 = vpack.c.bf16 %v4031_v17, %v4001_v7  ;;  %v1717_v57 = vpack.c.bf16 %v4005_v43, %v3992_v33 }
 0x248   : > { %v1424_v61 = vmul.f32 0.6931472, %v3091_v14  ;;  %v3093_v24 = vpop.eup %3092  ;;  %v1599_v51 = vand.u32 2147483647, %v4210_v49  ;;  %v1606_v45 = vadd.f32 1.0, %v1605_v27  ;;  %3102 = vpow2.f32 %v1381_v44 }
 0x249   : > { %v1383_v53 = vmul.f32 1.442695, %v1325_v13  ;;  %v1294_v59 = vand.u32 2147483647, %v4271_v18  ;;  %v4285_v14 = vadd.f32 %v3740_v52, %v3982_v3  ;;  %v4289_v7 = vadd.f32 %v3750_v1, %v3986_v2 }
 0x24a   : > { %v1430_v62 = vsel %vm4251_vm3, %v1427_v29, %v1424_v61  ;;  %v3095_v17 = vpop.eup %3094  ;;  %vm4291_vm4 = vcmp.lt.f32.partialorder %v1581_v54, 0.0004427343  ;;  %v4846_v44 = vmax.f32 %v3763_v11, 0.0  ;;  %v4848_v13 = vmax.f32 %v4847_v38, 0.0 }
 0x24b   : > { %3104 = vpow2.f32 %v1383_v53  ;;  %v4301_v3 = vadd.f32 %v3740_v52, %v4010_v32  ;;  %v3097_v46 = vpop.eup %3096  ;;  %v1574_v2 = vsel %vm4243_vm2, %v4217_v4, %v4264_v25  ;;  %v1577_v54 = vmul.f32 0.6931472, %v3093_v24 }
 0x24c   : > { %v1684_v56 = vadd.f32 %v1412_v41, %v4846_v44  ;;  %v1686_v15 = vadd.f32 %v1430_v62, %v4848_v13  ;;  %v1598_v28 = vmul.f32 %v4210_v49, %v1597_v34  ;;  %v1326_v27 = vsub.f32 0.0, %v1294_v59 }
 0x24d   : > { %v1608_v11 = vand.u32 2147483647, %v4241_v35  ;;  %v1295_v41 = vand.u32 2147483647, %v4285_v14  ;;  %v1296_v61 = vand.u32 2147483647, %v4289_v7  ;;  %v1607_v52 = vmul.f32 %v4241_v35, %v1606_v45 }
 0x24e   : > { %v1716_v29 = vpack.c.bf16 %v1686_v15, %v1684_v56  ;;  %v1586_v53 = vmul.f32 0.6931472, %v3095_v17  ;;  %v1385_v32 = vmul.f32 1.442695, %v1326_v27  ;;  %v1297_v62 = vand.u32 2147483647, %v4301_v3 }
 0x24f   : > { %v1595_v44 = vmul.f32 0.6931472, %v3097_v46  ;;  %v1327_v4 = vsub.f32 0.0, %v1295_v41  ;;  %v1328_v48 = vsub.f32 0.0, %v1296_v61  ;;  %v4315_v34 = vadd.f32 %v3750_v1, %v4015_v6 }
 0x250   : > { %1898 = vmatprep.mubr.bf16.mxu1 %v1716_v29  ;;  %v3099_v49 = vpop.eup %3098  ;;  %v4849_v25 = vpack.c.bf16 %v3945_v50, %v3909_v12  ;;  %3106 = vpow2.f32 %v1385_v32  ;;  %v1329_v24 = vsub.f32 0.0, %v1297_v62  ;;  %v1720_v35 = vpack.c.bf16 %v4108_v39, %v4057_v31 }
 0x251   : > { %v1719_v45 = vpack.c.bf16 %v4095_v9, %v4037_v8  ;;  %v4324_v59 = vpop.eup %3100  ;;  %v1604_v17 = vmul.f32 0.6931472, %v3099_v49  ;;  %v1387_v56 = vmul.f32 1.442695, %v1327_v4  ;;  %v1389_v1 = vmul.f32 1.442695, %v1328_v48 }
 0x252   : > { %1899 = vmatmul.mubr.bf16.vlgmr.msra.gmra.mrb[0].mxu1 %v4849_v25  ;;  %v1722_v6 = vpack.c.bf16 %v4199_v37, %v4159_v21  ;;  %v1589_v12 = vmul.f32 %v4186_v16, %v1588_v19  ;;  %vm4329_vm5 = vcmp.lt.f32.partialorder %v1599_v51, 0.0004427343  ;;  %vm4333_vm6 = vcmp.lt.f32.partialorder %v1608_v11, 0.0004427343  ;;  %v4338_v38 = vpop.eup %3102 }
 0x253   : > { %1906 = vmatprep.mubr.bf16.mxu1 %v1718_v63  ;;  %v1611_v39 = vadd.f32 1.0, %v4324_v59  ;;  %v1601_v63 = vsel %vm4329_vm5, %v1598_v28, %v1595_v44  ;;  %v1610_v21 = vsel %vm4333_vm6, %v1607_v52, %v1604_v17  ;;  %3108 = vpow2.f32 %v1387_v56  ;;  %v4869_v44 = vld [vmem:[#allocation20_spill] sm:$0xff] }
 0x254   : > { %v1298_v37 = vand.u32 2147483647, %v4315_v34  ;;  %v4854_v19 = vmax.f32 %v3997_v23, 0.0  ;;  %v1583_v13 = vsel %vm4291_vm4, %v4248_v30, %v1577_v54  ;;  %v4855_v15 = vand.u32 2147483647, %v4186_v16 }
 0x255   : > { %3110 = vlog2.f32 %v1611_v39  ;;  %v3105_v28 = vpop.eup %3104  ;;  %v1620_v11 = vadd.f32 1.0, %v4338_v38  ;;  %v1391_v23 = vmul.f32 1.442695, %v1329_v24  ;;  %v4859_v16 = vsel %vm4188_vm0, %v4180_v58, %v4230_v10  ;;  %v4865_v58 = vld [vmem:[#allocation19_spill] sm:$0xff] }
 0x256   : > { %v4347_v51 = vadd.f32 %v1574_v2, %v4854_v19  ;;  %vm4354_vm7 = vcmp.lt.f32.partialorder %v4855_v15, 0.0004427343  ;;  %3112 = vpow2.f32 %v1389_v1  ;;  %v4858_v2 = vmax.f32 %v3976_v36, 0.0 }
 0x257   : > { %v1592_v27 = vsel %vm4354_vm7, %v1589_v12, %v1586_v53  ;;  %v4860_v60 = vmax.f32 %v4091_v20, 0.0  ;;  %v4861_v29 = vmax.f32 %v4121_v55, 0.0  ;;  %v1629_v61 = vadd.f32 1.0, %v3105_v28  ;;  %v4862_v53 = vld [vmem:[#allocation18_spill] sm:$0xff]  ;;  %v4867_v20 = vld [vmem:[#allocation24_spill] sm:$0xff] }
 0x258   : > { %v4368_v30 = vadd.f32 %v4859_v16, %v4858_v2  ;;  %v4863_v52 = vmax.f32 %v4862_v53, 0.0  ;;  %v4864_v36 = vsel %vm4152_vm14, %v4150_v22, %v4182_v0  ;;  %v4866_v10 = vmax.f32 %v4865_v58, 0.0  ;;  %v4874_v0 = vld [vmem:[#allocation23_spill] sm:$0xff] }
 0x259   : > { %v4372_v54 = vadd.f32 %v1601_v63, %v4860_v60  ;;  %v4376_v41 = vadd.f32 %v1610_v21, %v4861_v29  ;;  %v4868_v32 = vsel %vm4161_vm15, %v4169_v26, %v4867_v20  ;;  %3114 = vlog2.f32 %v1620_v11  ;;  %v4875_v11 = vld [vmem:[#allocation25_spill] sm:$0xff] }
 0x25a   : > { %v4385_v5 = vadd.f32 %v4864_v36, %v4863_v52  ;;  %v4394_v55 = vadd.f32 %v4868_v32, %v4866_v10  ;;  %v1330_v62 = vsub.f32 0.0, %v1298_v37  ;;  %v4870_v4 = vmax.f32 %v4869_v44, 0.0  ;;  %1907 = vmatmul.mubr.bf16.gmra.mrb[4].mxu1 %v1717_v57  ;;  %v3107_v56 = vpop.eup %3106  ;;  %v4878_v44 = vld [vmem:[#allocation26_spill] sm:$0xff] }
 0x25b   : > { %v4872_v49 = vmax.f32 %v4871_v42, 0.0  ;;  %3116 = vlog2.f32 %v1629_v61  ;;  %v1721_v26 = vpack.c.bf16 %v4874_v0, %v4873_v47  ;;  %v1614_v25 = vmul.f32 -0.5, %v4324_v59  ;;  %1914 = vmatprep.mubr.bf16.mxu1 %v1720_v35 }
 0x25c   : > { %v4398_v48 = vadd.f32 %v1583_v13, %v4870_v4  ;;  %3118 = vpow2.f32 %v1391_v23  ;;  %v1393_v24 = vmul.f32 1.442695, %v1330_v62  ;;  %v1724_v17 = vpack.c.bf16 %v4347_v51, %v4394_v55 }
 0x25d   : > { %v4402_v22 = vadd.f32 %v1592_v27, %v4872_v49  ;;  %v1723_v1 = vpack.c.bf16 %v4368_v30, %v4385_v5  ;;  %v1632_v43 = vmul.f32 -0.5, %v3105_v28  ;;  %v1638_v57 = vadd.f32 1.0, %v3107_v56  ;;  %v4418_v50 = vpop.eup %3108 }
 0x25e   : > { %v1725_v33 = vpack.c.bf16 %v4372_v54, %v4398_v48  ;;  %3120 = vpow2.f32 %v1393_v24  ;;  %v1615_v31 = vadd.f32 1.0, %v1614_v25  ;;  %v1617_v39 = vand.u32 2147483647, %v4324_v59  ;;  %v3001_v54 = vld [vmem:[#allocation9 + $0x28] sm:$0xff]   ;;  %v3002_v48 = vld [vmem:[#allocation9 + $0x30] sm:$0xff]  }
 0x25f   : > { %v1726_v12 = vpack.c.bf16 %v4376_v41, %v4402_v22  ;;  %3122 = vlog2.f32 %v1638_v57  ;;  %v3111_v35 = vpop.eup %3110  ;;  %v1623_v63 = vmul.f32 -0.5, %v4338_v38  ;;  %v1647_v21 = vadd.f32 1.0, %v4418_v50 }
 0x260   : > { %v4423_v37 = vpop.eup %3112  ;;  %v1613_v19 = vmul.f32 0.6931472, %v3111_v35  ;;  %v1633_v51 = vadd.f32 1.0, %v1632_v43  ;;  %v1635_v13 = vand.u32 2147483647, %v3105_v28  ;;  %v1641_v15 = vmul.f32 -0.5, %v3107_v56 }
 0x261   : > { %3124 = vlog2.f32 %v1647_v21  ;;  %v1656_v46 = vadd.f32 1.0, %v4423_v37  ;;  %v1259_v23 = vmax.f32 %v4875_v11, 0.0  ;;  %v1616_v2 = vmul.f32 %v4324_v59, %v1615_v31 }
 0x262   : > { %1915 = vmatmul.mubr.bf16.gmra.mrb[8].mxu1 %v1719_v45  ;;  %vm4431_vm8 = vcmp.lt.f32.partialorder %v1617_v39, 0.0004427343  ;;  %v1624_v29 = vadd.f32 1.0, %v1623_v63  ;;  %v1626_v61 = vand.u32 2147483647, %v4338_v38  ;;  %v1261_v53 = vmax.f32 %v4257_v40, 0.0 }
 0x263   : > { %v3115_v27 = vpop.eup %3114  ;;  %1922 = vmatprep.mubr.bf16.mxu1 %v1722_v6  ;;  %v1619_v8 = vsel %vm4431_vm8, %v1616_v2, %v1613_v19  ;;  %v1634_v45 = vmul.f32 %v3105_v28, %v1633_v51  ;;  %3126 = vlog2.f32 %v1656_v46  ;;  %vm1636_vm9 = vcmp.lt.f32.partialorder %v1635_v13, 0.0004427343 }
 0x264   : > { %v1622_v36 = vmul.f32 0.6931472, %v3115_v27  ;;  %v1642_v59 = vadd.f32 1.0, %v1641_v15  ;;  %v1644_v20 = vand.u32 2147483647, %v3107_v56  ;;  %v4439_v32 = vadd.f32 %v1619_v8, %v1259_v23 }
 0x265   : > { %v3117_v16 = vpop.eup %3116  ;;  %v1625_v55 = vmul.f32 %v4338_v38, %v1624_v29  ;;  %v1260_v4 = vmax.f32 %v4878_v44, 0.0  ;;  %vm4445_vm10 = vcmp.lt.f32.partialorder %v1626_v61, 0.0004427343  ;;  %v1650_v42 = vmul.f32 -0.5, %v4418_v50 }
 0x266   : > { %v3119_v52 = vpop.eup %3118  ;;  %v1631_v9 = vmul.f32 0.6931472, %v3117_v16  ;;  %v1643_v25 = vmul.f32 %v3107_v56, %v1642_v59  ;;  %v1262_v24 = vmax.f32 %v4271_v18, 0.0  ;;  %vm1645_vm11 = vcmp.lt.f32.partialorder %v1644_v20, 0.0004427343  ;;  %v3000_v20 = vld [vmem:[#allocation9 + $0x20] sm:$0xff]  }
 0x267   : > { %v1665_v6 = vadd.f32 1.0, %v3119_v52  ;;  %v1628_v47 = vsel %vm4445_vm10, %v1625_v55, %v1622_v36  ;;  %v1668_v43 = vmul.f32 -0.5, %v3119_v52  ;;  %v1659_v35 = vmul.f32 -0.5, %v4423_v37  ;;  %v4482_v55 = vld [vmem:[%s4750_s4 + $0x2] ss:$0 sm:$0xff] }
 0x268   : > { %v3121_v58 = vpop.eup %3120  ;;  %v1637_v10 = vsel %vm1636_vm9, %v1634_v45, %v1631_v9  ;;  %v1708_v39 = vadd.f32 %v1628_v47, %v1260_v4  ;;  %v1651_v21 = vadd.f32 1.0, %v1650_v42  ;;  %v1653_v56 = vand.u32 2147483647, %v4418_v50 }
 0x269   : > { %v4442_v62 = vadd.f32 %v1637_v10, %v1261_v53  ;;  %3128 = vlog2.f32 %v1665_v6  ;;  %v3123_v40 = vpop.eup %3122  ;;  %v1674_v49 = vadd.f32 1.0, %v3121_v58  ;;  %v1677_v19 = vmul.f32 -0.5, %v3121_v58  ;;  %v2999_v10 = vld [vmem:[#allocation9 + $0x18] sm:$0xff]  }
 0x26a   : > { %v1640_v0 = vmul.f32 0.6931472, %v3123_v40  ;;  %1923 = vmatmul.mubr.bf16.gmra.mrb[12].mxu1 %v1721_v26  ;;  %v1669_v13 = vadd.f32 1.0, %v1668_v43  ;;  %v1660_v46 = vadd.f32 1.0, %v1659_v35  ;;  %v1671_v18 = vand.u32 2147483647, %v3119_v52 }
 0x26b   : > { %v1727_v38 = vpack.c.bf16 %v4442_v62, %v4439_v32  ;;  %3130 = vlog2.f32 %v1674_v49  ;;  %1930 = vmatprep.mubr.bf16.mxu1 %v1724_v17  ;;  %v3125_v57 = vpop.eup %3124  ;;  %v1652_v27 = vmul.f32 %v4418_v50, %v1651_v21  ;;  %v1662_v17 = vand.u32 2147483647, %v4423_v37 }
 0x26c   : > { %v1646_v31 = vsel %vm1645_vm11, %v1643_v25, %v1640_v0  ;;  %v1649_v51 = vmul.f32 0.6931472, %v3125_v57  ;;  %v1678_v11 = vadd.f32 1.0, %v1677_v19  ;;  %vm4459_vm12 = vcmp.lt.f32.partialorder %v1653_v56, 0.0004427343 }
 0x26d   : > { %v1710_v63 = vadd.f32 %v1646_v31, %v1262_v24  ;;  %v3127_v26 = vpop.eup %3126  ;;  %v1670_v61 = vmul.f32 %v3119_v52, %v1669_v13  ;;  %v1680_v53 = vand.u32 2147483647, %v3121_v58  ;;  %v1263_v50 = vmax.f32 %v4285_v14, 0.0 }
 0x26e   : > { %v1658_v16 = vmul.f32 0.6931472, %v3127_v26  ;;  %v1655_v60 = vsel %vm4459_vm12, %v1652_v27, %v1649_v51  ;;  %v1661_v8 = vmul.f32 %v4423_v37, %v1660_v46  ;;  %v1265_v9 = vmax.f32 %v4301_v3, 0.0 }
 0x26f   : > { %v1728_v15 = vpack.c.bf16 %v1710_v63, %v1708_v39  ;;  %vm1672_vm13 = vcmp.lt.f32.partialorder %v1671_v18, 0.0004427343  ;;  %vm1663_vm14 = vcmp.lt.f32.partialorder %v1662_v17, 0.0004427343  ;;  %v1679_v5 = vmul.f32 %v3121_v58, %v1678_v11  ;;  %v2996_v58 = vld [vmem:[#allocation9] sm:$0xff]  }
 0x270   : > { %v1664_v36 = vsel %vm1663_vm14, %v1661_v8, %v1658_v16  ;;  %v1264_v6 = vmax.f32 %v4289_v7, 0.0  ;;  %v1266_v41 = vmax.f32 %v4315_v34, 0.0  ;;  %vm1681_vm15 = vcmp.lt.f32.partialorder %v1680_v53, 0.0004427343  ;;  %2719 = vmatprep.subr.bf16.mxu1 %v2996_v58  ;;  %v2997_v7 = vld [vmem:[#allocation9 + $0x8] sm:$0xff]   ;;  %v2998_v34 = vld [vmem:[#allocation9 + $0x10] sm:$0xff]  }
 0x271   : > { %2720 = vmatpush3.bf16.msra.mxu1 %v2996_v58 }
 0x272   : > { %1931 = vmatmul.mubr.bf16.gmra.mrb[16].mxu1 %v1723_v1  ;;  %v1711_v1 = vadd.f32 %v1655_v60, %v1263_v50  ;;  %2721 = vmatprep.subr.bf16.mxu1 %v2997_v7 }
 0x273   : > { %v3129_v23 = vpop.eup %3128  ;;  %1938 = vmatprep.mubr.bf16.mxu1 %v1726_v12  ;;  %v1712_v12 = vadd.f32 %v1664_v36, %v1264_v6 }
 0x274   : > { %v1667_v29 = vmul.f32 0.6931472, %v3129_v23 }
 0x275   : > { %v3131_v45 = vpop.eup %3130  ;;  %2722 = vmatpush3.bf16.msra.mxu1 %v2997_v7 }
 0x276   : > { %v1673_v30 = vsel %vm1672_vm13, %v1670_v61, %v1667_v29  ;;  %v1676_v52 = vmul.f32 0.6931472, %v3131_v45  ;;  %2723 = vmatprep.subr.bf16.mxu1 %v2998_v34 }
 0x277   : > { %v1713_v59 = vadd.f32 %v1673_v30, %v1265_v9 }
 0x278   : > { %v1682_v22 = vsel %vm1681_vm15, %v1679_v5, %v1676_v52 }
 0x279   : > { %v1729_v14 = vpack.c.bf16 %v1713_v59, %v1711_v1  ;;  %v1714_v37 = vadd.f32 %v1682_v22, %v1266_v41  ;;  %2724 = vmatpush3.bf16.msra.mxu1 %v2998_v34 }
 0x27a   : > { %1939 = vmatmul.mubr.bf16.gmra.mrb[20].mxu1 %v1725_v33  ;;  %2725 = vmatprep.subr.bf16.mxu1 %v2999_v10  ;;  %v3003_v33 = vld [vmem:[#allocation9 + $0x38] sm:$0xff]  }
 0x27b   : > { %1946 = vmatprep.mubr.bf16.mxu1 %v1728_v15  ;;  %v1730_v3 = vpack.c.bf16 %v1714_v37, %v1712_v12 }
 0x27d   : > { %2726 = vmatpush3.bf16.msra.mxu1 %v2999_v10 }
 0x27e   : > { %2727 = vmatprep.subr.bf16.mxu1 %v3000_v20 }
 0x281   : > { %2728 = vmatpush3.bf16.msra.mxu1 %v3000_v20 }
 0x282   : > { %1947 = vmatmul.mubr.bf16.gmra.mrb[24].mxu1 %v1727_v38  ;;  %2729 = vmatprep.subr.bf16.mxu1 %v3001_v54 }
 0x283   : > { %1954 = vmatprep.mubr.bf16.mxu1 %v1730_v3 }
 0x285   : > { %2730 = vmatpush3.bf16.msra.mxu1 %v3001_v54 }
 0x286   : > { %2731 = vmatprep.subr.bf16.mxu1 %v3002_v48 }
 0x289   : > { %2732 = vmatpush3.bf16.msra.mxu1 %v3002_v48 }
 0x28a   : > { %1955 = vmatmul.mubr.bf16.gmra.mrb[28].mxu1 %v1729_v14  ;;  %2733 = vmatprep.subr.bf16.mxu1 %v3003_v33 }
 0x28d   : > { %2734 = vmatpush3.bf16.msra.mxu1 %v3003_v33 }
 0x325   : > { %v2655_v32 = vpop.f32.mrb[0].mxu1 }
 0x326   : > { %v2656_v62 = vpop.f32.mrb[1].mxu1 }
 0x327   : > { %v2657_v40 = vadd.f32 %v2656_v62, %v2655_v32  ;;  %v2658_v44 = vpop.f32.mrb[2].mxu1 }
 0x328   : > { %v2659_v4 = vpop.f32.mrb[3].mxu1 }
 0x329   : > { %v4485_v28 = vadd.f32 %v2657_v40, %v4482_v55  ;;  %v2660_v42 = vadd.f32 %v2659_v4, %v2658_v44 }
 0x32b   : > { %v1979_v49 = vand.u32 2147483647, %v4485_v28  ;;  %v4489_v47 = vadd.f32 %v2660_v42, %v4482_v55  ;;  %v1963_v40 = vmax.f32 %v4485_v28, 0.0 }
 0x32d   : > { %v1995_v0 = vsub.f32 0.0, %v1979_v49  ;;  %v1980_v25 = vand.u32 2147483647, %v4489_v47  ;;  %v2661_v38 = vpop.f32.mrb[4].mxu1 }
 0x32e   : > { %v2662_v24 = vpop.f32.mrb[5].mxu1 }
 0x32f   : > { %v2011_v43 = vmul.f32 1.442695, %v1995_v0  ;;  %v1996_v57 = vsub.f32 0.0, %v1980_v25  ;;  %v2663_v31 = vadd.f32 %v2662_v24, %v2661_v38  ;;  %v2664_v35 = vpop.f32.mrb[6].mxu1  ;;  %v1964_v24 = vmax.f32 %v4489_v47, 0.0 }
 0x330   : > { %v2665_v39 = vpop.f32.mrb[7].mxu1 }
 0x331   : > { %3132 = vpow2.f32 %v2011_v43  ;;  %v2013_v63 = vmul.f32 1.442695, %v1996_v57  ;;  %v4493_v21 = vadd.f32 %v2663_v31, %v4482_v55  ;;  %v2666_v19 = vadd.f32 %v2665_v39, %v2664_v35 }
 0x333   : > { %3134 = vpow2.f32 %v2013_v63  ;;  %v1981_v56 = vand.u32 2147483647, %v4493_v21  ;;  %v4497_v26 = vadd.f32 %v2666_v19, %v4482_v55  ;;  %v1965_v35 = vmax.f32 %v4493_v21, 0.0 }
 0x335   : > { %v1997_v51 = vsub.f32 0.0, %v1981_v56  ;;  %v1982_v13 = vand.u32 2147483647, %v4497_v26  ;;  %v2667_v15 = vpop.f32.mrb[8].mxu1 }
 0x336   : > { %v2668_v46 = vpop.f32.mrb[9].mxu1 }
 0x337   : > { %v2015_v18 = vmul.f32 1.442695, %v1997_v51  ;;  %v1998_v27 = vsub.f32 0.0, %v1982_v13  ;;  %v2669_v17 = vadd.f32 %v2668_v46, %v2667_v15  ;;  %v2670_v11 = vpop.f32.mrb[10].mxu1 }
 0x338   : > { %v2671_v23 = vpop.f32.mrb[11].mxu1 }
 0x339   : > { %3136 = vpow2.f32 %v2015_v18  ;;  %v2017_v2 = vmul.f32 1.442695, %v1998_v27  ;;  %v4501_v16 = vadd.f32 %v2669_v17, %v4482_v55  ;;  %v2672_v60 = vadd.f32 %v2671_v23, %v2670_v11 }
 0x33b   : > { %v3133_v29 = vpop.eup %3132  ;;  %3138 = vpow2.f32 %v2017_v2  ;;  %v1983_v61 = vand.u32 2147483647, %v4501_v16  ;;  %v4505_v53 = vadd.f32 %v2672_v60, %v4482_v55 }
 0x33c   : > { %v2043_v50 = vadd.f32 1.0, %v3133_v29  ;;  %v2046_v22 = vmul.f32 -0.5, %v3133_v29  ;;  %v2049_v20 = vand.u32 2147483647, %v3133_v29 }
 0x33d   : > { %v3135_v8 = vpop.eup %3134  ;;  %v1999_v9 = vsub.f32 0.0, %v1983_v61  ;;  %v1984_v45 = vand.u32 2147483647, %v4505_v53  ;;  %v2673_v30 = vpop.f32.mrb[12].mxu1 }
 0x33e   : > { %v2674_v5 = vpop.f32.mrb[13].mxu1  ;;  %3140 = vlog2.f32 %v2043_v50  ;;  %v2052_v1 = vadd.f32 1.0, %v3135_v8  ;;  %v2055_v34 = vmul.f32 -0.5, %v3135_v8  ;;  %v2047_v62 = vadd.f32 1.0, %v2046_v22 }
 0x33f   : > { %v2019_v36 = vmul.f32 1.442695, %v1999_v9  ;;  %v2000_v59 = vsub.f32 0.0, %v1984_v45  ;;  %v2675_v52 = vadd.f32 %v2674_v5, %v2673_v30  ;;  %v2676_v6 = vpop.f32.mrb[14].mxu1  ;;  %v2058_v25 = vand.u32 2147483647, %v3135_v8 }
 0x340   : > { %v2677_v41 = vpop.f32.mrb[15].mxu1  ;;  %3142 = vlog2.f32 %v2052_v1  ;;  %v2056_v0 = vadd.f32 1.0, %v2055_v34  ;;  %v2048_v63 = vmul.f32 %v3133_v29, %v2047_v62  ;;  %vm4526_vm0 = vcmp.lt.f32.partialorder %v2049_v20, 0.0004427343 }
 0x341   : > { %3144 = vpow2.f32 %v2019_v36  ;;  %v2021_v14 = vmul.f32 1.442695, %v2000_v59  ;;  %v4509_v12 = vadd.f32 %v2675_v52, %v4482_v55  ;;  %v2678_v37 = vadd.f32 %v2677_v41, %v2676_v6 }
 0x342   : > { %v2057_v27 = vmul.f32 %v3135_v8, %v2056_v0  ;;  %vm2059_vm1 = vcmp.lt.f32.partialorder %v2058_v25, 0.0004427343 }
 0x343   : > { %v4511_v3 = vpop.eup %3136  ;;  %v1985_v58 = vand.u32 2147483647, %v4509_v12  ;;  %v4515_v7 = vadd.f32 %v2678_v37, %v4482_v55  ;;  %3146 = vpow2.f32 %v2021_v14 }
 0x344   : > { %v2061_v10 = vadd.f32 1.0, %v4511_v3  ;;  %v2064_v43 = vmul.f32 -0.5, %v4511_v3  ;;  %v2067_v60 = vand.u32 2147483647, %v4511_v3 }
 0x345   : > { %v4518_v54 = vpop.eup %3138  ;;  %v2001_v48 = vsub.f32 0.0, %v1985_v58  ;;  %v1986_v33 = vand.u32 2147483647, %v4515_v7  ;;  %v2679_v32 = vpop.f32.mrb[16].mxu1 }
 0x346   : > { %3148 = vlog2.f32 %v2061_v10  ;;  %v2070_v44 = vadd.f32 1.0, %v4518_v54  ;;  %v2680_v4 = vpop.f32.mrb[17].mxu1  ;;  %v2073_v46 = vmul.f32 -0.5, %v4518_v54  ;;  %v2065_v17 = vadd.f32 1.0, %v2064_v43 }
 0x347   : > { %v2023_v42 = vmul.f32 1.442695, %v2001_v48  ;;  %v2002_v49 = vsub.f32 0.0, %v1986_v33  ;;  %v2681_v57 = vadd.f32 %v2680_v4, %v2679_v32  ;;  %v2682_v31 = vpop.f32.mrb[18].mxu1  ;;  %v2076_v59 = vand.u32 2147483647, %v4518_v54 }
 0x348   : > { %v3141_v38 = vpop.eup %3140  ;;  %3150 = vlog2.f32 %v2070_v44  ;;  %v2683_v28 = vpop.f32.mrb[19].mxu1  ;;  %v2074_v36 = vadd.f32 1.0, %v2073_v46  ;;  %v2066_v22 = vmul.f32 %v4511_v3, %v2065_v17  ;;  %vm4553_vm2 = vcmp.lt.f32.partialorder %v2067_v60, 0.0004427343 }
 0x349   : > { %v2025_v39 = vmul.f32 1.442695, %v2002_v49  ;;  %3152 = vpow2.f32 %v2023_v42  ;;  %v4531_v51 = vadd.f32 %v2681_v57, %v4482_v55  ;;  %v2684_v47 = vadd.f32 %v2683_v28, %v2682_v31 }
 0x34a   : > { %v3143_v56 = vpop.eup %3142  ;;  %v2045_v13 = vmul.f32 0.6931472, %v3141_v38  ;;  %v2075_v42 = vmul.f32 %v4518_v54, %v2074_v36  ;;  %vm2077_vm3 = vcmp.lt.f32.partialorder %v2076_v59, 0.0004427343 }
 0x34b   : > { %v4533_v15 = vpop.eup %3144  ;;  %v2054_v18 = vmul.f32 0.6931472, %v3143_v56  ;;  %v1987_v11 = vand.u32 2147483647, %v4531_v51  ;;  %v4538_v23 = vadd.f32 %v2684_v47, %v4482_v55  ;;  %3154 = vpow2.f32 %v2025_v39 }
 0x34c   : > { %v2051_v2 = vsel %vm4526_vm0, %v2048_v63, %v2045_v13  ;;  %v2079_v50 = vadd.f32 1.0, %v4533_v15 }
 0x34d   : > { %v2685_v29 = vpop.f32.mrb[20].mxu1  ;;  %v2060_v61 = vsel %vm2059_vm1, %v2057_v27, %v2054_v18  ;;  %v4544_v9 = vpop.eup %3146  ;;  %v2003_v8 = vsub.f32 0.0, %v1987_v11  ;;  %v1988_v45 = vand.u32 2147483647, %v4538_v23  ;;  %v2187_v5 = vadd.f32 %v2051_v2, %v1963_v40 }
 0x34e   : > { %v2686_v30 = vpop.f32.mrb[21].mxu1  ;;  %v2188_v1 = vadd.f32 %v2060_v61, %v1964_v24  ;;  %3156 = vlog2.f32 %v2079_v50  ;;  %v2088_v33 = vadd.f32 1.0, %v4544_v9  ;;  %v1966_v40 = vmax.f32 %v4497_v26, 0.0 }
 0x34f   : > { %v2687_v52 = vadd.f32 %v2686_v30, %v2685_v29  ;;  %v2688_v6 = vpop.f32.mrb[22].mxu1  ;;  %v2027_v14 = vmul.f32 1.442695, %v2003_v8  ;;  %v2004_v37 = vsub.f32 0.0, %v1988_v45  ;;  %v2082_v26 = vmul.f32 -0.5, %v4533_v15 }
 0x350   : > { %v3149_v41 = vpop.eup %3148  ;;  %v2689_v58 = vpop.f32.mrb[23].mxu1  ;;  %v2203_v34 = vpack.c.bf16 %v2188_v1, %v2187_v5  ;;  %v2091_v28 = vmul.f32 -0.5, %v4544_v9  ;;  %v2085_v2 = vand.u32 2147483647, %v4533_v15  ;;  %v2094_v45 = vand.u32 2147483647, %v4544_v9 }
 0x351   : > { %v2063_v10 = vmul.f32 0.6931472, %v3149_v41  ;;  %v4550_v20 = vadd.f32 %v2687_v52, %v4482_v55  ;;  %v2690_v48 = vadd.f32 %v2689_v58, %v2688_v6  ;;  %3158 = vpow2.f32 %v2027_v14 }
 0x352   : > { %v3151_v32 = vpop.eup %3150  ;;  %v2029_v3 = vmul.f32 1.442695, %v2004_v37  ;;  %2735 = vmatprep.mubr.bf16.mxu1 %v2203_v34  ;;  %v2083_v17 = vadd.f32 1.0, %v2082_v26  ;;  %v2092_v29 = vadd.f32 1.0, %v2091_v28  ;;  %v1967_v5 = vmax.f32 %v4501_v16, 0.0 }
 0x353   : > { %v2069_v44 = vsel %vm4553_vm2, %v2066_v22, %v2063_v10  ;;  %v2072_v4 = vmul.f32 0.6931472, %v3151_v32  ;;  %v1989_v49 = vand.u32 2147483647, %v4550_v20  ;;  %v4562_v0 = vpop.eup %3152  ;;  %v4565_v25 = vadd.f32 %v2690_v48, %v4482_v55 }
 0x354   : > { %3160 = vpow2.f32 %v2029_v3  ;;  %v2189_v57 = vadd.f32 %v2069_v44, %v1965_v35  ;;  %v2097_v13 = vadd.f32 1.0, %v4562_v0  ;;  %v1968_v1 = vmax.f32 %v4505_v53, 0.0 }
 0x355   : > { %v2078_v38 = vsel %vm2077_vm3, %v2075_v42, %v2072_v4  ;;  %v2005_v24 = vsub.f32 0.0, %v1989_v49  ;;  %v2691_v43 = vpop.f32.mrb[24].mxu1  ;;  %3162 = vlog2.f32 %v2088_v33  ;;  %v1990_v54 = vand.u32 2147483647, %v4565_v25  ;;  %v4572_v63 = vpop.eup %3154 }
 0x356   : > { %v2190_v31 = vadd.f32 %v2078_v38, %v1966_v40  ;;  %v2692_v39 = vpop.f32.mrb[25].mxu1  ;;  %v2106_v61 = vadd.f32 1.0, %v4572_v63  ;;  %v2084_v59 = vmul.f32 %v4533_v15, %v2083_v17  ;;  %vm4591_vm4 = vcmp.lt.f32.partialorder %v2085_v2, 0.0004427343 }
 0x357   : > { %v2031_v19 = vmul.f32 1.442695, %v2005_v24  ;;  %v2693_v56 = vadd.f32 %v2692_v39, %v2691_v43  ;;  %v2694_v47 = vpop.f32.mrb[26].mxu1  ;;  %v2006_v18 = vsub.f32 0.0, %v1990_v54  ;;  %v2093_v58 = vmul.f32 %v4544_v9, %v2092_v29 }
 0x358   : > { %v2204_v46 = vpack.c.bf16 %v2190_v31, %v2189_v57  ;;  %v2695_v27 = vpop.f32.mrb[27].mxu1  ;;  %v3157_v11 = vpop.eup %3156  ;;  %v2100_v16 = vmul.f32 -0.5, %v4562_v0  ;;  %vm4600_vm5 = vcmp.lt.f32.partialorder %v2094_v45, 0.0004427343  ;;  %v2109_v9 = vmul.f32 -0.5, %v4572_v63 }
 0x359   : > { %3164 = vpow2.f32 %v2031_v19  ;;  %v4576_v21 = vadd.f32 %v2693_v56, %v4482_v55  ;;  %v2696_v35 = vadd.f32 %v2695_v27, %v2694_v47  ;;  %v2033_v60 = vmul.f32 1.442695, %v2006_v18 }
 0x35a   : > { %2736 = vmatmul.mubr.bf16.vlgmr.msra.gmra.mrb[32].mxu1 %v2204_v46  ;;  %3166 = vlog2.f32 %v2097_v13  ;;  %v2081_v36 = vmul.f32 0.6931472, %v3157_v11  ;;  %v2101_v26 = vadd.f32 1.0, %v2100_v16  ;;  %v2103_v38 = vand.u32 2147483647, %v4562_v0 }
 0x35b   : > { %v1991_v50 = vand.u32 2147483647, %v4576_v21  ;;  %v4582_v8 = vadd.f32 %v2696_v35, %v4482_v55  ;;  %v4585_v30 = vpop.eup %3158  ;;  %3168 = vpow2.f32 %v2033_v60  ;;  %v2110_v19 = vadd.f32 1.0, %v2109_v9 }
 0x35c   : > { %3170 = vlog2.f32 %v2106_v61  ;;  %v2115_v53 = vadd.f32 1.0, %v4585_v30  ;;  %v2087_v40 = vsel %vm4591_vm4, %v2084_v59, %v2081_v36  ;;  %v2118_v56 = vmul.f32 -0.5, %v4585_v30 }
 0x35d   : > { %v2007_v52 = vsub.f32 0.0, %v1991_v50  ;;  %v1992_v6 = vand.u32 2147483647, %v4582_v8  ;;  %v2697_v41 = vpop.f32.mrb[28].mxu1  ;;  %v2191_v54 = vadd.f32 %v2087_v40, %v1967_v5  ;;  %v1969_v47 = vmax.f32 %v4509_v12, 0.0 }
 0x35e   : > { %v4595_v14 = vpop.eup %3160  ;;  %v2698_v37 = vpop.f32.mrb[29].mxu1  ;;  %3172 = vlog2.f32 %v2115_v53  ;;  %v2112_v17 = vand.u32 2147483647, %v4572_v63  ;;  %v1970_v2 = vmax.f32 %v4515_v7, 0.0  ;;  %v2102_v61 = vmul.f32 %v4562_v0, %v2101_v26 }
 0x35f   : > { %v3163_v15 = vpop.eup %3162  ;;  %v2035_v34 = vmul.f32 1.442695, %v2007_v52  ;;  %v2008_v10 = vsub.f32 0.0, %v1992_v6  ;;  %v2699_v48 = vadd.f32 %v2698_v37, %v2697_v41  ;;  %v2700_v33 = vpop.f32.mrb[30].mxu1  ;;  %v2124_v24 = vadd.f32 1.0, %v4595_v14 }
 0x360   : > { %v2701_v62 = vpop.f32.mrb[31].mxu1  ;;  %v2090_v3 = vmul.f32 0.6931472, %v3163_v15  ;;  %v2127_v11 = vmul.f32 -0.5, %v4595_v14  ;;  %vm4630_vm6 = vcmp.lt.f32.partialorder %v2103_v38, 0.0004427343  ;;  %v2111_v45 = vmul.f32 %v4572_v63, %v2110_v19 }
 0x361   : > { %3174 = vpow2.f32 %v2035_v34  ;;  %v2037_v44 = vmul.f32 1.442695, %v2008_v10  ;;  %v4608_v4 = vadd.f32 %v2699_v48, %v4482_v55  ;;  %v2702_v42 = vadd.f32 %v2701_v62, %v2700_v33 }
 0x362   : > { %v2096_v49 = vsel %vm4600_vm5, %v2093_v58, %v2090_v3  ;;  %v2119_v5 = vadd.f32 1.0, %v2118_v56  ;;  %vm2113_vm7 = vcmp.lt.f32.partialorder %v2112_v17, 0.0004427343  ;;  %v2121_v0 = vand.u32 2147483647, %v4585_v30 }
 0x363   : > { %v4614_v43 = vpop.eup %3164  ;;  %3176 = vpow2.f32 %v2037_v44  ;;  %v1993_v57 = vand.u32 2147483647, %v4608_v4  ;;  %v4618_v31 = vadd.f32 %v2702_v42, %v4482_v55  ;;  %v2192_v28 = vadd.f32 %v2096_v49, %v1968_v1 }
 0x364   : > { %v3167_v39 = vpop.eup %3166  ;;  %3178 = vlog2.f32 %v2124_v24  ;;  %v2133_v55 = vadd.f32 1.0, %v4614_v43  ;;  %v2128_v52 = vadd.f32 1.0, %v2127_v11  ;;  %v2130_v16 = vand.u32 2147483647, %v4595_v14 }
 0x365   : > { %v2009_v13 = vsub.f32 0.0, %v1993_v57  ;;  %v1994_v46 = vand.u32 2147483647, %v4618_v31  ;;  %v2099_v18 = vmul.f32 0.6931472, %v3167_v39  ;;  %v2205_v27 = vpack.c.bf16 %v2192_v28, %v2191_v54  ;;  %v4626_v35 = vpop.eup %3168 }
 0x366   : > { %v3171_v12 = vpop.eup %3170  ;;  %3180 = vlog2.f32 %v2133_v55  ;;  %v2142_v6 = vadd.f32 1.0, %v4626_v35  ;;  %v2120_v15 = vmul.f32 %v4585_v30, %v2119_v5  ;;  %v2136_v34 = vmul.f32 -0.5, %v4614_v43 }
 0x367   : > { %v2039_v60 = vmul.f32 1.442695, %v2009_v13  ;;  %v2010_v29 = vsub.f32 0.0, %v1994_v46  ;;  %2739 = vmatprep.mubr.bf16.mxu1 %v2205_v27  ;;  %v2105_v36 = vsel %vm4630_vm6, %v2102_v61, %v2099_v18  ;;  %v2108_v7 = vmul.f32 0.6931472, %v3171_v12 }
 0x368   : > { %v3173_v59 = vpop.eup %3172  ;;  %v2193_v37 = vadd.f32 %v2105_v36, %v1969_v47  ;;  %vm2122_vm8 = vcmp.lt.f32.partialorder %v2121_v0, 0.0004427343  ;;  %v2129_v32 = vmul.f32 %v4595_v14, %v2128_v52  ;;  %v2145_v3 = vmul.f32 -0.5, %v4626_v35 }
 0x369   : > { %3182 = vpow2.f32 %v2039_v60  ;;  %v2041_v1 = vmul.f32 1.442695, %v2010_v29  ;;  %v2114_v22 = vsel %vm2113_vm7, %v2111_v45, %v2108_v7  ;;  %v2117_v63 = vmul.f32 0.6931472, %v3173_v59 }
 0x36a   : > { %v2194_v58 = vadd.f32 %v2114_v22, %v1970_v2  ;;  %v1971_v9 = vmax.f32 %v4531_v51, 0.0  ;;  %v1972_v44 = vmax.f32 %v4538_v23, 0.0  ;;  %vm2131_vm9 = vcmp.lt.f32.partialorder %v2130_v16, 0.0004427343 }
 0x36b   : > { %v4639_v41 = vpop.eup %3174  ;;  %3184 = vpow2.f32 %v2041_v1  ;;  %v2123_v62 = vsel %vm2122_vm8, %v2120_v15, %v2117_v63  ;;  %v2137_v49 = vadd.f32 1.0, %v2136_v34  ;;  %v2139_v14 = vand.u32 2147483647, %v4614_v43 }
 0x36c   : > { %3186 = vlog2.f32 %v2142_v6  ;;  %v2151_v10 = vadd.f32 1.0, %v4639_v41  ;;  %v2206_v33 = vpack.c.bf16 %v2194_v58, %v2193_v37  ;;  %v2195_v38 = vadd.f32 %v2123_v62, %v1971_v9 }
 0x36d   : > { %v4642_v53 = vpop.eup %3176  ;;  %v2146_v39 = vadd.f32 1.0, %v2145_v3  ;;  %v2154_v28 = vmul.f32 -0.5, %v4639_v41  ;;  %v2148_v23 = vand.u32 2147483647, %v4626_v35  ;;  %v2138_v47 = vmul.f32 %v4614_v43, %v2137_v49  ;;  %v2622_v49 = vld [vmem:[%s4750_s4 + $0x3] ss:$0 sm:$0xff] }
 0x36e   : > { %v3179_v48 = vpop.eup %3178  ;;  %3188 = vlog2.f32 %v2151_v10  ;;  %2740 = vmatmul.mubr.bf16.gmra.mrb[36].mxu1 %v2206_v33  ;;  %v2160_v30 = vadd.f32 1.0, %v4642_v53  ;;  %v2163_v13 = vmul.f32 -0.5, %v4642_v53  ;;  %v1973_v18 = vmax.f32 %v4550_v20, 0.0 }
 0x36f   : > { %v2126_v40 = vmul.f32 0.6931472, %v3179_v48  ;;  %vm2140_vm10 = vcmp.lt.f32.partialorder %v2139_v14, 0.0004427343  ;;  %v2147_v55 = vmul.f32 %v4626_v35, %v2146_v39  ;;  %v2155_v2 = vadd.f32 1.0, %v2154_v28 }
 0x370   : > { %v3181_v26 = vpop.eup %3180  ;;  %3190 = vlog2.f32 %v2160_v30  ;;  %v1974_v60 = vmax.f32 %v4565_v25, 0.0  ;;  %vm2149_vm11 = vcmp.lt.f32.partialorder %v2148_v23, 0.0004427343  ;;  %v2157_v29 = vand.u32 2147483647, %v4639_v41 }
 0x371   : > { %v2132_v42 = vsel %vm2131_vm9, %v2129_v32, %v2126_v40  ;;  %v2135_v54 = vmul.f32 0.6931472, %v3181_v26  ;;  %v2164_v12 = vadd.f32 1.0, %v2163_v13  ;;  %v2166_v1 = vand.u32 2147483647, %v4642_v53 }
 0x372   : > { %v2196_v24 = vadd.f32 %v2132_v42, %v1972_v44  ;;  %v2156_v36 = vmul.f32 %v4639_v41, %v2155_v2  ;;  %vm2158_vm12 = vcmp.lt.f32.partialorder %v2157_v29, 0.0004427343  ;;  %v1975_v22 = vmax.f32 %v4576_v21, 0.0 }
 0x373   : > { %v3183_v57 = vpop.eup %3182  ;;  %v2141_v17 = vsel %vm2140_vm10, %v2138_v47, %v2135_v54  ;;  %v2165_v52 = vmul.f32 %v4642_v53, %v2164_v12  ;;  %v1976_v63 = vmax.f32 %v4582_v8, 0.0  ;;  %vm2167_vm13 = vcmp.lt.f32.partialorder %v2166_v1, 0.0004427343 }
 0x374   : > { %v2207_v51 = vpack.c.bf16 %v2196_v24, %v2195_v38  ;;  %v2169_v19 = vadd.f32 1.0, %v3183_v57  ;;  %v2172_v50 = vmul.f32 -0.5, %v3183_v57  ;;  %v2197_v20 = vadd.f32 %v2141_v17, %v1973_v18 }
 0x375   : > { %v3185_v56 = vpop.eup %3184  ;;  %v2175_v37 = vand.u32 2147483647, %v3183_v57  ;;  %v1977_v8 = vmax.f32 %v4608_v4, 0.0  ;;  %v1978_v3 = vmax.f32 %v4618_v31, 0.0 }
 0x376   : > { %v3187_v46 = vpop.eup %3186  ;;  %2743 = vmatprep.mubr.bf16.mxu1 %v2207_v51  ;;  %3192 = vlog2.f32 %v2169_v19  ;;  %v2178_v27 = vadd.f32 1.0, %v3185_v56  ;;  %v2181_v7 = vmul.f32 -0.5, %v3185_v56  ;;  %v2173_v6 = vadd.f32 1.0, %v2172_v50 }
 0x377   : > { %v2144_v11 = vmul.f32 0.6931472, %v3187_v46  ;;  %v2184_v10 = vand.u32 2147483647, %v3185_v56  ;;  %vm2176_vm14 = vcmp.lt.f32.partialorder %v2175_v37, 0.0004427343 }
 0x378   : > { %3194 = vlog2.f32 %v2178_v27  ;;  %v3189_v43 = vpop.eup %3188  ;;  %v2182_v16 = vadd.f32 1.0, %v2181_v7  ;;  %v2174_v33 = vmul.f32 %v3183_v57, %v2173_v6 }
 0x379   : > { %v2150_v61 = vsel %vm2149_vm11, %v2147_v55, %v2144_v11  ;;  %v2153_v5 = vmul.f32 0.6931472, %v3189_v43  ;;  %vm2185_vm15 = vcmp.lt.f32.partialorder %v2184_v10, 0.0004427343 }
 0x37a   : > { %v2198_v45 = vadd.f32 %v2150_v61, %v1974_v60  ;;  %v3191_v35 = vpop.eup %3190  ;;  %v2183_v21 = vmul.f32 %v3185_v56, %v2182_v16 }
 0x37b   : > { %v2159_v25 = vsel %vm2158_vm12, %v2156_v36, %v2153_v5  ;;  %v2162_v0 = vmul.f32 0.6931472, %v3191_v35 }
 0x37c   : > { %v2208_v59 = vpack.c.bf16 %v2198_v45, %v2197_v20  ;;  %v2199_v41 = vadd.f32 %v2159_v25, %v1975_v22 }
 0x37d   : > { %v2168_v58 = vsel %vm2167_vm13, %v2165_v52, %v2162_v0 }
 0x37e   : > { %2744 = vmatmul.mubr.bf16.gmra.mrb[40].mxu1 %v2208_v59  ;;  %v2200_v34 = vadd.f32 %v2168_v58, %v1976_v63 }
 0x380   : > { %v3193_v15 = vpop.eup %3192  ;;  %v2209_v62 = vpack.c.bf16 %v2200_v34, %v2199_v41 }
 0x381   : > { %v2171_v48 = vmul.f32 0.6931472, %v3193_v15 }
 0x382   : > { %v3195_v32 = vpop.eup %3194  ;;  %2747 = vmatprep.mubr.bf16.mxu1 %v2209_v62 }
 0x383   : > { %v2177_v53 = vsel %vm2176_vm14, %v2174_v33, %v2171_v48  ;;  %v2180_v40 = vmul.f32 0.6931472, %v3195_v32 }
 0x384   : > { %v2201_v44 = vadd.f32 %v2177_v53, %v1977_v8 }
 0x385   : > { %v2186_v9 = vsel %vm2185_vm15, %v2183_v21, %v2180_v40 }
 0x386   : > { %v2202_v30 = vadd.f32 %v2186_v9, %v1978_v3 }
 0x388   : > { %v2210_v42 = vpack.c.bf16 %v2202_v30, %v2201_v44 }
 0x38a   : > { %2748 = vmatmul.mubr.bf16.gmra.mrb[44].mxu1 %v2210_v42 }
 0x42d   : > { %v2737_v26 = vpop.f32.mrb[32].mxu1 }
 0x42e   : > { %v2325_v38 = vadd.f32 %v2737_v26, %v2622_v49  ;;  %v2316_v24 = vpop.f32.mrb[33].mxu1 }
 0x42f   : > { %v2317_v14 = vadd.f32 %v2622_v49, %v2316_v24  ;;  %v2738_v57 = vpop.f32.mrb[34].mxu1 }
 0x430   : > { %2381 = vst [vmem:[%s4672_s6 + $0x10] sm:$0xff] %v2325_v38  ;;  %v2328_v4 = vadd.f32 %v2738_v57, %v2622_v49  ;;  %v2319_v31 = vpop.f32.mrb[35].mxu1 }
 0x431   : > { %2379 = vst [vmem:[%s4672_s6] sm:$0xff] %v2317_v14  ;;  %v2320_v54 = vadd.f32 %v2622_v49, %v2319_v31 }
 0x432   : > { %2382 = vst [vmem:[%s4672_s6 + $0x18] sm:$0xff] %v2328_v4 }
 0x433   : > { %2380 = vst [vmem:[%s4672_s6 + $0x8] sm:$0xff] %v2320_v54 }
 0x441   : > { %v2741_v39 = vpop.f32.mrb[36].mxu1 }
 0x442   : > { %v2341_v28 = vadd.f32 %v2741_v39, %v2622_v49  ;;  %v2332_v51 = vpop.f32.mrb[37].mxu1 }
 0x443   : > { %v2333_v23 = vadd.f32 %v2622_v49, %v2332_v51  ;;  %v2742_v19 = vpop.f32.mrb[38].mxu1 }
 0x444   : > { %2385 = vst [vmem:[%s4672_s6 + $0x30] sm:$0xff] %v2341_v28  ;;  %v2344_v56 = vadd.f32 %v2742_v19, %v2622_v49  ;;  %v2335_v47 = vpop.f32.mrb[39].mxu1 }
 0x445   : > { %2383 = vst [vmem:[%s4672_s6 + $0x20] sm:$0xff] %v2333_v23  ;;  %v2336_v13 = vadd.f32 %v2622_v49, %v2335_v47 }
 0x446   : > { %2386 = vst [vmem:[%s4672_s6 + $0x38] sm:$0xff] %v2344_v56 }
 0x447   : > { %2384 = vst [vmem:[%s4672_s6 + $0x28] sm:$0xff] %v2336_v13 }
 0x451   : > { %v2745_v46 = vpop.f32.mrb[40].mxu1 }
 0x452   : > { %v2357_v18 = vadd.f32 %v2745_v46, %v2622_v49  ;;  %v2348_v27 = vpop.f32.mrb[41].mxu1 }
 0x453   : > { %v2349_v17 = vadd.f32 %v2622_v49, %v2348_v27  ;;  %v2746_v11 = vpop.f32.mrb[42].mxu1 }
 0x454   : > { %2389 = vst [vmem:[%s4672_s6 + $0x50] sm:$0xff] %v2357_v18  ;;  %v2360_v55 = vadd.f32 %v2746_v11, %v2622_v49  ;;  %v2351_v2 = vpop.f32.mrb[43].mxu1 }
 0x455   : > { %2387 = vst [vmem:[%s4672_s6 + $0x40] sm:$0xff] %v2349_v17  ;;  %v2352_v60 = vadd.f32 %v2622_v49, %v2351_v2 }
 0x456   : > { %2390 = vst [vmem:[%s4672_s6 + $0x58] sm:$0xff] %v2360_v55 }
 0x457   : > { %2388 = vst [vmem:[%s4672_s6 + $0x48] sm:$0xff] %v2352_v60 }
 0x45d   : > { %v2749_v29 = vpop.f32.mrb[44].mxu1 }
 0x45e   : > { %v2373_v43 = vadd.f32 %v2749_v29, %v2622_v49  ;;  %v2364_v61 = vpop.f32.mrb[45].mxu1 }
 0x45f   : > { %v2365_v12 = vadd.f32 %v2622_v49, %v2364_v61  ;;  %v2750_v50 = vpop.f32.mrb[46].mxu1 }
 0x460   : > { %2393 = vst [vmem:[%s4672_s6 + $0x70] sm:$0xff] %v2373_v43  ;;  %v2376_v20 = vadd.f32 %v2750_v50, %v2622_v49  ;;  %v2367_v45 = vpop.f32.mrb[47].mxu1 }
 0x461   : > { %2391 = vst [vmem:[%s4672_s6 + $0x60] sm:$0xff] %v2365_v12  ;;  %v2368_v5 = vadd.f32 %v2622_v49, %v2367_v45 }
 0x462   : > { %2394 = vst [vmem:[%s4672_s6 + $0x78] sm:$0xff] %v2376_v20 }
 0x463   : > { %2392 = vst [vmem:[%s4672_s6 + $0x68] sm:$0xff] %v2368_v5 }
 0x464   : > { %3323 = shalt.err (!%p3320_p0)
}
 0x465   : > { %s3324_s28 = scalar_lea.hbm %s4692_s16, 2048  ;;  %s3328_s7 = scalar_lea.hbm %s4751_s5, 4096 }
 0x466   : > { %p3325_p4 = scmp.ne.s32.totalorder %s4692_s16, %s3324_s28  ;;  %p3329_p12 = scmp.lt.u32.totalorder %s4692_s16, %s4751_s5 }
 0x467   : > { %p3330_p1 = scmp.lt.u32.totalorder %s3328_s7, %s3324_s28  ;;  %p3332_p13 = scmp.lt.u32.totalorder %s3324_s28, %s4692_s16 }
 0x468   : > { %p3326_p8 = pnand %p3325_p4, %p3599_p3 }
 0x469   : > { %p3331_p7 = por %p3330_p1, %p3329_p12 }
 0x46a   : > { %p3327_p2 = pneg %p3326_p8 }
 0x46b   : > { %p3333_p6 = por %p3332_p13, %p3331_p7 }
 0x46d   : > { %p3334_p10 = pnand %p3333_p6, %p3327_p2 }
 0x46f   : > { %3337 = shalt.err (!%p3334_p10)
}
 0x470   : > { %s3413_s6 = smov 128   ;;  %s3414_s17 = smov 8  }
 0x471   : > { %2797 = dma.vmem_to_hbm [thread:$0]  (%p3599_p3), %s4694_s24, 2048, %s4692_s16, %s2396_s21, %s3413_s6, %s3413_s6, %s3414_s17  }
 0x472 PF: > { %s4893_s27 = sld [smem:[#allocation16_spill]]  ;;  %s2424_s11 = sand.u32 1, %s3380_s18  }
 0x473   : > { %p4895_p5 = scmp.ge.s32.totalorder %s3400_s23, 2  ;;  %s2425_s8 = scalar_lea.sflag [#allocation5], %s2424_s11 }
 0x478   : > { %p4894_p11 = scmp.ne.s32.totalorder %s4893_s27, 0 }
 0x47a   : > { %p2814_p9 = pnand %p4895_p5, %p4894_p11 }
 0x47c   : > { %3375 = dma.done.wait (!%p2814_p9), %s2425_s8, 2048  }
 0x47d   : > { %3377 = vsyncadd (!%p2814_p9), %s2425_s8, 4294965248  ;;  %s23_s23 = sadd.s32 1, %s3400_s23   ;;  %s4896_s18 = smov %s3384_s19 }
 0x47e   : > { %p20_p0 = scmp.ge.s32.totalorder %s23_s23, 4   ;;  %s4897_s19 = smov %s3388_s20 }
 0x47f   : > { %s4898_s20 = smov %s3608_s13  ;;  %s4899_s21 = smov %s3396_s22 }
 0x480   : > { %s4900_s22 = smov %s4902_s1  ;;  %22 = sbr.rel (!%p20_p0) target bundleno = 10 (0xa), region = 106 }
 0x487   :  { %2430 = vsyncpa [#allocation4], 1 }
 0x488   :  { %2432 = vsyncpa [#allocation4 + $0x1], 1 }
 0x489   :  { %2433 = vsyncpa [#allocation7], 1 }
 0x48a   :  { %2434 = vsyncpa [#allocation10], 1 }
 0x48b   :  { %2435 = vsyncpa [#allocation5], 1 }
 0x48c   :  { %2437 = vsyncpa [#allocation5 + $0x1], 1 }

// kernel: tpu_custom_call.1
= control target key start
LH: loop header
LB: loop body
LE: loop exit
PB: predicated region body
PF: predicated region fallthrough
CT: control target
= control target key end

     0   :  { %s4746_s0 = inlined_call_operand.hbm [shape: f32[256,512], index: 0, kind: input, shape index: {}]   ;;  %s4747_s1 = inlined_call_operand.hbm [shape: bf16[512,256], index: 1, kind: input, shape index: {}]   ;;  %s4748_s2 = inlined_call_operand.hbm [shape: bf16[256,128], index: 2, kind: input, shape index: {}]   ;;  %s4749_s3 = inlined_call_operand.hbm [shape: bf16[128,128], index: 3, kind: input, shape index: {}]   ;;  %s4750_s4 = inlined_call_operand.vmem [shape: f32[1,512], index: 4, kind: input, shape index: {}]   ;;  %s4751_s5 = inlined_call_operand.hbm [shape: f32[256,128], index: 5, kind: output, shape index: {}]  }
   0x1   :  { %4765 = sst [smem:[#allocation27_spill]] %s4747_s1 }
   0x2   :  { %10 = vsyncpa [#allocation4], 0 }
   0x3   :  { %12 = vsyncpa [#allocation4 + $0x1], 0 }
   0x4   :  { %13 = vsyncpa [#allocation7], 0 }
   0x5   :  { %14 = vsyncpa [#allocation10], 0 }
   0x6   :  { %15 = vsyncpa [#allocation5], 0 }
   0x7   :  { %17 = vsyncpa [#allocation5 + $0x1], 0  ;;  %s3445_s18 = smov 0   ;;  %s3447_s19 = smov 0  }
   0x8   :  { %s3449_s20 = smov 0   ;;  %s3451_s21 = smov 0  }
   0x9   :  { %s3453_s22 = smov 0   ;;  %s3455_s23 = smov 0  }
   0xa LB: > { %s2524_s24 = sadd.s32 4294967295, %s3400_s23   ;;  %s2525_s25 = sadd.s32 4294967294, %s3400_s23   ;;  %s3400_s23 = sphi %s3455_s23, %s23_s23   ;;  %s3396_s22 = sphi %s3453_s22, %s4900_s22   ;;  %s3392_s21 = sphi %s3451_s21, %s4899_s21   ;;  %s3388_s20 = sphi %s3449_s20, %s4898_s20   ;;  %s3384_s19 = sphi %s3447_s19, %s4897_s19   ;;  %s3380_s18 = sphi %s3445_s18, %s4896_s18  }
   0xb   : > { %p57_p0 = scmp.ne.s32.totalorder %s3384_s19, %s3380_s18  ;;  %p3479_p1 = scmp.eq.s32.totalorder %s2524_s24, 0 }
   0xc   : > { %p3483_p2 = scmp.eq.s32.totalorder %s2524_s24, 1  ;;  %p176_p3 = scmp.eq.s32.totalorder %s2525_s25, 1 }
   0xd   : > { %s4766_s26 = scalar_select %p3479_p1, 1, 0 }
   0xe   : > { %s4767_s27 = scalar_select %p3483_p2, 1, 0 }
   0xf   : > { %p3489_p4 = por %p3479_p1, %p57_p0  ;;  %p2526_p5 = scmp.ge.s32.totalorder %s3400_s23, 1 }
  0x10   : > { %p3494_p6 = por %p176_p3, %p57_p0  ;;  %p183_p7 = scmp.lt.s32.totalorder %s3400_s23, 3 }
  0x11   : > { %s4768_s28 = scalar_select %p3489_p4, 1, 0 }
  0x12   : > { %s4769_s29 = scalar_select %p3494_p6, 1, 0 }
  0x13   : > { %p3499_p8 = pnand %p2526_p5, %p183_p7  ;;  %s3402_s6 = smov [#allocation6]  }
  0x14   : > { %4770 = sst [smem:[#allocation16_spill]] %s4769_s29  ;;  %s199_s7 = sshll.u32 %s3402_s6, 4  ;;  %s3503_s7 = int_to_ptr.vmem [resolvable:$true] %s199_s7 }
  0x15   : > { %s4771_s30 = scalar_select %p3499_p8, 1, 0 }
  0x16   : > { %p2799_p9 = pneg %p3499_p8  ;;  %s3403_s9 = smov [#allocation8]  }
  0x17   : > { %s212_s10 = sshll.u32 %s3403_s9, 4  ;;  %s4773_s1 = sld [smem:[#allocation27_spill]]  ;;  %s3514_s10 = int_to_ptr.vmem [resolvable:$true] %s212_s10 }
  0x18   : > { %p3510_p11 = pnand %p2799_p9, %p3479_p1 }
  0x1a   : > { %p3524_p13 = pneg %p3510_p11 }
  0x1d   : > { %s3196_s13 = scalar_lea.hbm %s4773_s1, 8192 }
  0x1e   : > { %p3197_p12 = scmp.ne.s32.totalorder %s4773_s1, %s3196_s13  ;;  %p3203_p5 = scmp.lt.u32.totalorder %s3196_s13, %s4773_s1 }
  0x20   : > { %p3199_p0 = pnand %p3524_p13, %p3197_p12 }
  0x22   : > { %p3200_p3 = pneg %p3199_p0 }
  0x24   : > { %p3205_p7 = pnand %p3203_p5, %p3200_p3 }
  0x26   : > { %3208 = shalt.err (!%p3205_p7)
}
  0x27   : > { %s3209_s25 = scalar_lea.vmem %s3503_s7, 8192  ;;  %p3217_p1 = scmp.lt.s32.totalorder %s3503_s7, %s3503_s7 }
  0x28   : > { %p3210_p9 = scmp.ne.s32.totalorder %s3503_s7, %s3209_s25  ;;  %p3218_p4 = scmp.lt.s32.totalorder %s3209_s25, %s3209_s25 }
  0x2a   : > { %p3212_p10 = pnand %p3210_p9, %p3524_p13  ;;  %p3219_p12 = por %p3218_p4, %p3217_p1 }
  0x2c   : > { %p3213_p6 = pneg %p3212_p10 }
  0x2e   : > { %p3220_p0 = pnand %p3219_p12, %p3213_p6 }
  0x30   : > { %3223 = shalt.err (!%p3220_p0)
}
  0x31   : > { %s3404_s6 = smov 128   ;;  %s3405_s9 = smov 8  }
  0x32   : > { %2802 = dma.hbm_to_vmem [thread:$0]  (!%p3510_p11), %s4773_s1, 8192, %s3503_s7, [#allocation7], %s3404_s6, %s3404_s6, %s3405_s9  }
  0x33   : > { %s3224_s15 = scalar_lea.hbm %s4748_s2, 2048 }
  0x34   : > { %p3225_p1 = scmp.ne.s32.totalorder %s4748_s2, %s3224_s15  ;;  %p3231_p10 = scmp.lt.u32.totalorder %s3224_s15, %s4748_s2 }
  0x36   : > { %p3227_p4 = pnand %p3225_p1, %p3524_p13 }
  0x38   : > { %p3228_p6 = pneg %p3227_p4 }
  0x3a   : > { %p3233_p3 = pnand %p3231_p10, %p3228_p6 }
  0x3c   : > { %3236 = shalt.err (!%p3233_p3)
}
  0x3d   : > { %s3237_s7 = scalar_lea.vmem %s3514_s10, 2048  ;;  %p3245_p12 = scmp.lt.s32.totalorder %s3514_s10, %s3514_s10 }
  0x3e   : > { %p3238_p5 = scmp.ne.s32.totalorder %s3514_s10, %s3237_s7  ;;  %p3246_p0 = scmp.lt.s32.totalorder %s3237_s7, %s3237_s7 }
  0x40   : > { %p3240_p7 = pnand %p3238_p5, %p3524_p13  ;;  %p3247_p1 = por %p3246_p0, %p3245_p12 }
  0x42   : > { %p3241_p9 = pneg %p3240_p7 }
  0x44   : > { %p3248_p4 = pnand %p3247_p1, %p3241_p9 }
  0x46   : > { %3251 = shalt.err (!%p3248_p4)
}
  0x47   : > { %s3406_s6 = smov 64   ;;  %s3407_s29 = smov 4  }
  0x48   : > { %2805 = dma.hbm_to_vmem [thread:$0]  (!%p3510_p11), %s4748_s2, 2048, %s3514_s10, [#allocation7], %s3406_s6, %s3406_s6, %s3407_s29  }
  0x49   : > { %s3408_s12 = smov [#allocation9]   ;;  %s3252_s17 = scalar_lea.hbm %s4749_s3, 1024 }
  0x4a   : > { %s225_s13 = sshll.u32 %s3408_s12, 4  ;;  %p3253_p6 = scmp.ne.s32.totalorder %s4749_s3, %s3252_s17  ;;  %s226_s13 = int_to_ptr.vmem [resolvable:$true] %s225_s13 }
  0x4b   : > { %p3259_p5 = scmp.lt.u32.totalorder %s3252_s17, %s4749_s3 }
  0x4c   : > { %p3255_p10 = pnand %p3253_p6, %p3524_p13 }
  0x4e   : > { %p3256_p3 = pneg %p3255_p10 }
  0x50   : > { %p3261_p7 = pnand %p3259_p5, %p3256_p3 }
  0x52   : > { %3264 = shalt.err (!%p3261_p7)
}
  0x53   : > { %s3265_s10 = scalar_lea.vmem %s226_s13, 1024  ;;  %p3273_p1 = scmp.lt.s32.totalorder %s226_s13, %s226_s13 }
  0x54   : > { %p3266_p9 = scmp.ne.s32.totalorder %s226_s13, %s3265_s10  ;;  %p3274_p4 = scmp.lt.s32.totalorder %s3265_s10, %s3265_s10 }
  0x56   : > { %p3268_p12 = pnand %p3266_p9, %p3524_p13  ;;  %p3275_p8 = por %p3274_p4, %p3273_p1 }
  0x58   : > { %p3269_p0 = pneg %p3268_p12 }
  0x5a   : > { %p3276_p2 = pnand %p3275_p8, %p3269_p0 }
  0x5c   : > { %3279 = shalt.err (!%p3276_p2)
}
  0x5d   : > { %2808 = dma.hbm_to_vmem [thread:$0]  (!%p3510_p11), %s4749_s3, 1024, %s226_s13, [#allocation10], %s3406_s6, %s3406_s6, %s3407_s29  }
  0x5e   : > { %s35_s1 = sadd.s32 1, %s3396_s22  ;;  %s44_s16 = sadd.s32 1, %s3388_s20 }
  0x5f   : > { %p37_p8 = scmp.ge.s32.totalorder %s35_s1, 2  ;;  %p51_p2 = scmp.ne.s32.totalorder %s3388_s20, %s3384_s19 }
  0x60   : > { %p52_p13 = scmp.eq.s32.totalorder %s3400_s23, 0  ;;  %p4776_p10 = scmp.ne.s32.totalorder %s4767_s27, 0 }
  0x61   : > { %s4902_s1 = smov (%p37_p8, %s35_s1), 0  ;;  %p2820_p11 = scmp.lt.s32.totalorder %s3400_s23, 2 }
  0x62   : > { %p3593_p6 = por %p52_p13, %p51_p2  ;;  %p3599_p3 = por %p4776_p10, %p51_p2 }
  0x63   : > { %s39_s14 = ssub.s32 %s3396_s22, %s4902_s1  ;;  %s242_s6 = sand.u32 1, %s3388_s20  }
  0x64   : > { %p42_p5 = scmp.eq.s32.totalorder %s39_s14, 0  ;;  %s2531_s29 = sshll.u32 %s242_s6, 9 }
  0x65   : > { %s2637_s15 = sshll.u32 %s3396_s22, 13  ;;  %s246_s27 = scalar_lea.vmem [#allocation3], %s2531_s29 }
  0x66   : > { %s3608_s13 = scalar_select %p42_p5, %s3388_s20, %s44_s16  }
  0x67   : > { %s3614_s25 = scalar_lea.hbm %s4746_s0, %s2637_s15  ;;  %s256_s7 = sshll.u32 %s246_s27, 4  ;;  %s3616_s7 = int_to_ptr.vmem [resolvable:$true] %s256_s7 }
  0x68   : > { %p3620_p7 = pnand %p2820_p11, %p3593_p6  ;;  %s3624_s9 = scalar_lea.sflag [#allocation4], %s242_s6 }
  0x69   : > { %s3280_s11 = scalar_lea.hbm %s3614_s25, 8192  ;;  %s3285_s8 = scalar_lea.hbm %s4746_s0, 16384 }
  0x6a   : > { %p3281_p9 = scmp.ne.s32.totalorder %s3614_s25, %s3280_s11  ;;  %p3282_p12 = pneg %p3620_p7 }
  0x6b   : > { %p3286_p4 = scmp.lt.u32.totalorder %s3614_s25, %s4746_s0  ;;  %p3287_p8 = scmp.lt.u32.totalorder %s3285_s8, %s3280_s11 }
  0x6c   : > { %p3283_p0 = pnand %p3282_p12, %p3281_p9  ;;  %p3289_p13 = scmp.lt.u32.totalorder %s3280_s11, %s3614_s25 }
  0x6d   : > { %p3288_p2 = por %p3287_p8, %p3286_p4 }
  0x6e   : > { %p3284_p1 = pneg %p3283_p0 }
  0x6f   : > { %p3290_p6 = por %p3289_p13, %p3288_p2 }
  0x71   : > { %p3291_p10 = pnand %p3290_p6, %p3284_p1 }
  0x73   : > { %3294 = shalt.err (!%p3291_p10)
}
  0x74   : > { %s3295_s6 = scalar_lea.vmem %s3616_s7, 8192  ;;  %s3409_s17 = smov [#allocation3]  }
  0x75   : > { %p3296_p11 = scmp.ne.s32.totalorder %s3616_s7, %s3295_s6  ;;  %s3300_s24 = sshll.u32 %s3409_s17, 4  ;;  %s3301_s24 = int_to_ptr.vmem [resolvable:$false] %s3300_s24 }
  0x76   : > { %s3302_s27 = scalar_lea.vmem %s3301_s24, 16384  ;;  %p3303_p0 = scmp.lt.s32.totalorder %s3616_s7, %s3301_s24 }
  0x77   : > { %p3298_p5 = pnand %p3296_p11, %p3282_p12  ;;  %p3304_p4 = scmp.lt.s32.totalorder %s3302_s27, %s3295_s6 }
  0x79   : > { %p3299_p9 = pneg %p3298_p5  ;;  %p3305_p8 = por %p3304_p4, %p3303_p0 }
  0x7b   : > { %p3306_p2 = pnand %p3305_p8, %p3299_p9 }
  0x7d   : > { %3309 = shalt.err (!%p3306_p2)
}
  0x7e   : > { %s3410_s11 = smov 512   ;;  %s3411_s16 = smov 32  }
  0x7f   : > { %2812 = dma.hbm_to_vmem [thread:$0]  (!%p3620_p7), %s3614_s25, 8192, %s3616_s7, %s3624_s9, %s3410_s11, %s3410_s11, %s3411_s16  }
  0x80   : > { %p4779_p12 = scmp.ne.s32.totalorder %s4771_s30, 0 }
  0x82   : > { %268 = sbr.rel (%p4779_p12) target bundleno = 1138 (0x472), region = 40 }
  0x89   : > { %s3655_s14 = sand.u32 1, %s3384_s19   ;;  %p4780_p1 = scmp.ne.s32.totalorder %s4768_s28, 0 }
  0x8a   : > { %s2536_s8 = sshll.u32 %s3655_s14, 9  ;;  %s271_s29 = scalar_lea.sflag [#allocation4], %s3655_s14 }
  0x8b   : > { %s3659_s15 = scalar_lea.vmem [#allocation3], %s2536_s8 }
  0x8c   : > { %3363 = dma.done.wait (%p4780_p1), %s271_s29, 8192  }
  0x8d   : > { %3365 = vsyncadd (%p4780_p1), %s271_s29, 4294959104  ;;  %p4781_p7 = scmp.ne.s32.totalorder %s4766_s26, 0 }
  0x8f   : > { %3367 = dma.done.wait (%p4781_p7), [#allocation7], 10240  }
  0x90   : > { %3369 = vsyncadd (%p4781_p7), [#allocation7], 4294957056 }
  0x91   : > { %3371 = dma.done.wait (%p4781_p7), [#allocation10], 1024  }
  0x92   : > { %3373 = vsyncadd (%p4781_p7), [#allocation10], 4294966272  ;;  %v2884_v0 = vld [vmem:[#allocation6 + $0x4] ss:$8 sps:$4 sm:$0xff]   ;;  %v2886_v1 = vld [vmem:[#allocation6] ss:$8 sps:$4 sm:$0xff]  }
  0x93   : > { %866 = vmatprep.subr.bf16.mxu0 %v2884_v0  ;;  %v2887_v2 = vld [vmem:[#allocation6 + $0x14] ss:$8 sps:$4 sm:$0xff]   ;;  %v2889_v3 = vld [vmem:[#allocation6 + $0x10] ss:$8 sps:$4 sm:$0xff]   ;;  %v2890_v4 = vld [vmem:[#allocation6 + $0x24] ss:$8 sps:$4 sm:$0xff]  }
  0x94   : > { %867 = vmatpush1.bf16.msra.mxu0 %v2886_v1  ;;  %v2892_v5 = vld [vmem:[#allocation6 + $0x20] ss:$8 sps:$4 sm:$0xff]   ;;  %v2893_v6 = vld [vmem:[#allocation6 + $0x34] ss:$8 sps:$4 sm:$0xff]   ;;  %v2895_v7 = vld [vmem:[#allocation6 + $0x30] ss:$8 sps:$4 sm:$0xff]  }
  0x95   : > { %868 = vmatprep.subr.bf16.mxu0 %v2887_v2  ;;  %v2896_v8 = vld [vmem:[#allocation6 + $0x44] ss:$8 sps:$4 sm:$0xff]   ;;  %v2898_v9 = vld [vmem:[#allocation6 + $0x40] ss:$8 sps:$4 sm:$0xff]   ;;  %v2899_v10 = vld [vmem:[#allocation6 + $0x54] ss:$8 sps:$4 sm:$0xff]  }
  0x96   : > { %v2901_v11 = vld [vmem:[#allocation6 + $0x50] ss:$8 sps:$4 sm:$0xff]   ;;  %v2902_v12 = vld [vmem:[#allocation6 + $0x64] ss:$8 sps:$4 sm:$0xff]   ;;  %v2904_v16 = vld [vmem:[#allocation6 + $0x60] ss:$8 sps:$4 sm:$0xff]  }
  0x97   : > { %v387_v13 = vld [vmem:[%s3659_s15 + $0x8] sm:$0xff]  ;;  %v2905_v17 = vld [vmem:[#allocation6 + $0x74] ss:$8 sps:$4 sm:$0xff]   ;;  %v2907_v18 = vld [vmem:[#allocation6 + $0x70] ss:$8 sps:$4 sm:$0xff]   ;;  %s2540_s7 = sshll.u32 %s3655_s14, 7 }
  0x98   : > { %869 = vmatpush1.bf16.msra.mxu0 %v2889_v3  ;;  %v391_v14 = vld [vmem:[%s3659_s15 + $0x28] sm:$0xff]  ;;  %v2911_v21 = vld [vmem:[#allocation6 + $0x94] ss:$8 sps:$4 sm:$0xff]   ;;  %v2913_v22 = vld [vmem:[#allocation6 + $0x90] ss:$8 sps:$4 sm:$0xff]   ;;  %s4672_s6 = scalar_lea.vmem [#allocation11], %s2540_s7 }
  0x99   : > { %870 = vmatprep.subr.bf16.mxu0 %v2890_v4  ;;  %v451_v15 = vpack.c.bf16 %v391_v14, %v387_v13  ;;  %v2908_v19 = vld [vmem:[#allocation6 + $0x84] ss:$8 sps:$4 sm:$0xff]   ;;  %v2910_v20 = vld [vmem:[#allocation6 + $0x80] ss:$8 sps:$4 sm:$0xff]   ;;  %v2917_v25 = vld [vmem:[#allocation6 + $0xb4] ss:$8 sps:$4 sm:$0xff]  }
  0x9a   : > { %v2914_v23 = vld [vmem:[#allocation6 + $0xa4] ss:$8 sps:$4 sm:$0xff]   ;;  %v2916_v24 = vld [vmem:[#allocation6 + $0xa0] ss:$8 sps:$4 sm:$0xff]   ;;  %v2919_v26 = vld [vmem:[#allocation6 + $0xb0] ss:$8 sps:$4 sm:$0xff]  }
  0x9b   : > { %898 = vmatprep.mubr.bf16.mxu0 %v451_v15  ;;  %v2920_v27 = vld [vmem:[#allocation6 + $0xc4] ss:$8 sps:$4 sm:$0xff]   ;;  %v2922_v28 = vld [vmem:[#allocation6 + $0xc0] ss:$8 sps:$4 sm:$0xff]   ;;  %v2923_v29 = vld [vmem:[#allocation6 + $0xd4] ss:$8 sps:$4 sm:$0xff]  }
  0x9c   : > { %871 = vmatpush1.bf16.msra.mxu0 %v2892_v5  ;;  %v2925_v30 = vld [vmem:[#allocation6 + $0xd0] ss:$8 sps:$4 sm:$0xff]   ;;  %v2926_v31 = vld [vmem:[#allocation6 + $0xe4] ss:$8 sps:$4 sm:$0xff]   ;;  %v2928_v32 = vld [vmem:[#allocation6 + $0xe0] ss:$8 sps:$4 sm:$0xff]  }
  0x9d   : > { %872 = vmatprep.subr.bf16.mxu0 %v2893_v6  ;;  %v2929_v33 = vld [vmem:[#allocation6 + $0xf4] ss:$8 sps:$4 sm:$0xff]   ;;  %v2931_v34 = vld [vmem:[#allocation6 + $0xf0] ss:$8 sps:$4 sm:$0xff]   ;;  %v386_v35 = vld [vmem:[%s3659_s15] sm:$0xff]  ;;  %s2638_s17 = sshll.u32 %s3392_s21, 11 }
  0x9e   : > { %v390_v36 = vld [vmem:[%s3659_s15 + $0x20] sm:$0xff]  ;;  %v395_v38 = vld [vmem:[%s3659_s15 + $0x48] sm:$0xff]  ;;  %v2937_v42 = vld [vmem:[#allocation6 + $0x114] ss:$8 sps:$4 sm:$0xff]   ;;  %s2409_s24 = sshll.u32 %s4672_s6, 4  ;;  %s4692_s16 = scalar_lea.hbm %s4751_s5, %s2638_s17  ;;  %s4694_s24 = int_to_ptr.vmem [resolvable:$true] %s2409_s24 }
  0x9f   : > { %v2934_v37 = vld [vmem:[#allocation6 + $0x104] ss:$8 sps:$4 sm:$0xff]   ;;  %v450_v40 = vpack.c.bf16 %v390_v36, %v386_v35  ;;  %v2932_v41 = vld [vmem:[#allocation6 + $0x100] ss:$8 sps:$4 sm:$0xff]   ;;  %v2935_v44 = vld [vmem:[#allocation6 + $0x110] ss:$8 sps:$4 sm:$0xff]  }
  0xa0   : > { %873 = vmatpush1.bf16.msra.mxu0 %v2895_v7  ;;  %v399_v39 = vld [vmem:[%s3659_s15 + $0x68] sm:$0xff]  ;;  %v394_v45 = vld [vmem:[%s3659_s15 + $0x40] sm:$0xff]  ;;  %v2943_v52 = vld [vmem:[#allocation6 + $0x134] ss:$8 sps:$4 sm:$0xff]   ;;  %s2396_s21 = scalar_lea.sflag [#allocation5], %s3655_s14  ;;  %s3310_s8 = scalar_lea.vmem %s4694_s24, 2048 }
  0xa1   : > { %874 = vmatprep.subr.bf16.mxu0 %v2896_v8  ;;  %v455_v43 = vpack.c.bf16 %v399_v39, %v395_v38  ;;  %v398_v46 = vld [vmem:[%s3659_s15 + $0x60] sm:$0xff]  ;;  %v403_v48 = vld [vmem:[%s3659_s15 + $0x88] sm:$0xff]  ;;  %v2941_v54 = vld [vmem:[#allocation6 + $0x130] ss:$8 sps:$4 sm:$0xff]   ;;  %p3311_p13 = scmp.ne.s32.totalorder %s4694_s24, %s3310_s8  ;;  %s3412_s29 = smov [#allocation11]  }
  0xa2   : > { %v2940_v47 = vld [vmem:[#allocation6 + $0x124] ss:$8 sps:$4 sm:$0xff]   ;;  %v2938_v50 = vld [vmem:[#allocation6 + $0x120] ss:$8 sps:$4 sm:$0xff]   ;;  %v454_v51 = vpack.c.bf16 %v398_v46, %v394_v45  ;;  %v2949_v63 = vld [vmem:[#allocation6 + $0x154] ss:$8 sps:$4 sm:$0xff]  }
  0xa3   : > { %v407_v49 = vld [vmem:[%s3659_s15 + $0xa8] sm:$0xff]  ;;  %v402_v55 = vld [vmem:[%s3659_s15 + $0x80] sm:$0xff]  ;;  %v2947_v0 = vld [vmem:[#allocation6 + $0x150] ss:$8 sps:$4 sm:$0xff]   ;;  %p3312_p6 = pnand %p3311_p13, %p3599_p3 }
  0xa4   : > { %875 = vmatpush1.bf16.msra.mxu0 %v2898_v9  ;;  %v459_v53 = vpack.c.bf16 %v407_v49, %v403_v48  ;;  %v406_v56 = vld [vmem:[%s3659_s15 + $0xa0] sm:$0xff]  ;;  %v411_v58 = vld [vmem:[%s3659_s15 + $0xc8] sm:$0xff]  ;;  %v2955_v9 = vld [vmem:[#allocation6 + $0x174] ss:$8 sps:$4 sm:$0xff]  }
  0xa5   : > { %876 = vmatprep.subr.bf16.mxu0 %v2899_v10  ;;  %v2946_v57 = vld [vmem:[#allocation6 + $0x144] ss:$8 sps:$4 sm:$0xff]   ;;  %v2944_v60 = vld [vmem:[#allocation6 + $0x140] ss:$8 sps:$4 sm:$0xff]   ;;  %v458_v61 = vpack.c.bf16 %v406_v56, %v402_v55  ;;  %v2953_v10 = vld [vmem:[#allocation6 + $0x170] ss:$8 sps:$4 sm:$0xff]   ;;  %p3313_p10 = pneg %p3312_p6 }
  0xa6   : > { %v415_v59 = vld [vmem:[%s3659_s15 + $0xe8] sm:$0xff]  ;;  %v410_v1 = vld [vmem:[%s3659_s15 + $0xc0] sm:$0xff]  ;;  %v2973_v39 = vld [vmem:[#allocation6 + $0x1d4] ss:$8 sps:$4 sm:$0xff]  }
  0xa7   : > { %v463_v62 = vpack.c.bf16 %v415_v59, %v411_v58  ;;  %v414_v2 = vld [vmem:[%s3659_s15 + $0xe0] sm:$0xff]  ;;  %v419_v4 = vld [vmem:[%s3659_s15 + $0x108] sm:$0xff]  ;;  %v393_v45 = vld [vmem:[%s3659_s15 + $0x38] sm:$0xff] }
  0xa8   : > { %877 = vmatpush1.bf16.msra.mxu0 %v2901_v11  ;;  %v2952_v3 = vld [vmem:[#allocation6 + $0x164] ss:$8 sps:$4 sm:$0xff]   ;;  %v462_v6 = vpack.c.bf16 %v414_v2, %v410_v1  ;;  %v2950_v7 = vld [vmem:[#allocation6 + $0x160] ss:$8 sps:$4 sm:$0xff]   ;;  %v2979_v49 = vld [vmem:[#allocation6 + $0x1f4] ss:$8 sps:$4 sm:$0xff]  }
  0xa9   : > { %878 = vmatprep.subr.bf16.mxu0 %v2902_v12  ;;  %v423_v5 = vld [vmem:[%s3659_s15 + $0x128] sm:$0xff]  ;;  %v418_v11 = vld [vmem:[%s3659_s15 + $0x100] sm:$0xff]  ;;  %v400_v58 = vld [vmem:[%s3659_s15 + $0x70] sm:$0xff] }
  0xaa   : > { %v467_v8 = vpack.c.bf16 %v423_v5, %v419_v4  ;;  %v422_v12 = vld [vmem:[%s3659_s15 + $0x120] sm:$0xff]  ;;  %v427_v14 = vld [vmem:[%s3659_s15 + $0x148] sm:$0xff]  ;;  %v405_v59 = vld [vmem:[%s3659_s15 + $0x98] sm:$0xff] }
  0xab   : > { %v2958_v13 = vld [vmem:[#allocation6 + $0x184] ss:$8 sps:$4 sm:$0xff]   ;;  %v413_v1 = vld [vmem:[%s3659_s15 + $0xd8] sm:$0xff]  ;;  %v412_v5 = vld [vmem:[%s3659_s15 + $0xd0] sm:$0xff] }
  0xac   : > { %879 = vmatpush1.bf16.msra.mxu0 %v2904_v16  ;;  %v431_v15 = vld [vmem:[%s3659_s15 + $0x168] sm:$0xff]  ;;  %v466_v16 = vpack.c.bf16 %v422_v12, %v418_v11  ;;  %v417_v2 = vld [vmem:[%s3659_s15 + $0xf8] sm:$0xff]  ;;  %v420_v11 = vld [vmem:[%s3659_s15 + $0x110] sm:$0xff] }
  0xad   : > { %880 = vmatprep.subr.bf16.mxu0 %v2905_v17  ;;  %v2956_v17 = vld [vmem:[#allocation6 + $0x180] ss:$8 sps:$4 sm:$0xff]   ;;  %v465_v4 = vpack.c.bf16 %v417_v2, %v413_v1  ;;  %v424_v12 = vld [vmem:[%s3659_s15 + $0x130] sm:$0xff] }
  0xae   : > { %v447_v35 = vld [vmem:[%s3659_s15 + $0x1e8] sm:$0xff] }
  0xb0   : > { %881 = vmatpush1.bf16.msra.mxu0 %v2907_v18  ;;  %v471_v18 = vpack.c.bf16 %v431_v15, %v427_v14  ;;  %v433_v14 = vld [vmem:[%s3659_s15 + $0x178] sm:$0xff]  ;;  %v468_v15 = vpack.c.bf16 %v424_v12, %v420_v11 }
  0xb1   : > { %882 = vmatprep.subr.bf16.mxu0 %v2908_v19  ;;  %v2961_v19 = vld [vmem:[#allocation6 + $0x194] ss:$8 sps:$4 sm:$0xff]  }
  0xb4   : > { %883 = vmatpush1.bf16.msra.mxu0 %v2910_v20  ;;  %v2959_v20 = vld [vmem:[#allocation6 + $0x190] ss:$8 sps:$4 sm:$0xff]  }
  0xb5   : > { %884 = vmatprep.subr.bf16.mxu0 %v2911_v21  ;;  %v426_v21 = vld [vmem:[%s3659_s15 + $0x140] sm:$0xff] }
  0xb8   : > { %885 = vmatpush1.bf16.msra.mxu0 %v2913_v22  ;;  %v430_v22 = vld [vmem:[%s3659_s15 + $0x160] sm:$0xff] }
  0xb9   : > { %886 = vmatprep.subr.bf16.mxu0 %v2914_v23  ;;  %v2964_v23 = vld [vmem:[#allocation6 + $0x1a4] ss:$8 sps:$4 sm:$0xff]  }
  0xbc   : > { %887 = vmatpush1.bf16.msra.mxu0 %v2916_v24  ;;  %v435_v24 = vld [vmem:[%s3659_s15 + $0x188] sm:$0xff] }
  0xbd   : > { %888 = vmatprep.subr.bf16.mxu0 %v2917_v25  ;;  %v439_v25 = vld [vmem:[%s3659_s15 + $0x1a8] sm:$0xff] }
  0xc0   : > { %889 = vmatpush1.bf16.msra.mxu0 %v2919_v26  ;;  %v470_v26 = vpack.c.bf16 %v430_v22, %v426_v21 }
  0xc1   : > { %890 = vmatprep.subr.bf16.mxu0 %v2920_v27  ;;  %v2962_v27 = vld [vmem:[#allocation6 + $0x1a0] ss:$8 sps:$4 sm:$0xff]  }
  0xc4   : > { %891 = vmatpush1.bf16.msra.mxu0 %v2922_v28  ;;  %v475_v28 = vpack.c.bf16 %v439_v25, %v435_v24  ;;  %v440_v24 = vld [vmem:[%s3659_s15 + $0x1b0] sm:$0xff]  ;;  %v445_v25 = vld [vmem:[%s3659_s15 + $0x1d8] sm:$0xff] }
  0xc5   : > { %892 = vmatprep.subr.bf16.mxu0 %v2923_v29  ;;  %v2967_v29 = vld [vmem:[#allocation6 + $0x1b4] ss:$8 sps:$4 sm:$0xff]  }
  0xc8   : > { %893 = vmatpush1.bf16.msra.mxu0 %v2925_v30  ;;  %v2965_v30 = vld [vmem:[#allocation6 + $0x1b0] ss:$8 sps:$4 sm:$0xff]  }
  0xc9   : > { %894 = vmatprep.subr.bf16.mxu0 %v2926_v31  ;;  %v434_v31 = vld [vmem:[%s3659_s15 + $0x180] sm:$0xff] }
  0xcc   : > { %895 = vmatpush1.bf16.msra.mxu0 %v2928_v32  ;;  %v438_v32 = vld [vmem:[%s3659_s15 + $0x1a0] sm:$0xff] }
  0xcd   : > { %896 = vmatprep.subr.bf16.mxu0 %v2929_v33  ;;  %v2970_v33 = vld [vmem:[#allocation6 + $0x1c4] ss:$8 sps:$4 sm:$0xff]   ;;  %v474_v36 = vpack.c.bf16 %v438_v32, %v434_v31 }
  0xce   : > { %v2980_v32 = vld [vmem:[#allocation8 + $0x40] sm:$0xff]  }
  0xcf   : > { %2639 = vmatprep.subr.bf16.mxu1 %v2980_v32 }
  0xd0   : > { %897 = vmatpush1.bf16.msra.mxu0 %v2931_v34  ;;  %v443_v34 = vld [vmem:[%s3659_s15 + $0x1c8] sm:$0xff] }
  0xd1   : > { %979 = vmatprep.subr.bf16.mxu0 %v2934_v37  ;;  %v2968_v37 = vld [vmem:[#allocation6 + $0x1c0] ss:$8 sps:$4 sm:$0xff]   ;;  %v479_v38 = vpack.c.bf16 %v447_v35, %v443_v34 }
  0xd2   : > { %v2982_v34 = vld [vmem:[#allocation8 + $0x48] sm:$0xff]  }
  0xd3   : > { %899 = vmatmul.mubr.bf16.vlgmr.msra.gmra.mrb[0].mxu0 %v450_v40  ;;  %v2971_v40 = vld [vmem:[#allocation6 + $0x1d0] ss:$8 sps:$4 sm:$0xff]   ;;  %v2983_v35 = vld [vmem:[#allocation8 + $0x8] sm:$0xff]  }
  0xd4   : > { %980 = vmatpush1.bf16.msra.mxu0 %v2932_v41  ;;  %908 = vmatprep.mubr.bf16.mxu0 %v455_v43  ;;  %v442_v41 = vld [vmem:[%s3659_s15 + $0x1c0] sm:$0xff] }
  0xd5   : > { %981 = vmatprep.subr.bf16.mxu0 %v2937_v42  ;;  %v446_v42 = vld [vmem:[%s3659_s15 + $0x1e0] sm:$0xff] }
  0xd6   : > { %v2976_v43 = vld [vmem:[#allocation6 + $0x1e4] ss:$8 sps:$4 sm:$0xff]   ;;  %v478_v46 = vpack.c.bf16 %v446_v42, %v442_v41 }
  0xd7   : > { %v2989_v41 = vld [vmem:[#allocation8 + $0x20] sm:$0xff]   ;;  %v2990_v42 = vld [vmem:[#allocation8 + $0x68] sm:$0xff]  }
  0xd8   : > { %982 = vmatpush1.bf16.msra.mxu0 %v2935_v44  ;;  %v389_v44 = vld [vmem:[%s3659_s15 + $0x18] sm:$0xff] }
  0xd9   : > { %983 = vmatprep.subr.bf16.mxu0 %v2940_v47  ;;  %v2974_v47 = vld [vmem:[#allocation6 + $0x1e0] ss:$8 sps:$4 sm:$0xff]   ;;  %v453_v48 = vpack.c.bf16 %v393_v45, %v389_v44  ;;  %v2992_v44 = vld [vmem:[#allocation8 + $0x70] sm:$0xff]  }
  0xda   : > { %v2993_v45 = vld [vmem:[#allocation8 + $0x30] sm:$0xff]  }
  0xdb   : > { %909 = vmatmul.mubr.bf16.gmra.mrb[4].mxu0 %v454_v51  ;;  %v388_v51 = vld [vmem:[%s3659_s15 + $0x10] sm:$0xff] }
  0xdc   : > { %984 = vmatpush1.bf16.msra.mxu0 %v2938_v50  ;;  %918 = vmatprep.mubr.bf16.mxu0 %v459_v53  ;;  %v2977_v50 = vld [vmem:[#allocation6 + $0x1f0] ss:$8 sps:$4 sm:$0xff]  }
  0xdd   : > { %985 = vmatprep.subr.bf16.mxu0 %v2943_v52  ;;  %v392_v52 = vld [vmem:[%s3659_s15 + $0x30] sm:$0xff]  ;;  %v397_v53 = vld [vmem:[%s3659_s15 + $0x58] sm:$0xff] }
  0xde   : > { %v452_v55 = vpack.c.bf16 %v392_v52, %v388_v51  ;;  %v1191_v51 = vld [vmem:[%s4750_s4] sm:$0x3] }
  0xe0   : > { %986 = vmatpush1.bf16.msra.mxu0 %v2941_v54  ;;  %v401_v54 = vld [vmem:[%s3659_s15 + $0x78] sm:$0xff] }
  0xe1   : > { %987 = vmatprep.subr.bf16.mxu0 %v2946_v57  ;;  %v457_v56 = vpack.c.bf16 %v401_v54, %v397_v53  ;;  %v396_v57 = vld [vmem:[%s3659_s15 + $0x50] sm:$0xff] }
  0xe3   : > { %919 = vmatmul.mubr.bf16.gmra.mrb[8].mxu0 %v458_v61  ;;  %v456_v61 = vpack.c.bf16 %v400_v58, %v396_v57 }
  0xe4   : > { %988 = vmatpush1.bf16.msra.mxu0 %v2944_v60  ;;  %928 = vmatprep.mubr.bf16.mxu0 %v463_v62  ;;  %v409_v60 = vld [vmem:[%s3659_s15 + $0xb8] sm:$0xff] }
  0xe5   : > { %989 = vmatprep.subr.bf16.mxu0 %v2949_v63  ;;  %v461_v62 = vpack.c.bf16 %v409_v60, %v405_v59  ;;  %v404_v63 = vld [vmem:[%s3659_s15 + $0x90] sm:$0xff] }
  0xe8   : > { %990 = vmatpush1.bf16.msra.mxu0 %v2947_v0  ;;  %v408_v0 = vld [vmem:[%s3659_s15 + $0xb0] sm:$0xff] }
  0xe9   : > { %991 = vmatprep.subr.bf16.mxu0 %v2952_v3  ;;  %v460_v3 = vpack.c.bf16 %v408_v0, %v404_v63 }
  0xeb   : > { %929 = vmatmul.mubr.bf16.gmra.mrb[12].mxu0 %v462_v6  ;;  %v416_v6 = vld [vmem:[%s3659_s15 + $0xf0] sm:$0xff] }
  0xec   : > { %992 = vmatpush1.bf16.msra.mxu0 %v2950_v7  ;;  %938 = vmatprep.mubr.bf16.mxu0 %v467_v8  ;;  %v421_v7 = vld [vmem:[%s3659_s15 + $0x118] sm:$0xff] }
  0xed   : > { %993 = vmatprep.subr.bf16.mxu0 %v2955_v9  ;;  %v425_v8 = vld [vmem:[%s3659_s15 + $0x138] sm:$0xff]  ;;  %v464_v9 = vpack.c.bf16 %v416_v6, %v412_v5 }
  0xf0   : > { %994 = vmatpush1.bf16.msra.mxu0 %v2953_v10  ;;  %v469_v10 = vpack.c.bf16 %v425_v8, %v421_v7 }
  0xf1   : > { %995 = vmatprep.subr.bf16.mxu0 %v2958_v13  ;;  %v429_v13 = vld [vmem:[%s3659_s15 + $0x158] sm:$0xff] }
  0xf3   : > { %939 = vmatmul.mubr.bf16.gmra.mrb[16].mxu0 %v466_v16  ;;  %v473_v16 = vpack.c.bf16 %v433_v14, %v429_v13 }
  0xf4   : > { %996 = vmatpush1.bf16.msra.mxu0 %v2956_v17  ;;  %948 = vmatprep.mubr.bf16.mxu0 %v471_v18  ;;  %v428_v17 = vld [vmem:[%s3659_s15 + $0x150] sm:$0xff] }
  0xf5   : > { %997 = vmatprep.subr.bf16.mxu0 %v2961_v19  ;;  %v432_v18 = vld [vmem:[%s3659_s15 + $0x170] sm:$0xff]  ;;  %v437_v19 = vld [vmem:[%s3659_s15 + $0x198] sm:$0xff] }
  0xf6   : > { %v472_v21 = vpack.c.bf16 %v432_v18, %v428_v17 }
  0xf8   : > { %998 = vmatpush1.bf16.msra.mxu0 %v2959_v20  ;;  %v441_v20 = vld [vmem:[%s3659_s15 + $0x1b8] sm:$0xff] }
  0xf9   : > { %999 = vmatprep.subr.bf16.mxu0 %v2964_v23  ;;  %v477_v22 = vpack.c.bf16 %v441_v20, %v437_v19  ;;  %v436_v23 = vld [vmem:[%s3659_s15 + $0x190] sm:$0xff] }
  0xfb   : > { %949 = vmatmul.mubr.bf16.gmra.mrb[20].mxu0 %v470_v26  ;;  %v449_v26 = vld [vmem:[%s3659_s15 + $0x1f8] sm:$0xff] }
  0xfc   : > { %1000 = vmatpush1.bf16.msra.mxu0 %v2962_v27  ;;  %958 = vmatprep.mubr.bf16.mxu0 %v475_v28  ;;  %v476_v27 = vpack.c.bf16 %v440_v24, %v436_v23  ;;  %v481_v28 = vpack.c.bf16 %v449_v26, %v445_v25 }
  0xfd   : > { %1001 = vmatprep.subr.bf16.mxu0 %v2967_v29  ;;  %v444_v29 = vld [vmem:[%s3659_s15 + $0x1d0] sm:$0xff] }
 0x100   : > { %1002 = vmatpush1.bf16.msra.mxu0 %v2965_v30  ;;  %v448_v30 = vld [vmem:[%s3659_s15 + $0x1f0] sm:$0xff]  ;;  %s3314_s15 = sshll.u32 %s3412_s29, 4  ;;  %s3315_s15 = int_to_ptr.vmem [resolvable:$false] %s3314_s15 }
 0x101   : > { %1003 = vmatprep.subr.bf16.mxu0 %v2970_v33  ;;  %v480_v31 = vpack.c.bf16 %v448_v30, %v444_v29  ;;  %v2981_v33 = vld [vmem:[#allocation8] sm:$0xff]   ;;  %s3316_s26 = scalar_lea.vmem %s3315_s15, 4096  ;;  %p3317_p11 = scmp.lt.s32.totalorder %s4694_s24, %s3315_s15 }
 0x102   : > { %2640 = vmatpush3.bf16.msra.mxu1 %v2981_v33  ;;  %p3318_p5 = scmp.lt.s32.totalorder %s3316_s26, %s3310_s8 }
 0x103   : > { %959 = vmatmul.mubr.bf16.gmra.mrb[24].mxu0 %v474_v36  ;;  %2641 = vmatprep.subr.bf16.mxu1 %v2982_v34  ;;  %v2984_v36 = vld [vmem:[#allocation8 + $0x50] sm:$0xff]  }
 0x104   : > { %1004 = vmatpush1.bf16.msra.mxu0 %v2968_v37  ;;  %968 = vmatprep.mubr.bf16.mxu0 %v479_v38  ;;  %v2985_v37 = vld [vmem:[#allocation8 + $0x10] sm:$0xff]   ;;  %v2986_v38 = vld [vmem:[#allocation8 + $0x58] sm:$0xff]   ;;  %p3319_p9 = por %p3318_p5, %p3317_p11 }
 0x105   : > { %1005 = vmatprep.subr.bf16.mxu0 %v2973_v39  ;;  %v2987_v39 = vld [vmem:[#allocation8 + $0x18] sm:$0xff]  }
 0x106   : > { %2642 = vmatpush3.bf16.msra.mxu1 %v2983_v35  ;;  %p3320_p0 = pnand %p3319_p9, %p3313_p10 }
 0x107   : > { %2643 = vmatprep.subr.bf16.mxu1 %v2984_v36 }
 0x108   : > { %1006 = vmatpush1.bf16.msra.mxu0 %v2971_v40  ;;  %v2988_v40 = vld [vmem:[#allocation8 + $0x60] sm:$0xff]  }
 0x109   : > { %1007 = vmatprep.subr.bf16.mxu0 %v2976_v43  ;;  %v2991_v43 = vld [vmem:[#allocation8 + $0x28] sm:$0xff]  }
 0x10a   : > { %2644 = vmatpush3.bf16.msra.mxu1 %v2985_v37 }
 0x10b   : > { %969 = vmatmul.mubr.bf16.gmra.mrb[28].mxu0 %v478_v46  ;;  %2645 = vmatprep.subr.bf16.mxu1 %v2986_v38  ;;  %v2994_v46 = vld [vmem:[#allocation8 + $0x78] sm:$0xff]  }
 0x10c   : > { %1008 = vmatpush1.bf16.msra.mxu0 %v2974_v47  ;;  %1011 = vmatprep.mubr.bf16.mxu0 %v453_v48  ;;  %v2995_v47 = vld [vmem:[#allocation8 + $0x38] sm:$0xff]   ;;  %v1193_v48 = vlaneseq }
 0x10d   : > { %1009 = vmatprep.subr.bf16.mxu0 %v2979_v49 }
 0x10e   : > { %2646 = vmatpush3.bf16.msra.mxu1 %v2987_v39  ;;  %v1194_v49 = vshrl.u32 %v1193_v48, 7 }
 0x10f   : > { %2647 = vmatprep.subr.bf16.mxu1 %v2988_v40 }
 0x110   : > { %1010 = vmatpush1.bf16.msra.mxu0 %v2977_v50  ;;  %v1195_v50 = vsub.s32 0, %v1194_v49  ;;  %v1199_v60 = vsub.s32 1, %v1194_v49 }
 0x112   : > { %2648 = vmatpush3.bf16.msra.mxu1 %v2989_v41  ;;  %v3740_v52 = vrot.slane %v1191_v51, %v1195_v50  ;;  %v3750_v1 = vrot.slane %v1191_v51, %v1199_v60 }
 0x113   : > { %1012 = vmatmul.mubr.bf16.vlgmr.msra.gmra.mrb[0].mxu0 %v452_v55  ;;  %2649 = vmatprep.subr.bf16.mxu1 %v2990_v42 }
 0x114   : > { %1021 = vmatprep.mubr.bf16.mxu0 %v457_v56 }
 0x116   : > { %2650 = vmatpush3.bf16.msra.mxu1 %v2991_v43 }
 0x117   : > { %2651 = vmatprep.subr.bf16.mxu1 %v2992_v44 }
 0x11a   : > { %2652 = vmatpush3.bf16.msra.mxu1 %v2993_v45 }
 0x11b   : > { %1022 = vmatmul.mubr.bf16.gmra.mrb[4].mxu0 %v456_v61  ;;  %2653 = vmatprep.subr.bf16.mxu1 %v2994_v46 }
 0x11c   : > { %1031 = vmatprep.mubr.bf16.mxu0 %v461_v62 }
 0x11e   : > { %2654 = vmatpush3.bf16.msra.mxu1 %v2995_v47 }
 0x123   : > { %1032 = vmatmul.mubr.bf16.gmra.mrb[8].mxu0 %v460_v3 }
 0x124   : > { %1041 = vmatprep.mubr.bf16.mxu0 %v465_v4 }
 0x12b   : > { %1042 = vmatmul.mubr.bf16.gmra.mrb[12].mxu0 %v464_v9 }
 0x12c   : > { %1051 = vmatprep.mubr.bf16.mxu0 %v469_v10 }
 0x133   : > { %1052 = vmatmul.mubr.bf16.gmra.mrb[16].mxu0 %v468_v15 }
 0x134   : > { %1061 = vmatprep.mubr.bf16.mxu0 %v473_v16 }
 0x13b   : > { %1062 = vmatmul.mubr.bf16.gmra.mrb[20].mxu0 %v472_v21 }
 0x13c   : > { %1071 = vmatprep.mubr.bf16.mxu0 %v477_v22 }
 0x143   : > { %1072 = vmatmul.mubr.bf16.gmra.mrb[24].mxu0 %v476_v27 }
 0x144   : > { %1081 = vmatprep.mubr.bf16.mxu0 %v481_v28 }
 0x14b   : > { %1082 = vmatmul.mubr.bf16.gmra.mrb[28].mxu0 %v480_v31 }
 0x1e6   : > { %v1013_v53 = vpop.f32.mrb[0].mxu0 }
 0x1e7   : > { %v3743_v54 = vadd.f32 %v3740_v52, %v1013_v53  ;;  %v1015_v55 = vpop.f32.mrb[1].mxu0 }
 0x1e8   : > { %v1017_v56 = vpop.f32.mrb[2].mxu0  ;;  %v3763_v11 = vadd.f32 %v3750_v1, %v1015_v55 }
 0x1e9   : > { %v1267_v57 = vand.u32 2147483647, %v3743_v54  ;;  %v3747_v58 = vadd.f32 %v3740_v52, %v1017_v56  ;;  %v1019_v59 = vpop.f32.mrb[3].mxu0 }
 0x1ea   : > { %v1268_v20 = vand.u32 2147483647, %v3763_v11  ;;  %v3773_v21 = vadd.f32 %v3750_v1, %v1019_v59 }
 0x1eb   : > { %v1299_v61 = vsub.f32 0.0, %v1267_v57  ;;  %v1269_v62 = vand.u32 2147483647, %v3747_v58 }
 0x1ec   : > { %4782 = vst [vmem:[#allocation17_spill] sm:$0xff] %v3773_v21  ;;  %v1300_v33 = vsub.f32 0.0, %v1268_v20  ;;  %v1270_v34 = vand.u32 2147483647, %v3773_v21 }
 0x1ed   : > { %v1331_v63 = vmul.f32 1.442695, %v1299_v61  ;;  %v1301_v0 = vsub.f32 0.0, %v1269_v62  ;;  %v1235_v61 = vmax.f32 %v3743_v54, 0.0 }
 0x1ee   : > { %v1023_v2 = vpop.f32.mrb[4].mxu0  ;;  %v1333_v43 = vmul.f32 1.442695, %v1300_v33  ;;  %v1302_v44 = vsub.f32 0.0, %v1270_v34 }
 0x1ef   : > { %3004 = vpow2.f32 %v1331_v63  ;;  %v1335_v3 = vmul.f32 1.442695, %v1301_v0  ;;  %v3753_v4 = vadd.f32 %v3740_v52, %v1023_v2  ;;  %v1025_v5 = vpop.f32.mrb[5].mxu0  ;;  %v1237_v0 = vmax.f32 %v3747_v58, 0.0 }
 0x1f0   : > { %v3756_v6 = vadd.f32 %v3750_v1, %v1025_v5  ;;  %v1027_v7 = vpop.f32.mrb[6].mxu0  ;;  %v1337_v59 = vmul.f32 1.442695, %v1302_v44 }
 0x1f1   : > { %v1271_v8 = vand.u32 2147483647, %v3753_v4  ;;  %v3760_v9 = vadd.f32 %v3740_v52, %v1027_v7  ;;  %v1029_v10 = vpop.f32.mrb[7].mxu0  ;;  %3006 = vpow2.f32 %v1335_v3 }
 0x1f2   : > { %v1272_v12 = vand.u32 2147483647, %v3756_v6  ;;  %v3767_v13 = vadd.f32 %v3750_v1, %v1029_v10 }
 0x1f3   : > { %v1303_v14 = vsub.f32 0.0, %v1271_v8  ;;  %v1273_v15 = vand.u32 2147483647, %v3760_v9 }
 0x1f4   : > { %v1304_v16 = vsub.f32 0.0, %v1272_v12  ;;  %v1274_v17 = vand.u32 2147483647, %v3767_v13 }
 0x1f5   : > { %v1339_v18 = vmul.f32 1.442695, %v1303_v14  ;;  %v1305_v19 = vsub.f32 0.0, %v1273_v15 }
 0x1f6   : > { %v1341_v22 = vmul.f32 1.442695, %v1304_v16  ;;  %v1306_v23 = vsub.f32 0.0, %v1274_v17  ;;  %v1033_v24 = vpop.f32.mrb[8].mxu0 }
 0x1f7   : > { %v1343_v25 = vmul.f32 1.442695, %v1305_v19  ;;  %v3776_v26 = vadd.f32 %v3740_v52, %v1033_v24  ;;  %v1035_v27 = vpop.f32.mrb[9].mxu0  ;;  %3008 = vpow2.f32 %v1339_v18 }
 0x1f8   : > { %v3779_v28 = vadd.f32 %v3750_v1, %v1035_v27  ;;  %v1037_v29 = vpop.f32.mrb[10].mxu0  ;;  %3010 = vpow2.f32 %v1341_v22  ;;  %v1345_v35 = vmul.f32 1.442695, %v1306_v23 }
 0x1f9   : > { %v3781_v30 = vpop.eup %3004  ;;  %v1275_v31 = vand.u32 2147483647, %v3776_v26  ;;  %v1039_v32 = vpop.f32.mrb[11].mxu0  ;;  %3012 = vpow2.f32 %v1343_v25  ;;  %v3787_v38 = vadd.f32 %v3740_v52, %v1037_v29 }
 0x1fa   : > { %v1276_v37 = vand.u32 2147483647, %v3779_v28  ;;  %v1395_v40 = vadd.f32 1.0, %v3781_v30  ;;  %v3793_v45 = vadd.f32 %v3750_v1, %v1039_v32  ;;  %3014 = vpow2.f32 %v1345_v35 }
 0x1fb   : > { %v1307_v36 = vsub.f32 0.0, %v1275_v31  ;;  %v3789_v39 = vpop.eup %3006  ;;  %v1277_v48 = vand.u32 2147483647, %v3787_v38  ;;  %v1398_v57 = vmul.f32 -0.5, %v3781_v30  ;;  %v1401_v5 = vand.u32 2147483647, %v3781_v30 }
 0x1fc   : > { %v1308_v42 = vsub.f32 0.0, %v1276_v37  ;;  %v1413_v47 = vadd.f32 1.0, %v3789_v39  ;;  %3016 = vlog2.f32 %v1395_v40  ;;  %v1278_v53 = vand.u32 2147483647, %v3793_v45 }
 0x1fd   : > { %v1347_v41 = vmul.f32 1.442695, %v1307_v36  ;;  %v1309_v62 = vsub.f32 0.0, %v1277_v48  ;;  %v1399_v12 = vadd.f32 1.0, %v1398_v57  ;;  %v1416_v14 = vmul.f32 -0.5, %v3789_v39 }
 0x1fe   : > { %v1043_v46 = vpop.f32.mrb[12].mxu0  ;;  %v1349_v50 = vmul.f32 1.442695, %v1308_v42  ;;  %v1310_v10 = vsub.f32 0.0, %v1278_v53  ;;  %v1419_v23 = vand.u32 2147483647, %v3789_v39 }
 0x1ff   : > { %v1045_v49 = vpop.f32.mrb[13].mxu0  ;;  %3018 = vpow2.f32 %v1347_v41  ;;  %v1351_v20 = vmul.f32 1.442695, %v1309_v62  ;;  %vm3829_vm0 = vcmp.lt.f32.partialorder %v1401_v5, 0.0004427343  ;;  %v1400_v36 = vmul.f32 %v3781_v30, %v1399_v12 }
 0x200   : > { %v1047_v51 = vpop.f32.mrb[14].mxu0  ;;  %3020 = vpow2.f32 %v1333_v43  ;;  %v1353_v33 = vmul.f32 1.442695, %v1310_v10  ;;  %v1417_v37 = vadd.f32 1.0, %v1416_v14  ;;  %v3838_v40 = vadd.f32 %v3740_v52, %v1043_v46 }
 0x201   : > { %v3798_v55 = vpop.f32.mrb[15].mxu0  ;;  %v3800_v56 = vpop.eup %3008  ;;  %3022 = vlog2.f32 %v1413_v47  ;;  %vm3849_vm1 = vcmp.lt.f32.partialorder %v1419_v23, 0.0004427343  ;;  %v3856_v53 = vadd.f32 %v3750_v1, %v1045_v49  ;;  %v3860_v5 = vadd.f32 %v3740_v52, %v1047_v51 }
 0x202   : > { %v3803_v60 = vpop.eup %3010  ;;  %3024 = vpow2.f32 %v1349_v50  ;;  %v1431_v8 = vadd.f32 1.0, %v3800_v56  ;;  %v1434_v43 = vmul.f32 -0.5, %v3800_v56  ;;  %v1437_v62 = vand.u32 2147483647, %v3800_v56 }
 0x203   : > { %v3809_v3 = vpop.eup %3012  ;;  %3026 = vpow2.f32 %v1337_v59  ;;  %v1440_v15 = vadd.f32 1.0, %v3803_v60  ;;  %v1443_v44 = vmul.f32 -0.5, %v3803_v60  ;;  %v1418_v10 = vmul.f32 %v3789_v39, %v1417_v37 }
 0x204   : > { %v1449_v24 = vadd.f32 1.0, %v3809_v3  ;;  %v3827_v29 = vpop.eup %3014  ;;  %3028 = vlog2.f32 %v1431_v8  ;;  %v1452_v46 = vmul.f32 -0.5, %v3809_v3  ;;  %v1446_v12 = vand.u32 2147483647, %v3803_v60 }
 0x205   : > { %3030 = vlog2.f32 %v1440_v15  ;;  %v1458_v50 = vadd.f32 1.0, %v3827_v29  ;;  %v1279_v15 = vand.u32 2147483647, %v3838_v40  ;;  %v1444_v23 = vadd.f32 1.0, %v1443_v44 }
 0x206   : > { %v3816_v16 = vpop.f32.mrb[16].mxu0  ;;  %v3017_v35 = vpop.eup %3016  ;;  %3032 = vpow2.f32 %v1351_v20  ;;  %v1435_v20 = vadd.f32 1.0, %v1434_v43  ;;  %v1280_v39 = vand.u32 2147483647, %v3856_v53  ;;  %v1281_v43 = vand.u32 2147483647, %v3860_v5 }
 0x207   : > { %v3821_v22 = vpop.f32.mrb[17].mxu0  ;;  %3034 = vlog2.f32 %v1449_v24  ;;  %v1397_v59 = vmul.f32 0.6931472, %v3017_v35  ;;  %v1455_v24 = vand.u32 2147483647, %v3809_v3  ;;  %v1453_v35 = vadd.f32 1.0, %v1452_v46 }
 0x208   : > { %v3834_v34 = vpop.f32.mrb[18].mxu0  ;;  %3036 = vpow2.f32 %v1353_v33  ;;  %v1461_v33 = vmul.f32 -0.5, %v3827_v29  ;;  %v1311_v2 = vsub.f32 0.0, %v1279_v15  ;;  %vm3881_vm2 = vcmp.lt.f32.partialorder %v1437_v62, 0.0004427343 }
 0x209   : > { %v3840_v41 = vpop.f32.mrb[19].mxu0  ;;  %v3842_v42 = vpop.eup %3018  ;;  %3038 = vlog2.f32 %v1458_v50  ;;  %v1403_v37 = vsel %vm3829_vm0, %v1400_v36, %v1397_v59  ;;  %v1312_v15 = vsub.f32 0.0, %v1280_v39  ;;  %v3889_v36 = vmul.f32 %v3800_v56, %v1435_v20 }
 0x20a   : > { %v3847_v48 = vpop.eup %3020  ;;  %v1467_v14 = vadd.f32 1.0, %v3842_v42  ;;  %v1470_v46 = vmul.f32 -0.5, %v3842_v42  ;;  %v1355_v50 = vmul.f32 1.442695, %v1311_v2  ;;  %vm3891_vm3 = vcmp.lt.f32.partialorder %v1446_v12, 0.0004427343 }
 0x20b   : > { %v3023_v57 = vpop.eup %3022  ;;  %v1462_v59 = vadd.f32 1.0, %v1461_v33  ;;  %v1313_v62 = vsub.f32 0.0, %v1281_v43  ;;  %v1464_v2 = vand.u32 2147483647, %v3827_v29  ;;  %v1357_v39 = vmul.f32 1.442695, %v1312_v15 }
 0x20c   : > { %v3862_v8 = vpop.eup %3024  ;;  %v1415_v63 = vmul.f32 0.6931472, %v3023_v57  ;;  %3040 = vlog2.f32 %v1467_v14  ;;  %v3898_v14 = vmul.f32 %v3803_v60, %v1444_v23  ;;  %v3903_v18 = vadd.f32 %v3750_v1, %v3798_v55 }
 0x20d   : > { %v3872_v51 = vpop.eup %3026  ;;  %v1476_v47 = vadd.f32 1.0, %v3862_v8  ;;  %v3909_v12 = vadd.f32 %v1403_v37, %v1235_v61  ;;  %v3914_v33 = vmul.f32 %v3809_v3, %v1453_v35  ;;  %vm3916_vm4 = vcmp.lt.f32.partialorder %v1455_v24, 0.0004427343 }
 0x20e   : > { %v3868_v49 = vpop.f32.mrb[20].mxu0  ;;  %v3029_v31 = vpop.eup %3028  ;;  %v1421_v20 = vsel %vm3849_vm1, %v1418_v10, %v1415_v63  ;;  %v1471_v43 = vadd.f32 1.0, %v1470_v46  ;;  %v1473_v15 = vand.u32 2147483647, %v3842_v42  ;;  %v3926_v63 = vmul.f32 %v3827_v29, %v1462_v59 }
 0x20f   : > { %v3879_v44 = vpop.f32.mrb[21].mxu0  ;;  %v3031_v19 = vpop.eup %3030  ;;  %3042 = vlog2.f32 %v1476_v47  ;;  %v1433_v55 = vmul.f32 0.6931472, %v3029_v31  ;;  %v1479_v3 = vmul.f32 -0.5, %v3862_v8  ;;  %v1359_v30 = vmul.f32 1.442695, %v1313_v62 }
 0x210   : > { %v3886_v27 = vpop.f32.mrb[22].mxu0  ;;  %v3905_v56 = vpop.eup %3032  ;;  %3044 = vpow2.f32 %v1355_v50  ;;  %v1282_v10 = vand.u32 2147483647, %v3903_v18  ;;  %v1442_v47 = vmul.f32 0.6931472, %v3031_v19  ;;  %v3939_v46 = vadd.f32 %v3740_v52, %v3816_v16 }
 0x211   : > { %v3895_v25 = vpop.f32.mrb[23].mxu0  ;;  %v3035_v23 = vpop.eup %3034  ;;  %vm3932_vm5 = vcmp.lt.f32.partialorder %v1464_v2, 0.0004427343  ;;  %v1485_v37 = vadd.f32 1.0, %v3905_v56  ;;  %3046 = vpow2.f32 %v1357_v39  ;;  %v3945_v50 = vadd.f32 %v1421_v20, %v1237_v0 }
 0x212   : > { %v3923_v61 = vpop.eup %3036  ;;  %4795 = vst [vmem:[#allocation18_spill] sm:$0xff] %v3939_v46  ;;  %v1482_v31 = vand.u32 2147483647, %v3862_v8  ;;  %v3951_v59 = vadd.f32 %v3750_v1, %v3821_v22  ;;  %v1451_v39 = vmul.f32 0.6931472, %v3035_v23  ;;  %v1472_v16 = vmul.f32 %v3842_v42, %v1471_v43 }
 0x213   : > { %v1494_v19 = vadd.f32 1.0, %v3923_v61  ;;  %v3039_v2 = vpop.eup %3038  ;;  %vm3956_vm6 = vcmp.lt.f32.partialorder %v1473_v15, 0.0004427343  ;;  %v1314_v0 = vsub.f32 0.0, %v1282_v10  ;;  %v1439_v20 = vsel %vm3881_vm2, %v3889_v36, %v1433_v55 }
 0x214   : > { %4796 = vst [vmem:[#allocation19_spill] sm:$0xff] %v3951_v59  ;;  %v1480_v7 = vadd.f32 1.0, %v1479_v3  ;;  %3048 = vpow2.f32 %v1359_v30  ;;  %v1448_v42 = vsel %vm3891_vm3, %v3898_v14, %v1442_v47  ;;  %v1283_v43 = vand.u32 2147483647, %v3939_v46 }
 0x215   : > { %3050 = vlog2.f32 %v1485_v37  ;;  %v1361_v23 = vmul.f32 1.442695, %v1314_v0  ;;  %v1460_v15 = vmul.f32 0.6931472, %v3039_v2  ;;  %vm3969_vm7 = vcmp.lt.f32.partialorder %v1482_v31, 0.0004427343 }
 0x216   : > { %v3921_v54 = vpop.f32.mrb[24].mxu0  ;;  %v3041_v21 = vpop.eup %3040  ;;  %3052 = vlog2.f32 %v1494_v19  ;;  %v1284_v32 = vand.u32 2147483647, %v3951_v59  ;;  %v3976_v36 = vadd.f32 %v3740_v52, %v3834_v34  ;;  %v1457_v57 = vsel %vm3916_vm4, %v3914_v33, %v1451_v39 }
 0x217   : > { %v3930_v24 = vpop.f32.mrb[25].mxu0  ;;  %v1488_v14 = vmul.f32 -0.5, %v3905_v56  ;;  %3054 = vpow2.f32 %v1361_v23  ;;  %v1315_v55 = vsub.f32 0.0, %v1283_v43  ;;  %v1469_v47 = vmul.f32 0.6931472, %v3041_v21 }
 0x218   : > { %v3941_v29 = vpop.f32.mrb[26].mxu0  ;;  %v1481_v37 = vmul.f32 %v3862_v8, %v1480_v7  ;;  %v1316_v19 = vsub.f32 0.0, %v1284_v32  ;;  %v4801_v60 = vmax.f32 %v3753_v4, 0.0  ;;  %v1285_v0 = vand.u32 2147483647, %v3976_v36 }
 0x219   : > { %v3953_v62 = vpop.f32.mrb[27].mxu0  ;;  %v3043_v30 = vpop.eup %3042  ;;  %v1363_v39 = vmul.f32 1.442695, %v1315_v55  ;;  %v3997_v23 = vadd.f32 %v3750_v1, %v3840_v41  ;;  %v4802_v21 = vmax.f32 %v3756_v6, 0.0  ;;  %v4803_v8 = vmax.f32 %v3760_v9, 0.0 }
 0x21a   : > { %v3988_v34 = vpop.eup %3044  ;;  %v3992_v33 = vadd.f32 %v1439_v20, %v4801_v60  ;;  %v1466_v4 = vsel %vm3932_vm5, %v3926_v63, %v1460_v15  ;;  %v1365_v20 = vmul.f32 1.442695, %v1316_v19  ;;  %v1478_v60 = vmul.f32 0.6931472, %v3043_v30 }
 0x21b   : > { %v4001_v7 = vadd.f32 %v1448_v42, %v4802_v21  ;;  %v4005_v43 = vadd.f32 %v1457_v57, %v4803_v8  ;;  %v4012_v55 = vpop.eup %3046  ;;  %v1489_v41 = vadd.f32 1.0, %v1488_v14  ;;  %v1491_v31 = vand.u32 2147483647, %v3905_v56 }
 0x21c   : > { %3056 = vpow2.f32 %v1363_v39  ;;  %v1475_v9 = vsel %vm3956_vm6, %v1472_v16, %v1469_v47  ;;  %v1497_v42 = vmul.f32 -0.5, %v3923_v61  ;;  %v1503_v35 = vadd.f32 1.0, %v3988_v34 }
 0x21d   : > { %v1317_v63 = vsub.f32 0.0, %v1285_v0  ;;  %v1500_v15 = vand.u32 2147483647, %v3923_v61  ;;  %3058 = vpow2.f32 %v1365_v20  ;;  %v1286_v57 = vand.u32 2147483647, %v3997_v23 }
 0x21e   : > { %v3982_v3 = vpop.f32.mrb[28].mxu0  ;;  %v4025_v14 = vadd.f32 %v3740_v52, %v3868_v49  ;;  %v4027_v30 = vpop.eup %3048  ;;  %v4805_v19 = vmax.f32 %v3767_v13, 0.0  ;;  %v1512_v16 = vadd.f32 1.0, %v4012_v55  ;;  %v4806_v21 = vmax.f32 %v3776_v26, 0.0 }
 0x21f   : > { %v3986_v2 = vpop.f32.mrb[29].mxu0  ;;  %v1367_v39 = vmul.f32 1.442695, %v1317_v63  ;;  %v3051_v0 = vpop.eup %3050  ;;  %v1484_v49 = vsel %vm3969_vm7, %v1481_v37, %v1478_v60  ;;  %v1490_v20 = vmul.f32 %v3905_v56, %v1489_v41  ;;  %vm4042_vm8 = vcmp.lt.f32.partialorder %v1491_v31, 0.0004427343 }
 0x220   : > { %v4010_v32 = vpop.f32.mrb[30].mxu0  ;;  %4804 = vst [vmem:[#allocation20_spill] sm:$0xff] %v4025_v14  ;;  %v4031_v17 = vadd.f32 %v1466_v4, %v4805_v19  ;;  %v4037_v8 = vadd.f32 %v1475_v9, %v4806_v21  ;;  %v3053_v13 = vpop.eup %3052  ;;  %v1498_v4 = vadd.f32 1.0, %v1497_v42  ;;  %3060 = vlog2.f32 %v1503_v35 }
 0x221   : > { %v4015_v6 = vpop.f32.mrb[31].mxu0  ;;  %v1521_v19 = vadd.f32 1.0, %v4027_v30  ;;  %v1318_v63 = vsub.f32 0.0, %v1286_v57  ;;  %v4047_v47 = vpop.eup %3054  ;;  %vm4049_vm9 = vcmp.lt.f32.partialorder %v1500_v15, 0.0004427343  ;;  %v1506_v10 = vmul.f32 -0.5, %v3988_v34 }
 0x222   : > { %3062 = vpow2.f32 %v1367_v39  ;;  %v1287_v56 = vand.u32 2147483647, %v4025_v14  ;;  %v4811_v37 = vmax.f32 %v3779_v28, 0.0  ;;  %v1515_v60 = vmul.f32 -0.5, %v4012_v55 }
 0x223   : > { %3064 = vlog2.f32 %v1512_v16  ;;  %v1487_v9 = vmul.f32 0.6931472, %v3051_v0  ;;  %v1524_v42 = vmul.f32 -0.5, %v4027_v30  ;;  %v1530_v35 = vadd.f32 1.0, %v4047_v47 }
 0x224   : > { %v4057_v31 = vadd.f32 %v1484_v49, %v4811_v37  ;;  %v1369_v15 = vmul.f32 1.442695, %v1318_v63  ;;  %v1496_v57 = vmul.f32 0.6931472, %v3053_v13  ;;  %v1499_v39 = vmul.f32 %v3923_v61, %v1498_v4 }
 0x225   : > { %3066 = vlog2.f32 %v1521_v19  ;;  %v1507_v49 = vadd.f32 1.0, %v1506_v10  ;;  %v1509_v16 = vand.u32 2147483647, %v3988_v34  ;;  %v1319_v41 = vsub.f32 0.0, %v1287_v56 }
 0x226   : > { %v4065_v28 = vpop.eup %3056  ;;  %v1518_v0 = vand.u32 2147483647, %v4012_v55  ;;  %3068 = vpow2.f32 %v1369_v15  ;;  %v4073_v13 = vadd.f32 %v3750_v1, %v3879_v44  ;;  %v1493_v4 = vsel %vm4042_vm8, %v1490_v20, %v1487_v9 }
 0x227   : > { %v4075_v61 = vpop.eup %3058  ;;  %v1516_v19 = vadd.f32 1.0, %v1515_v60  ;;  %v1525_v63 = vadd.f32 1.0, %v1524_v42  ;;  %3070 = vlog2.f32 %v1530_v35  ;;  %v1502_v10 = vsel %vm4049_vm9, %v1499_v39, %v1496_v57 }
 0x228   : > { %4812 = vst [vmem:[#allocation21_spill] sm:$0xff] %v4073_v13  ;;  %v1527_v56 = vand.u32 2147483647, %v4027_v30  ;;  %v1533_v21 = vmul.f32 -0.5, %v4047_v47  ;;  %v1539_v15 = vadd.f32 1.0, %v4065_v28  ;;  %v1508_v44 = vmul.f32 %v3988_v34, %v1507_v49 }
 0x229   : > { %vm4085_vm10 = vcmp.lt.f32.partialorder %v1509_v16, 0.0004427343  ;;  %v1371_v22 = vmul.f32 1.442695, %v1319_v41  ;;  %v4091_v20 = vadd.f32 %v3740_v52, %v3886_v27  ;;  %v4815_v26 = vmax.f32 %v3787_v38, 0.0 }
 0x22a   : > { %v3061_v60 = vpop.eup %3060  ;;  %vm4097_vm11 = vcmp.lt.f32.partialorder %v1518_v0, 0.0004427343  ;;  %v1548_v34 = vadd.f32 1.0, %v4075_v61  ;;  %v1288_v57 = vand.u32 2147483647, %v4073_v13  ;;  %v4818_v27 = vmax.f32 %v3793_v45, 0.0 }
 0x22b   : > { %v4095_v9 = vadd.f32 %v1493_v4, %v4815_v26  ;;  %v1517_v38 = vmul.f32 %v4012_v55, %v1516_v19  ;;  %v1526_v49 = vmul.f32 %v4027_v30, %v1525_v63  ;;  %v1536_v16 = vand.u32 2147483647, %v4047_v47 }
 0x22c   : > { %v4104_v41 = vpop.eup %3062  ;;  %v4108_v39 = vadd.f32 %v1502_v10, %v4818_v27  ;;  %vm4113_vm12 = vcmp.lt.f32.partialorder %v1527_v56, 0.0004427343  ;;  %v1534_v26 = vadd.f32 1.0, %v1533_v21  ;;  %3072 = vlog2.f32 %v1539_v15 }
 0x22d   : > { %v3065_v0 = vpop.eup %3064  ;;  %v1542_v35 = vmul.f32 -0.5, %v4065_v28  ;;  %v1320_v58 = vsub.f32 0.0, %v1288_v57  ;;  %v1505_v14 = vmul.f32 0.6931472, %v3061_v60  ;;  %3074 = vpow2.f32 %v1371_v22 }
 0x22e   : > { %v1289_v45 = vand.u32 2147483647, %v4091_v20  ;;  %v4121_v55 = vadd.f32 %v3750_v1, %v3895_v25  ;;  %3076 = vlog2.f32 %v1548_v34  ;;  %v1551_v19 = vmul.f32 -0.5, %v4075_v61 }
 0x22f   : > { %v3067_v30 = vpop.eup %3066  ;;  %v1557_v63 = vadd.f32 1.0, %v4104_v41  ;;  %v1373_v10 = vmul.f32 1.442695, %v1320_v58  ;;  %v1514_v21 = vmul.f32 0.6931472, %v3065_v0  ;;  %v1543_v57 = vadd.f32 1.0, %v1542_v35 }
 0x230   : > { %vm4125_vm13 = vcmp.lt.f32.partialorder %v1536_v16, 0.0004427343  ;;  %v1321_v22 = vsub.f32 0.0, %v1289_v45  ;;  %v4130_v60 = vpop.eup %3068  ;;  %v1545_v25 = vand.u32 2147483647, %v4065_v28  ;;  %v1560_v34 = vmul.f32 -0.5, %v4104_v41 }
 0x231   : > { %3078 = vpow2.f32 %v1373_v10  ;;  %v3071_v27 = vpop.eup %3070  ;;  %v1511_v58 = vsel %vm4085_vm10, %v1508_v44, %v1505_v14  ;;  %v1523_v0 = vmul.f32 0.6931472, %v3067_v30  ;;  %v1290_v59 = vand.u32 2147483647, %v4121_v55  ;;  %v4871_v42 = vld [vmem:[#allocation21_spill] sm:$0xff] }
 0x232   : > { %v1375_v16 = vmul.f32 1.442695, %v1321_v22  ;;  %v1552_v46 = vadd.f32 1.0, %v1551_v19  ;;  %v1554_v15 = vand.u32 2147483647, %v4075_v61  ;;  %3080 = vlog2.f32 %v1557_v63 }
 0x233   : > { %v1404_v45 = vadd.f32 1.0, %v3847_v48  ;;  %v1520_v35 = vsel %vm4097_vm11, %v1517_v38, %v1514_v21  ;;  %v1566_v13 = vadd.f32 1.0, %v4130_v60  ;;  %v1322_v10 = vsub.f32 0.0, %v1290_v59 }
 0x234   : > { %3082 = vpow2.f32 %v1375_v16  ;;  %v4823_v37 = vmax.f32 %v3838_v40, 0.0  ;;  %v1532_v44 = vmul.f32 0.6931472, %v3071_v27  ;;  %v1535_v30 = vmul.f32 %v4047_v47, %v1534_v26 }
 0x235   : > { %v1561_v19 = vadd.f32 1.0, %v1560_v34  ;;  %v1529_v63 = vsel %vm4113_vm12, %v1526_v49, %v1523_v0  ;;  %v4150_v22 = vmul.f32 %v4065_v28, %v1543_v57  ;;  %vm4152_vm14 = vcmp.lt.f32.partialorder %v1545_v25, 0.0004427343 }
 0x236   : > { %v4144_v14 = vadd.f32 %v1511_v58, %v4823_v37  ;;  %v1569_v59 = vmul.f32 -0.5, %v4130_v60  ;;  %v3073_v38 = vpop.eup %3072  ;;  %v4827_v40 = vmax.f32 %v3856_v53, 0.0  ;;  %vm4161_vm15 = vcmp.lt.f32.partialorder %v1554_v15, 0.0004427343 }
 0x237   : > { %v1563_v49 = vand.u32 2147483647, %v4104_v41  ;;  %v1377_v4 = vmul.f32 1.442695, %v1322_v10  ;;  %3084 = vlog2.f32 %v1404_v45  ;;  %v4166_v28 = vpop.eup %3074  ;;  %v4169_v26 = vmul.f32 %v4075_v61, %v1552_v46 }
 0x238   : > { %4824 = vst [vmem:[#allocation22_spill] sm:$0xff] %v4144_v14  ;;  %v4159_v21 = vadd.f32 %v1520_v35, %v4827_v40  ;;  %3086 = vlog2.f32 %v1566_v13  ;;  %v1407_v53 = vmul.f32 -0.5, %v3847_v48  ;;  %v3077_v25 = vpop.eup %3076  ;;  %v4830_v15 = vmax.f32 %v3860_v5, 0.0 }
 0x239   : > { %v1538_v27 = vsel %vm4125_vm13, %v1535_v30, %v1532_v44  ;;  %v4180_v58 = vmul.f32 %v4104_v41, %v1561_v19  ;;  %3088 = vpow2.f32 %v1377_v4  ;;  %v4182_v0 = vmul.f32 0.6931472, %v3073_v38 }
 0x23a   : > { %v4175_v34 = vadd.f32 %v1529_v63, %v4830_v15  ;;  %v1570_v46 = vadd.f32 1.0, %v1569_v59  ;;  %v1572_v13 = vand.u32 2147483647, %v4130_v60  ;;  %v1422_v61 = vadd.f32 1.0, %v3872_v51 }
 0x23b   : > { %v4186_v16 = vpop.eup %3078  ;;  %vm4188_vm0 = vcmp.lt.f32.partialorder %v1563_v49, 0.0004427343  ;;  %v1575_v56 = vadd.f32 1.0, %v4166_v28  ;;  %v1578_v45 = vmul.f32 -0.5, %v4166_v28  ;;  %v4834_v10 = vmax.f32 %v3903_v18, 0.0 }
 0x23c   : > { %4831 = vst [vmem:[#allocation23_spill] sm:$0xff] %v4175_v34  ;;  %v4201_v44 = vmul.f32 0.6931472, %v3077_v25  ;;  %v1408_v30 = vadd.f32 1.0, %v1407_v53  ;;  %v4205_v19 = vadd.f32 %v3740_v52, %v3921_v54  ;;  %v3081_v63 = vpop.eup %3080  ;;  %v1584_v59 = vadd.f32 1.0, %v4186_v16 }
 0x23d   : > { %v4199_v37 = vadd.f32 %v1538_v27, %v4834_v10  ;;  %v1410_v38 = vand.u32 2147483647, %v3847_v48  ;;  %3090 = vlog2.f32 %v1422_v61  ;;  %v1425_v40 = vmul.f32 -0.5, %v3872_v51 }
 0x23e   : > { %4835 = vst [vmem:[#allocation24_spill] sm:$0xff] %v4201_v44  ;;  %4836 = vst [vmem:[#allocation25_spill] sm:$0xff] %v4205_v19  ;;  %v4210_v49 = vpop.eup %3082  ;;  %v4217_v4 = vmul.f32 %v4130_v60, %v1570_v46  ;;  %v1581_v54 = vand.u32 2147483647, %v4166_v28  ;;  %v4222_v53 = vadd.f32 %v3750_v1, %v3930_v24  ;;  %3092 = vlog2.f32 %v1575_v56 }
 0x23f   : > { %v1579_v25 = vadd.f32 1.0, %v1578_v45  ;;  %v1593_v15 = vadd.f32 1.0, %v4210_v49  ;;  %v1428_v27 = vand.u32 2147483647, %v3872_v51  ;;  %v4230_v10 = vmul.f32 0.6931472, %v3081_v63 }
 0x240   : > { %4837 = vst [vmem:[#allocation26_spill] sm:$0xff] %v4222_v53  ;;  %v1409_v60 = vmul.f32 %v3847_v48, %v1408_v30  ;;  %v1291_v46 = vand.u32 2147483647, %v4205_v19  ;;  %3094 = vlog2.f32 %v1584_v59  ;;  %v1587_v24 = vmul.f32 -0.5, %v4186_v16  ;;  %v4873_v47 = vld [vmem:[#allocation22_spill] sm:$0xff] }
 0x241   : > { %v3085_v18 = vpop.eup %3084  ;;  %vm4235_vm1 = vcmp.lt.f32.partialorder %v1410_v38, 0.0004427343  ;;  %v1426_v45 = vadd.f32 1.0, %v1425_v40  ;;  %3096 = vlog2.f32 %v1593_v15  ;;  %v1596_v57 = vmul.f32 -0.5, %v4210_v49  ;;  %v4847_v38 = vld [vmem:[#allocation17_spill] sm:$0xff] }
 0x242   : > { %v3087_v41 = vpop.eup %3086  ;;  %v1323_v61 = vsub.f32 0.0, %v1291_v46  ;;  %v1292_v63 = vand.u32 2147483647, %v4222_v53  ;;  %vm4243_vm2 = vcmp.lt.f32.partialorder %v1572_v13, 0.0004427343  ;;  %v4248_v30 = vmul.f32 %v4166_v28, %v1579_v25 }
 0x243   : > { %v4241_v35 = vpop.eup %3088  ;;  %vm4251_vm3 = vcmp.lt.f32.partialorder %v1428_v27, 0.0004427343  ;;  %v4257_v40 = vadd.f32 %v3740_v52, %v3941_v29  ;;  %v1406_v46 = vmul.f32 0.6931472, %v3085_v18  ;;  %v4264_v25 = vmul.f32 0.6931472, %v3087_v41 }
 0x244   : > { %v1602_v15 = vadd.f32 1.0, %v4241_v35  ;;  %v1379_v28 = vmul.f32 1.442695, %v1323_v61  ;;  %v1605_v27 = vmul.f32 -0.5, %v4241_v35  ;;  %v1324_v59 = vsub.f32 0.0, %v1292_v63 }
 0x245   : > { %v1293_v53 = vand.u32 2147483647, %v4257_v40  ;;  %v1588_v19 = vadd.f32 1.0, %v1587_v24  ;;  %v1597_v34 = vadd.f32 1.0, %v1596_v57  ;;  %v1427_v29 = vmul.f32 %v3872_v51, %v1426_v45 }
 0x246   : > { %3098 = vlog2.f32 %v1602_v15  ;;  %v1381_v44 = vmul.f32 1.442695, %v1324_v59  ;;  %v4271_v18 = vadd.f32 %v3750_v1, %v3953_v62  ;;  %v1412_v41 = vsel %vm4235_vm1, %v1409_v60, %v1406_v46 }
 0x247   : > { %v3091_v14 = vpop.eup %3090  ;;  %3100 = vpow2.f32 %v1379_v28  ;;  %v1325_v13 = vsub.f32 0.0, %v1293_v53  ;;  %v1718_v63 = vpack.c.bf16 %v4031_v17, %v4001_v7  ;;  %v1717_v57 = vpack.c.bf16 %v4005_v43, %v3992_v33 }
 0x248   : > { %v1424_v61 = vmul.f32 0.6931472, %v3091_v14  ;;  %v3093_v24 = vpop.eup %3092  ;;  %v1599_v51 = vand.u32 2147483647, %v4210_v49  ;;  %v1606_v45 = vadd.f32 1.0, %v1605_v27  ;;  %3102 = vpow2.f32 %v1381_v44 }
 0x249   : > { %v1383_v53 = vmul.f32 1.442695, %v1325_v13  ;;  %v1294_v59 = vand.u32 2147483647, %v4271_v18  ;;  %v4285_v14 = vadd.f32 %v3740_v52, %v3982_v3  ;;  %v4289_v7 = vadd.f32 %v3750_v1, %v3986_v2 }
 0x24a   : > { %v1430_v62 = vsel %vm4251_vm3, %v1427_v29, %v1424_v61  ;;  %v3095_v17 = vpop.eup %3094  ;;  %vm4291_vm4 = vcmp.lt.f32.partialorder %v1581_v54, 0.0004427343  ;;  %v4846_v44 = vmax.f32 %v3763_v11, 0.0  ;;  %v4848_v13 = vmax.f32 %v4847_v38, 0.0 }
 0x24b   : > { %3104 = vpow2.f32 %v1383_v53  ;;  %v4301_v3 = vadd.f32 %v3740_v52, %v4010_v32  ;;  %v3097_v46 = vpop.eup %3096  ;;  %v1574_v2 = vsel %vm4243_vm2, %v4217_v4, %v4264_v25  ;;  %v1577_v54 = vmul.f32 0.6931472, %v3093_v24 }
 0x24c   : > { %v1684_v56 = vadd.f32 %v1412_v41, %v4846_v44  ;;  %v1686_v15 = vadd.f32 %v1430_v62, %v4848_v13  ;;  %v1598_v28 = vmul.f32 %v4210_v49, %v1597_v34  ;;  %v1326_v27 = vsub.f32 0.0, %v1294_v59 }
 0x24d   : > { %v1608_v11 = vand.u32 2147483647, %v4241_v35  ;;  %v1295_v41 = vand.u32 2147483647, %v4285_v14  ;;  %v1296_v61 = vand.u32 2147483647, %v4289_v7  ;;  %v1607_v52 = vmul.f32 %v4241_v35, %v1606_v45 }
 0x24e   : > { %v1716_v29 = vpack.c.bf16 %v1686_v15, %v1684_v56  ;;  %v1586_v53 = vmul.f32 0.6931472, %v3095_v17  ;;  %v1385_v32 = vmul.f32 1.442695, %v1326_v27  ;;  %v1297_v62 = vand.u32 2147483647, %v4301_v3 }
 0x24f   : > { %v1595_v44 = vmul.f32 0.6931472, %v3097_v46  ;;  %v1327_v4 = vsub.f32 0.0, %v1295_v41  ;;  %v1328_v48 = vsub.f32 0.0, %v1296_v61  ;;  %v4315_v34 = vadd.f32 %v3750_v1, %v4015_v6 }
 0x250   : > { %1898 = vmatprep.mubr.bf16.mxu1 %v1716_v29  ;;  %v3099_v49 = vpop.eup %3098  ;;  %v4849_v25 = vpack.c.bf16 %v3945_v50, %v3909_v12  ;;  %3106 = vpow2.f32 %v1385_v32  ;;  %v1329_v24 = vsub.f32 0.0, %v1297_v62  ;;  %v1720_v35 = vpack.c.bf16 %v4108_v39, %v4057_v31 }
 0x251   : > { %v1719_v45 = vpack.c.bf16 %v4095_v9, %v4037_v8  ;;  %v4324_v59 = vpop.eup %3100  ;;  %v1604_v17 = vmul.f32 0.6931472, %v3099_v49  ;;  %v1387_v56 = vmul.f32 1.442695, %v1327_v4  ;;  %v1389_v1 = vmul.f32 1.442695, %v1328_v48 }
 0x252   : > { %1899 = vmatmul.mubr.bf16.vlgmr.msra.gmra.mrb[0].mxu1 %v4849_v25  ;;  %v1722_v6 = vpack.c.bf16 %v4199_v37, %v4159_v21  ;;  %v1589_v12 = vmul.f32 %v4186_v16, %v1588_v19  ;;  %vm4329_vm5 = vcmp.lt.f32.partialorder %v1599_v51, 0.0004427343  ;;  %vm4333_vm6 = vcmp.lt.f32.partialorder %v1608_v11, 0.0004427343  ;;  %v4338_v38 = vpop.eup %3102 }
 0x253   : > { %1906 = vmatprep.mubr.bf16.mxu1 %v1718_v63  ;;  %v1611_v39 = vadd.f32 1.0, %v4324_v59  ;;  %v1601_v63 = vsel %vm4329_vm5, %v1598_v28, %v1595_v44  ;;  %v1610_v21 = vsel %vm4333_vm6, %v1607_v52, %v1604_v17  ;;  %3108 = vpow2.f32 %v1387_v56  ;;  %v4869_v44 = vld [vmem:[#allocation20_spill] sm:$0xff] }
 0x254   : > { %v1298_v37 = vand.u32 2147483647, %v4315_v34  ;;  %v4854_v19 = vmax.f32 %v3997_v23, 0.0  ;;  %v1583_v13 = vsel %vm4291_vm4, %v4248_v30, %v1577_v54  ;;  %v4855_v15 = vand.u32 2147483647, %v4186_v16 }
 0x255   : > { %3110 = vlog2.f32 %v1611_v39  ;;  %v3105_v28 = vpop.eup %3104  ;;  %v1620_v11 = vadd.f32 1.0, %v4338_v38  ;;  %v1391_v23 = vmul.f32 1.442695, %v1329_v24  ;;  %v4859_v16 = vsel %vm4188_vm0, %v4180_v58, %v4230_v10  ;;  %v4865_v58 = vld [vmem:[#allocation19_spill] sm:$0xff] }
 0x256   : > { %v4347_v51 = vadd.f32 %v1574_v2, %v4854_v19  ;;  %vm4354_vm7 = vcmp.lt.f32.partialorder %v4855_v15, 0.0004427343  ;;  %3112 = vpow2.f32 %v1389_v1  ;;  %v4858_v2 = vmax.f32 %v3976_v36, 0.0 }
 0x257   : > { %v1592_v27 = vsel %vm4354_vm7, %v1589_v12, %v1586_v53  ;;  %v4860_v60 = vmax.f32 %v4091_v20, 0.0  ;;  %v4861_v29 = vmax.f32 %v4121_v55, 0.0  ;;  %v1629_v61 = vadd.f32 1.0, %v3105_v28  ;;  %v4862_v53 = vld [vmem:[#allocation18_spill] sm:$0xff]  ;;  %v4867_v20 = vld [vmem:[#allocation24_spill] sm:$0xff] }
 0x258   : > { %v4368_v30 = vadd.f32 %v4859_v16, %v4858_v2  ;;  %v4863_v52 = vmax.f32 %v4862_v53, 0.0  ;;  %v4864_v36 = vsel %vm4152_vm14, %v4150_v22, %v4182_v0  ;;  %v4866_v10 = vmax.f32 %v4865_v58, 0.0  ;;  %v4874_v0 = vld [vmem:[#allocation23_spill] sm:$0xff] }
 0x259   : > { %v4372_v54 = vadd.f32 %v1601_v63, %v4860_v60  ;;  %v4376_v41 = vadd.f32 %v1610_v21, %v4861_v29  ;;  %v4868_v32 = vsel %vm4161_vm15, %v4169_v26, %v4867_v20  ;;  %3114 = vlog2.f32 %v1620_v11  ;;  %v4875_v11 = vld [vmem:[#allocation25_spill] sm:$0xff] }
 0x25a   : > { %v4385_v5 = vadd.f32 %v4864_v36, %v4863_v52  ;;  %v4394_v55 = vadd.f32 %v4868_v32, %v4866_v10  ;;  %v1330_v62 = vsub.f32 0.0, %v1298_v37  ;;  %v4870_v4 = vmax.f32 %v4869_v44, 0.0  ;;  %1907 = vmatmul.mubr.bf16.gmra.mrb[4].mxu1 %v1717_v57  ;;  %v3107_v56 = vpop.eup %3106  ;;  %v4878_v44 = vld [vmem:[#allocation26_spill] sm:$0xff] }
 0x25b   : > { %v4872_v49 = vmax.f32 %v4871_v42, 0.0  ;;  %3116 = vlog2.f32 %v1629_v61  ;;  %v1721_v26 = vpack.c.bf16 %v4874_v0, %v4873_v47  ;;  %v1614_v25 = vmul.f32 -0.5, %v4324_v59  ;;  %1914 = vmatprep.mubr.bf16.mxu1 %v1720_v35 }
 0x25c   : > { %v4398_v48 = vadd.f32 %v1583_v13, %v4870_v4  ;;  %3118 = vpow2.f32 %v1391_v23  ;;  %v1393_v24 = vmul.f32 1.442695, %v1330_v62  ;;  %v1724_v17 = vpack.c.bf16 %v4347_v51, %v4394_v55 }
 0x25d   : > { %v4402_v22 = vadd.f32 %v1592_v27, %v4872_v49  ;;  %v1723_v1 = vpack.c.bf16 %v4368_v30, %v4385_v5  ;;  %v1632_v43 = vmul.f32 -0.5, %v3105_v28  ;;  %v1638_v57 = vadd.f32 1.0, %v3107_v56  ;;  %v4418_v50 = vpop.eup %3108 }
 0x25e   : > { %v1725_v33 = vpack.c.bf16 %v4372_v54, %v4398_v48  ;;  %3120 = vpow2.f32 %v1393_v24  ;;  %v1615_v31 = vadd.f32 1.0, %v1614_v25  ;;  %v1617_v39 = vand.u32 2147483647, %v4324_v59  ;;  %v3001_v54 = vld [vmem:[#allocation9 + $0x28] sm:$0xff]   ;;  %v3002_v48 = vld [vmem:[#allocation9 + $0x30] sm:$0xff]  }
 0x25f   : > { %v1726_v12 = vpack.c.bf16 %v4376_v41, %v4402_v22  ;;  %3122 = vlog2.f32 %v1638_v57  ;;  %v3111_v35 = vpop.eup %3110  ;;  %v1623_v63 = vmul.f32 -0.5, %v4338_v38  ;;  %v1647_v21 = vadd.f32 1.0, %v4418_v50 }
 0x260   : > { %v4423_v37 = vpop.eup %3112  ;;  %v1613_v19 = vmul.f32 0.6931472, %v3111_v35  ;;  %v1633_v51 = vadd.f32 1.0, %v1632_v43  ;;  %v1635_v13 = vand.u32 2147483647, %v3105_v28  ;;  %v1641_v15 = vmul.f32 -0.5, %v3107_v56 }
 0x261   : > { %3124 = vlog2.f32 %v1647_v21  ;;  %v1656_v46 = vadd.f32 1.0, %v4423_v37  ;;  %v1259_v23 = vmax.f32 %v4875_v11, 0.0  ;;  %v1616_v2 = vmul.f32 %v4324_v59, %v1615_v31 }
 0x262   : > { %1915 = vmatmul.mubr.bf16.gmra.mrb[8].mxu1 %v1719_v45  ;;  %vm4431_vm8 = vcmp.lt.f32.partialorder %v1617_v39, 0.0004427343  ;;  %v1624_v29 = vadd.f32 1.0, %v1623_v63  ;;  %v1626_v61 = vand.u32 2147483647, %v4338_v38  ;;  %v1261_v53 = vmax.f32 %v4257_v40, 0.0 }
 0x263   : > { %v3115_v27 = vpop.eup %3114  ;;  %1922 = vmatprep.mubr.bf16.mxu1 %v1722_v6  ;;  %v1619_v8 = vsel %vm4431_vm8, %v1616_v2, %v1613_v19  ;;  %v1634_v45 = vmul.f32 %v3105_v28, %v1633_v51  ;;  %3126 = vlog2.f32 %v1656_v46  ;;  %vm1636_vm9 = vcmp.lt.f32.partialorder %v1635_v13, 0.0004427343 }
 0x264   : > { %v1622_v36 = vmul.f32 0.6931472, %v3115_v27  ;;  %v1642_v59 = vadd.f32 1.0, %v1641_v15  ;;  %v1644_v20 = vand.u32 2147483647, %v3107_v56  ;;  %v4439_v32 = vadd.f32 %v1619_v8, %v1259_v23 }
 0x265   : > { %v3117_v16 = vpop.eup %3116  ;;  %v1625_v55 = vmul.f32 %v4338_v38, %v1624_v29  ;;  %v1260_v4 = vmax.f32 %v4878_v44, 0.0  ;;  %vm4445_vm10 = vcmp.lt.f32.partialorder %v1626_v61, 0.0004427343  ;;  %v1650_v42 = vmul.f32 -0.5, %v4418_v50 }
 0x266   : > { %v3119_v52 = vpop.eup %3118  ;;  %v1631_v9 = vmul.f32 0.6931472, %v3117_v16  ;;  %v1643_v25 = vmul.f32 %v3107_v56, %v1642_v59  ;;  %v1262_v24 = vmax.f32 %v4271_v18, 0.0  ;;  %vm1645_vm11 = vcmp.lt.f32.partialorder %v1644_v20, 0.0004427343  ;;  %v3000_v20 = vld [vmem:[#allocation9 + $0x20] sm:$0xff]  }
 0x267   : > { %v1665_v6 = vadd.f32 1.0, %v3119_v52  ;;  %v1628_v47 = vsel %vm4445_vm10, %v1625_v55, %v1622_v36  ;;  %v1668_v43 = vmul.f32 -0.5, %v3119_v52  ;;  %v1659_v35 = vmul.f32 -0.5, %v4423_v37  ;;  %v4482_v55 = vld [vmem:[%s4750_s4 + $0x2] ss:$0 sm:$0xff] }
 0x268   : > { %v3121_v58 = vpop.eup %3120  ;;  %v1637_v10 = vsel %vm1636_vm9, %v1634_v45, %v1631_v9  ;;  %v1708_v39 = vadd.f32 %v1628_v47, %v1260_v4  ;;  %v1651_v21 = vadd.f32 1.0, %v1650_v42  ;;  %v1653_v56 = vand.u32 2147483647, %v4418_v50 }
 0x269   : > { %v4442_v62 = vadd.f32 %v1637_v10, %v1261_v53  ;;  %3128 = vlog2.f32 %v1665_v6  ;;  %v3123_v40 = vpop.eup %3122  ;;  %v1674_v49 = vadd.f32 1.0, %v3121_v58  ;;  %v1677_v19 = vmul.f32 -0.5, %v3121_v58  ;;  %v2999_v10 = vld [vmem:[#allocation9 + $0x18] sm:$0xff]  }
 0x26a   : > { %v1640_v0 = vmul.f32 0.6931472, %v3123_v40  ;;  %1923 = vmatmul.mubr.bf16.gmra.mrb[12].mxu1 %v1721_v26  ;;  %v1669_v13 = vadd.f32 1.0, %v1668_v43  ;;  %v1660_v46 = vadd.f32 1.0, %v1659_v35  ;;  %v1671_v18 = vand.u32 2147483647, %v3119_v52 }
 0x26b   : > { %v1727_v38 = vpack.c.bf16 %v4442_v62, %v4439_v32  ;;  %3130 = vlog2.f32 %v1674_v49  ;;  %1930 = vmatprep.mubr.bf16.mxu1 %v1724_v17  ;;  %v3125_v57 = vpop.eup %3124  ;;  %v1652_v27 = vmul.f32 %v4418_v50, %v1651_v21  ;;  %v1662_v17 = vand.u32 2147483647, %v4423_v37 }
 0x26c   : > { %v1646_v31 = vsel %vm1645_vm11, %v1643_v25, %v1640_v0  ;;  %v1649_v51 = vmul.f32 0.6931472, %v3125_v57  ;;  %v1678_v11 = vadd.f32 1.0, %v1677_v19  ;;  %vm4459_vm12 = vcmp.lt.f32.partialorder %v1653_v56, 0.0004427343 }
 0x26d   : > { %v1710_v63 = vadd.f32 %v1646_v31, %v1262_v24  ;;  %v3127_v26 = vpop.eup %3126  ;;  %v1670_v61 = vmul.f32 %v3119_v52, %v1669_v13  ;;  %v1680_v53 = vand.u32 2147483647, %v3121_v58  ;;  %v1263_v50 = vmax.f32 %v4285_v14, 0.0 }
 0x26e   : > { %v1658_v16 = vmul.f32 0.6931472, %v3127_v26  ;;  %v1655_v60 = vsel %vm4459_vm12, %v1652_v27, %v1649_v51  ;;  %v1661_v8 = vmul.f32 %v4423_v37, %v1660_v46  ;;  %v1265_v9 = vmax.f32 %v4301_v3, 0.0 }
 0x26f   : > { %v1728_v15 = vpack.c.bf16 %v1710_v63, %v1708_v39  ;;  %vm1672_vm13 = vcmp.lt.f32.partialorder %v1671_v18, 0.0004427343  ;;  %vm1663_vm14 = vcmp.lt.f32.partialorder %v1662_v17, 0.0004427343  ;;  %v1679_v5 = vmul.f32 %v3121_v58, %v1678_v11  ;;  %v2996_v58 = vld [vmem:[#allocation9] sm:$0xff]  }
 0x270   : > { %v1664_v36 = vsel %vm1663_vm14, %v1661_v8, %v1658_v16  ;;  %v1264_v6 = vmax.f32 %v4289_v7, 0.0  ;;  %v1266_v41 = vmax.f32 %v4315_v34, 0.0  ;;  %vm1681_vm15 = vcmp.lt.f32.partialorder %v1680_v53, 0.0004427343  ;;  %2719 = vmatprep.subr.bf16.mxu1 %v2996_v58  ;;  %v2997_v7 = vld [vmem:[#allocation9 + $0x8] sm:$0xff]   ;;  %v2998_v34 = vld [vmem:[#allocation9 + $0x10] sm:$0xff]  }
 0x271   : > { %2720 = vmatpush3.bf16.msra.mxu1 %v2996_v58 }
 0x272   : > { %1931 = vmatmul.mubr.bf16.gmra.mrb[16].mxu1 %v1723_v1  ;;  %v1711_v1 = vadd.f32 %v1655_v60, %v1263_v50  ;;  %2721 = vmatprep.subr.bf16.mxu1 %v2997_v7 }
 0x273   : > { %v3129_v23 = vpop.eup %3128  ;;  %1938 = vmatprep.mubr.bf16.mxu1 %v1726_v12  ;;  %v1712_v12 = vadd.f32 %v1664_v36, %v1264_v6 }
 0x274   : > { %v1667_v29 = vmul.f32 0.6931472, %v3129_v23 }
 0x275   : > { %v3131_v45 = vpop.eup %3130  ;;  %2722 = vmatpush3.bf16.msra.mxu1 %v2997_v7 }
 0x276   : > { %v1673_v30 = vsel %vm1672_vm13, %v1670_v61, %v1667_v29  ;;  %v1676_v52 = vmul.f32 0.6931472, %v3131_v45  ;;  %2723 = vmatprep.subr.bf16.mxu1 %v2998_v34 }
 0x277   : > { %v1713_v59 = vadd.f32 %v1673_v30, %v1265_v9 }
 0x278   : > { %v1682_v22 = vsel %vm1681_vm15, %v1679_v5, %v1676_v52 }
 0x279   : > { %v1729_v14 = vpack.c.bf16 %v1713_v59, %v1711_v1  ;;  %v1714_v37 = vadd.f32 %v1682_v22, %v1266_v41  ;;  %2724 = vmatpush3.bf16.msra.mxu1 %v2998_v34 }
 0x27a   : > { %1939 = vmatmul.mubr.bf16.gmra.mrb[20].mxu1 %v1725_v33  ;;  %2725 = vmatprep.subr.bf16.mxu1 %v2999_v10  ;;  %v3003_v33 = vld [vmem:[#allocation9 + $0x38] sm:$0xff]  }
 0x27b   : > { %1946 = vmatprep.mubr.bf16.mxu1 %v1728_v15  ;;  %v1730_v3 = vpack.c.bf16 %v1714_v37, %v1712_v12 }
 0x27d   : > { %2726 = vmatpush3.bf16.msra.mxu1 %v2999_v10 }
 0x27e   : > { %2727 = vmatprep.subr.bf16.mxu1 %v3000_v20 }
 0x281   : > { %2728 = vmatpush3.bf16.msra.mxu1 %v3000_v20 }
 0x282   : > { %1947 = vmatmul.mubr.bf16.gmra.mrb[24].mxu1 %v1727_v38  ;;  %2729 = vmatprep.subr.bf16.mxu1 %v3001_v54 }
 0x283   : > { %1954 = vmatprep.mubr.bf16.mxu1 %v1730_v3 }
 0x285   : > { %2730 = vmatpush3.bf16.msra.mxu1 %v3001_v54 }
 0x286   : > { %2731 = vmatprep.subr.bf16.mxu1 %v3002_v48 }
 0x289   : > { %2732 = vmatpush3.bf16.msra.mxu1 %v3002_v48 }
 0x28a   : > { %1955 = vmatmul.mubr.bf16.gmra.mrb[28].mxu1 %v1729_v14  ;;  %2733 = vmatprep.subr.bf16.mxu1 %v3003_v33 }
 0x28d   : > { %2734 = vmatpush3.bf16.msra.mxu1 %v3003_v33 }
 0x325   : > { %v2655_v32 = vpop.f32.mrb[0].mxu1 }
 0x326   : > { %v2656_v62 = vpop.f32.mrb[1].mxu1 }
 0x327   : > { %v2657_v40 = vadd.f32 %v2656_v62, %v2655_v32  ;;  %v2658_v44 = vpop.f32.mrb[2].mxu1 }
 0x328   : > { %v2659_v4 = vpop.f32.mrb[3].mxu1 }
 0x329   : > { %v4485_v28 = vadd.f32 %v2657_v40, %v4482_v55  ;;  %v2660_v42 = vadd.f32 %v2659_v4, %v2658_v44 }
 0x32b   : > { %v1979_v49 = vand.u32 2147483647, %v4485_v28  ;;  %v4489_v47 = vadd.f32 %v2660_v42, %v4482_v55  ;;  %v1963_v40 = vmax.f32 %v4485_v28, 0.0 }
 0x32d   : > { %v1995_v0 = vsub.f32 0.0, %v1979_v49  ;;  %v1980_v25 = vand.u32 2147483647, %v4489_v47  ;;  %v2661_v38 = vpop.f32.mrb[4].mxu1 }
 0x32e   : > { %v2662_v24 = vpop.f32.mrb[5].mxu1 }
 0x32f   : > { %v2011_v43 = vmul.f32 1.442695, %v1995_v0  ;;  %v1996_v57 = vsub.f32 0.0, %v1980_v25  ;;  %v2663_v31 = vadd.f32 %v2662_v24, %v2661_v38  ;;  %v2664_v35 = vpop.f32.mrb[6].mxu1  ;;  %v1964_v24 = vmax.f32 %v4489_v47, 0.0 }
 0x330   : > { %v2665_v39 = vpop.f32.mrb[7].mxu1 }
 0x331   : > { %3132 = vpow2.f32 %v2011_v43  ;;  %v2013_v63 = vmul.f32 1.442695, %v1996_v57  ;;  %v4493_v21 = vadd.f32 %v2663_v31, %v4482_v55  ;;  %v2666_v19 = vadd.f32 %v2665_v39, %v2664_v35 }
 0x333   : > { %3134 = vpow2.f32 %v2013_v63  ;;  %v1981_v56 = vand.u32 2147483647, %v4493_v21  ;;  %v4497_v26 = vadd.f32 %v2666_v19, %v4482_v55  ;;  %v1965_v35 = vmax.f32 %v4493_v21, 0.0 }
 0x335   : > { %v1997_v51 = vsub.f32 0.0, %v1981_v56  ;;  %v1982_v13 = vand.u32 2147483647, %v4497_v26  ;;  %v2667_v15 = vpop.f32.mrb[8].mxu1 }
 0x336   : > { %v2668_v46 = vpop.f32.mrb[9].mxu1 }
 0x337   : > { %v2015_v18 = vmul.f32 1.442695, %v1997_v51  ;;  %v1998_v27 = vsub.f32 0.0, %v1982_v13  ;;  %v2669_v17 = vadd.f32 %v2668_v46, %v2667_v15  ;;  %v2670_v11 = vpop.f32.mrb[10].mxu1 }
 0x338   : > { %v2671_v23 = vpop.f32.mrb[11].mxu1 }
 0x339   : > { %3136 = vpow2.f32 %v2015_v18  ;;  %v2017_v2 = vmul.f32 1.442695, %v1998_v27  ;;  %v4501_v16 = vadd.f32 %v2669_v17, %v4482_v55  ;;  %v2672_v60 = vadd.f32 %v2671_v23, %v2670_v11 }
 0x33b   : > { %v3133_v29 = vpop.eup %3132  ;;  %3138 = vpow2.f32 %v2017_v2  ;;  %v1983_v61 = vand.u32 2147483647, %v4501_v16  ;;  %v4505_v53 = vadd.f32 %v2672_v60, %v4482_v55 }
 0x33c   : > { %v2043_v50 = vadd.f32 1.0, %v3133_v29  ;;  %v2046_v22 = vmul.f32 -0.5, %v3133_v29  ;;  %v2049_v20 = vand.u32 2147483647, %v3133_v29 }
 0x33d   : > { %v3135_v8 = vpop.eup %3134  ;;  %v1999_v9 = vsub.f32 0.0, %v1983_v61  ;;  %v1984_v45 = vand.u32 2147483647, %v4505_v53  ;;  %v2673_v30 = vpop.f32.mrb[12].mxu1 }
 0x33e   : > { %v2674_v5 = vpop.f32.mrb[13].mxu1  ;;  %3140 = vlog2.f32 %v2043_v50  ;;  %v2052_v1 = vadd.f32 1.0, %v3135_v8  ;;  %v2055_v34 = vmul.f32 -0.5, %v3135_v8  ;;  %v2047_v62 = vadd.f32 1.0, %v2046_v22 }
 0x33f   : > { %v2019_v36 = vmul.f32 1.442695, %v1999_v9  ;;  %v2000_v59 = vsub.f32 0.0, %v1984_v45  ;;  %v2675_v52 = vadd.f32 %v2674_v5, %v2673_v30  ;;  %v2676_v6 = vpop.f32.mrb[14].mxu1  ;;  %v2058_v25 = vand.u32 2147483647, %v3135_v8 }
 0x340   : > { %v2677_v41 = vpop.f32.mrb[15].mxu1  ;;  %3142 = vlog2.f32 %v2052_v1  ;;  %v2056_v0 = vadd.f32 1.0, %v2055_v34  ;;  %v2048_v63 = vmul.f32 %v3133_v29, %v2047_v62  ;;  %vm4526_vm0 = vcmp.lt.f32.partialorder %v2049_v20, 0.0004427343 }
 0x341   : > { %3144 = vpow2.f32 %v2019_v36  ;;  %v2021_v14 = vmul.f32 1.442695, %v2000_v59  ;;  %v4509_v12 = vadd.f32 %v2675_v52, %v4482_v55  ;;  %v2678_v37 = vadd.f32 %v2677_v41, %v2676_v6 }
 0x342   : > { %v2057_v27 = vmul.f32 %v3135_v8, %v2056_v0  ;;  %vm2059_vm1 = vcmp.lt.f32.partialorder %v2058_v25, 0.0004427343 }
 0x343   : > { %v4511_v3 = vpop.eup %3136  ;;  %v1985_v58 = vand.u32 2147483647, %v4509_v12  ;;  %v4515_v7 = vadd.f32 %v2678_v37, %v4482_v55  ;;  %3146 = vpow2.f32 %v2021_v14 }
 0x344   : > { %v2061_v10 = vadd.f32 1.0, %v4511_v3  ;;  %v2064_v43 = vmul.f32 -0.5, %v4511_v3  ;;  %v2067_v60 = vand.u32 2147483647, %v4511_v3 }
 0x345   : > { %v4518_v54 = vpop.eup %3138  ;;  %v2001_v48 = vsub.f32 0.0, %v1985_v58  ;;  %v1986_v33 = vand.u32 2147483647, %v4515_v7  ;;  %v2679_v32 = vpop.f32.mrb[16].mxu1 }
 0x346   : > { %3148 = vlog2.f32 %v2061_v10  ;;  %v2070_v44 = vadd.f32 1.0, %v4518_v54  ;;  %v2680_v4 = vpop.f32.mrb[17].mxu1  ;;  %v2073_v46 = vmul.f32 -0.5, %v4518_v54  ;;  %v2065_v17 = vadd.f32 1.0, %v2064_v43 }
 0x347   : > { %v2023_v42 = vmul.f32 1.442695, %v2001_v48  ;;  %v2002_v49 = vsub.f32 0.0, %v1986_v33  ;;  %v2681_v57 = vadd.f32 %v2680_v4, %v2679_v32  ;;  %v2682_v31 = vpop.f32.mrb[18].mxu1  ;;  %v2076_v59 = vand.u32 2147483647, %v4518_v54 }
 0x348   : > { %v3141_v38 = vpop.eup %3140  ;;  %3150 = vlog2.f32 %v2070_v44  ;;  %v2683_v28 = vpop.f32.mrb[19].mxu1  ;;  %v2074_v36 = vadd.f32 1.0, %v2073_v46  ;;  %v2066_v22 = vmul.f32 %v4511_v3, %v2065_v17  ;;  %vm4553_vm2 = vcmp.lt.f32.partialorder %v2067_v60, 0.0004427343 }
 0x349   : > { %v2025_v39 = vmul.f32 1.442695, %v2002_v49  ;;  %3152 = vpow2.f32 %v2023_v42  ;;  %v4531_v51 = vadd.f32 %v2681_v57, %v4482_v55  ;;  %v2684_v47 = vadd.f32 %v2683_v28, %v2682_v31 }
 0x34a   : > { %v3143_v56 = vpop.eup %3142  ;;  %v2045_v13 = vmul.f32 0.6931472, %v3141_v38  ;;  %v2075_v42 = vmul.f32 %v4518_v54, %v2074_v36  ;;  %vm2077_vm3 = vcmp.lt.f32.partialorder %v2076_v59, 0.0004427343 }
 0x34b   : > { %v4533_v15 = vpop.eup %3144  ;;  %v2054_v18 = vmul.f32 0.6931472, %v3143_v56  ;;  %v1987_v11 = vand.u32 2147483647, %v4531_v51  ;;  %v4538_v23 = vadd.f32 %v2684_v47, %v4482_v55  ;;  %3154 = vpow2.f32 %v2025_v39 }
 0x34c   : > { %v2051_v2 = vsel %vm4526_vm0, %v2048_v63, %v2045_v13  ;;  %v2079_v50 = vadd.f32 1.0, %v4533_v15 }
 0x34d   : > { %v2685_v29 = vpop.f32.mrb[20].mxu1  ;;  %v2060_v61 = vsel %vm2059_vm1, %v2057_v27, %v2054_v18  ;;  %v4544_v9 = vpop.eup %3146  ;;  %v2003_v8 = vsub.f32 0.0, %v1987_v11  ;;  %v1988_v45 = vand.u32 2147483647, %v4538_v23  ;;  %v2187_v5 = vadd.f32 %v2051_v2, %v1963_v40 }
 0x34e   : > { %v2686_v30 = vpop.f32.mrb[21].mxu1  ;;  %v2188_v1 = vadd.f32 %v2060_v61, %v1964_v24  ;;  %3156 = vlog2.f32 %v2079_v50  ;;  %v2088_v33 = vadd.f32 1.0, %v4544_v9  ;;  %v1966_v40 = vmax.f32 %v4497_v26, 0.0 }
 0x34f   : > { %v2687_v52 = vadd.f32 %v2686_v30, %v2685_v29  ;;  %v2688_v6 = vpop.f32.mrb[22].mxu1  ;;  %v2027_v14 = vmul.f32 1.442695, %v2003_v8  ;;  %v2004_v37 = vsub.f32 0.0, %v1988_v45  ;;  %v2082_v26 = vmul.f32 -0.5, %v4533_v15 }
 0x350   : > { %v3149_v41 = vpop.eup %3148  ;;  %v2689_v58 = vpop.f32.mrb[23].mxu1  ;;  %v2203_v34 = vpack.c.bf16 %v2188_v1, %v2187_v5  ;;  %v2091_v28 = vmul.f32 -0.5, %v4544_v9  ;;  %v2085_v2 = vand.u32 2147483647, %v4533_v15  ;;  %v2094_v45 = vand.u32 2147483647, %v4544_v9 }
 0x351   : > { %v2063_v10 = vmul.f32 0.6931472, %v3149_v41  ;;  %v4550_v20 = vadd.f32 %v2687_v52, %v4482_v55  ;;  %v2690_v48 = vadd.f32 %v2689_v58, %v2688_v6  ;;  %3158 = vpow2.f32 %v2027_v14 }
 0x352   : > { %v3151_v32 = vpop.eup %3150  ;;  %v2029_v3 = vmul.f32 1.442695, %v2004_v37  ;;  %2735 = vmatprep.mubr.bf16.mxu1 %v2203_v34  ;;  %v2083_v17 = vadd.f32 1.0, %v2082_v26  ;;  %v2092_v29 = vadd.f32 1.0, %v2091_v28  ;;  %v1967_v5 = vmax.f32 %v4501_v16, 0.0 }
 0x353   : > { %v2069_v44 = vsel %vm4553_vm2, %v2066_v22, %v2063_v10  ;;  %v2072_v4 = vmul.f32 0.6931472, %v3151_v32  ;;  %v1989_v49 = vand.u32 2147483647, %v4550_v20  ;;  %v4562_v0 = vpop.eup %3152  ;;  %v4565_v25 = vadd.f32 %v2690_v48, %v4482_v55 }
 0x354   : > { %3160 = vpow2.f32 %v2029_v3  ;;  %v2189_v57 = vadd.f32 %v2069_v44, %v1965_v35  ;;  %v2097_v13 = vadd.f32 1.0, %v4562_v0  ;;  %v1968_v1 = vmax.f32 %v4505_v53, 0.0 }
 0x355   : > { %v2078_v38 = vsel %vm2077_vm3, %v2075_v42, %v2072_v4  ;;  %v2005_v24 = vsub.f32 0.0, %v1989_v49  ;;  %v2691_v43 = vpop.f32.mrb[24].mxu1  ;;  %3162 = vlog2.f32 %v2088_v33  ;;  %v1990_v54 = vand.u32 2147483647, %v4565_v25  ;;  %v4572_v63 = vpop.eup %3154 }
 0x356   : > { %v2190_v31 = vadd.f32 %v2078_v38, %v1966_v40  ;;  %v2692_v39 = vpop.f32.mrb[25].mxu1  ;;  %v2106_v61 = vadd.f32 1.0, %v4572_v63  ;;  %v2084_v59 = vmul.f32 %v4533_v15, %v2083_v17  ;;  %vm4591_vm4 = vcmp.lt.f32.partialorder %v2085_v2, 0.0004427343 }
 0x357   : > { %v2031_v19 = vmul.f32 1.442695, %v2005_v24  ;;  %v2693_v56 = vadd.f32 %v2692_v39, %v2691_v43  ;;  %v2694_v47 = vpop.f32.mrb[26].mxu1  ;;  %v2006_v18 = vsub.f32 0.0, %v1990_v54  ;;  %v2093_v58 = vmul.f32 %v4544_v9, %v2092_v29 }
 0x358   : > { %v2204_v46 = vpack.c.bf16 %v2190_v31, %v2189_v57  ;;  %v2695_v27 = vpop.f32.mrb[27].mxu1  ;;  %v3157_v11 = vpop.eup %3156  ;;  %v2100_v16 = vmul.f32 -0.5, %v4562_v0  ;;  %vm4600_vm5 = vcmp.lt.f32.partialorder %v2094_v45, 0.0004427343  ;;  %v2109_v9 = vmul.f32 -0.5, %v4572_v63 }
 0x359   : > { %3164 = vpow2.f32 %v2031_v19  ;;  %v4576_v21 = vadd.f32 %v2693_v56, %v4482_v55  ;;  %v2696_v35 = vadd.f32 %v2695_v27, %v2694_v47  ;;  %v2033_v60 = vmul.f32 1.442695, %v2006_v18 }
 0x35a   : > { %2736 = vmatmul.mubr.bf16.vlgmr.msra.gmra.mrb[32].mxu1 %v2204_v46  ;;  %3166 = vlog2.f32 %v2097_v13  ;;  %v2081_v36 = vmul.f32 0.6931472, %v3157_v11  ;;  %v2101_v26 = vadd.f32 1.0, %v2100_v16  ;;  %v2103_v38 = vand.u32 2147483647, %v4562_v0 }
 0x35b   : > { %v1991_v50 = vand.u32 2147483647, %v4576_v21  ;;  %v4582_v8 = vadd.f32 %v2696_v35, %v4482_v55  ;;  %v4585_v30 = vpop.eup %3158  ;;  %3168 = vpow2.f32 %v2033_v60  ;;  %v2110_v19 = vadd.f32 1.0, %v2109_v9 }
 0x35c   : > { %3170 = vlog2.f32 %v2106_v61  ;;  %v2115_v53 = vadd.f32 1.0, %v4585_v30  ;;  %v2087_v40 = vsel %vm4591_vm4, %v2084_v59, %v2081_v36  ;;  %v2118_v56 = vmul.f32 -0.5, %v4585_v30 }
 0x35d   : > { %v2007_v52 = vsub.f32 0.0, %v1991_v50  ;;  %v1992_v6 = vand.u32 2147483647, %v4582_v8  ;;  %v2697_v41 = vpop.f32.mrb[28].mxu1  ;;  %v2191_v54 = vadd.f32 %v2087_v40, %v1967_v5  ;;  %v1969_v47 = vmax.f32 %v4509_v12, 0.0 }
 0x35e   : > { %v4595_v14 = vpop.eup %3160  ;;  %v2698_v37 = vpop.f32.mrb[29].mxu1  ;;  %3172 = vlog2.f32 %v2115_v53  ;;  %v2112_v17 = vand.u32 2147483647, %v4572_v63  ;;  %v1970_v2 = vmax.f32 %v4515_v7, 0.0  ;;  %v2102_v61 = vmul.f32 %v4562_v0, %v2101_v26 }
 0x35f   : > { %v3163_v15 = vpop.eup %3162  ;;  %v2035_v34 = vmul.f32 1.442695, %v2007_v52  ;;  %v2008_v10 = vsub.f32 0.0, %v1992_v6  ;;  %v2699_v48 = vadd.f32 %v2698_v37, %v2697_v41  ;;  %v2700_v33 = vpop.f32.mrb[30].mxu1  ;;  %v2124_v24 = vadd.f32 1.0, %v4595_v14 }
 0x360   : > { %v2701_v62 = vpop.f32.mrb[31].mxu1  ;;  %v2090_v3 = vmul.f32 0.6931472, %v3163_v15  ;;  %v2127_v11 = vmul.f32 -0.5, %v4595_v14  ;;  %vm4630_vm6 = vcmp.lt.f32.partialorder %v2103_v38, 0.0004427343  ;;  %v2111_v45 = vmul.f32 %v4572_v63, %v2110_v19 }
 0x361   : > { %3174 = vpow2.f32 %v2035_v34  ;;  %v2037_v44 = vmul.f32 1.442695, %v2008_v10  ;;  %v4608_v4 = vadd.f32 %v2699_v48, %v4482_v55  ;;  %v2702_v42 = vadd.f32 %v2701_v62, %v2700_v33 }
 0x362   : > { %v2096_v49 = vsel %vm4600_vm5, %v2093_v58, %v2090_v3  ;;  %v2119_v5 = vadd.f32 1.0, %v2118_v56  ;;  %vm2113_vm7 = vcmp.lt.f32.partialorder %v2112_v17, 0.0004427343  ;;  %v2121_v0 = vand.u32 2147483647, %v4585_v30 }
 0x363   : > { %v4614_v43 = vpop.eup %3164  ;;  %3176 = vpow2.f32 %v2037_v44  ;;  %v1993_v57 = vand.u32 2147483647, %v4608_v4  ;;  %v4618_v31 = vadd.f32 %v2702_v42, %v4482_v55  ;;  %v2192_v28 = vadd.f32 %v2096_v49, %v1968_v1 }
 0x364   : > { %v3167_v39 = vpop.eup %3166  ;;  %3178 = vlog2.f32 %v2124_v24  ;;  %v2133_v55 = vadd.f32 1.0, %v4614_v43  ;;  %v2128_v52 = vadd.f32 1.0, %v2127_v11  ;;  %v2130_v16 = vand.u32 2147483647, %v4595_v14 }
 0x365   : > { %v2009_v13 = vsub.f32 0.0, %v1993_v57  ;;  %v1994_v46 = vand.u32 2147483647, %v4618_v31  ;;  %v2099_v18 = vmul.f32 0.6931472, %v3167_v39  ;;  %v2205_v27 = vpack.c.bf16 %v2192_v28, %v2191_v54  ;;  %v4626_v35 = vpop.eup %3168 }
 0x366   : > { %v3171_v12 = vpop.eup %3170  ;;  %3180 = vlog2.f32 %v2133_v55  ;;  %v2142_v6 = vadd.f32 1.0, %v4626_v35  ;;  %v2120_v15 = vmul.f32 %v4585_v30, %v2119_v5  ;;  %v2136_v34 = vmul.f32 -0.5, %v4614_v43 }
 0x367   : > { %v2039_v60 = vmul.f32 1.442695, %v2009_v13  ;;  %v2010_v29 = vsub.f32 0.0, %v1994_v46  ;;  %2739 = vmatprep.mubr.bf16.mxu1 %v2205_v27  ;;  %v2105_v36 = vsel %vm4630_vm6, %v2102_v61, %v2099_v18  ;;  %v2108_v7 = vmul.f32 0.6931472, %v3171_v12 }
 0x368   : > { %v3173_v59 = vpop.eup %3172  ;;  %v2193_v37 = vadd.f32 %v2105_v36, %v1969_v47  ;;  %vm2122_vm8 = vcmp.lt.f32.partialorder %v2121_v0, 0.0004427343  ;;  %v2129_v32 = vmul.f32 %v4595_v14, %v2128_v52  ;;  %v2145_v3 = vmul.f32 -0.5, %v4626_v35 }
 0x369   : > { %3182 = vpow2.f32 %v2039_v60  ;;  %v2041_v1 = vmul.f32 1.442695, %v2010_v29  ;;  %v2114_v22 = vsel %vm2113_vm7, %v2111_v45, %v2108_v7  ;;  %v2117_v63 = vmul.f32 0.6931472, %v3173_v59 }
 0x36a   : > { %v2194_v58 = vadd.f32 %v2114_v22, %v1970_v2  ;;  %v1971_v9 = vmax.f32 %v4531_v51, 0.0  ;;  %v1972_v44 = vmax.f32 %v4538_v23, 0.0  ;;  %vm2131_vm9 = vcmp.lt.f32.partialorder %v2130_v16, 0.0004427343 }
 0x36b   : > { %v4639_v41 = vpop.eup %3174  ;;  %3184 = vpow2.f32 %v2041_v1  ;;  %v2123_v62 = vsel %vm2122_vm8, %v2120_v15, %v2117_v63  ;;  %v2137_v49 = vadd.f32 1.0, %v2136_v34  ;;  %v2139_v14 = vand.u32 2147483647, %v4614_v43 }
 0x36c   : > { %3186 = vlog2.f32 %v2142_v6  ;;  %v2151_v10 = vadd.f32 1.0, %v4639_v41  ;;  %v2206_v33 = vpack.c.bf16 %v2194_v58, %v2193_v37  ;;  %v2195_v38 = vadd.f32 %v2123_v62, %v1971_v9 }
 0x36d   : > { %v4642_v53 = vpop.eup %3176  ;;  %v2146_v39 = vadd.f32 1.0, %v2145_v3  ;;  %v2154_v28 = vmul.f32 -0.5, %v4639_v41  ;;  %v2148_v23 = vand.u32 2147483647, %v4626_v35  ;;  %v2138_v47 = vmul.f32 %v4614_v43, %v2137_v49  ;;  %v2622_v49 = vld [vmem:[%s4750_s4 + $0x3] ss:$0 sm:$0xff] }
 0x36e   : > { %v3179_v48 = vpop.eup %3178  ;;  %3188 = vlog2.f32 %v2151_v10  ;;  %2740 = vmatmul.mubr.bf16.gmra.mrb[36].mxu1 %v2206_v33  ;;  %v2160_v30 = vadd.f32 1.0, %v4642_v53  ;;  %v2163_v13 = vmul.f32 -0.5, %v4642_v53  ;;  %v1973_v18 = vmax.f32 %v4550_v20, 0.0 }
 0x36f   : > { %v2126_v40 = vmul.f32 0.6931472, %v3179_v48  ;;  %vm2140_vm10 = vcmp.lt.f32.partialorder %v2139_v14, 0.0004427343  ;;  %v2147_v55 = vmul.f32 %v4626_v35, %v2146_v39  ;;  %v2155_v2 = vadd.f32 1.0, %v2154_v28 }
 0x370   : > { %v3181_v26 = vpop.eup %3180  ;;  %3190 = vlog2.f32 %v2160_v30  ;;  %v1974_v60 = vmax.f32 %v4565_v25, 0.0  ;;  %vm2149_vm11 = vcmp.lt.f32.partialorder %v2148_v23, 0.0004427343  ;;  %v2157_v29 = vand.u32 2147483647, %v4639_v41 }
 0x371   : > { %v2132_v42 = vsel %vm2131_vm9, %v2129_v32, %v2126_v40  ;;  %v2135_v54 = vmul.f32 0.6931472, %v3181_v26  ;;  %v2164_v12 = vadd.f32 1.0, %v2163_v13  ;;  %v2166_v1 = vand.u32 2147483647, %v4642_v53 }
 0x372   : > { %v2196_v24 = vadd.f32 %v2132_v42, %v1972_v44  ;;  %v2156_v36 = vmul.f32 %v4639_v41, %v2155_v2  ;;  %vm2158_vm12 = vcmp.lt.f32.partialorder %v2157_v29, 0.0004427343  ;;  %v1975_v22 = vmax.f32 %v4576_v21, 0.0 }
 0x373   : > { %v3183_v57 = vpop.eup %3182  ;;  %v2141_v17 = vsel %vm2140_vm10, %v2138_v47, %v2135_v54  ;;  %v2165_v52 = vmul.f32 %v4642_v53, %v2164_v12  ;;  %v1976_v63 = vmax.f32 %v4582_v8, 0.0  ;;  %vm2167_vm13 = vcmp.lt.f32.partialorder %v2166_v1, 0.0004427343 }
 0x374   : > { %v2207_v51 = vpack.c.bf16 %v2196_v24, %v2195_v38  ;;  %v2169_v19 = vadd.f32 1.0, %v3183_v57  ;;  %v2172_v50 = vmul.f32 -0.5, %v3183_v57  ;;  %v2197_v20 = vadd.f32 %v2141_v17, %v1973_v18 }
 0x375   : > { %v3185_v56 = vpop.eup %3184  ;;  %v2175_v37 = vand.u32 2147483647, %v3183_v57  ;;  %v1977_v8 = vmax.f32 %v4608_v4, 0.0  ;;  %v1978_v3 = vmax.f32 %v4618_v31, 0.0 }
 0x376   : > { %v3187_v46 = vpop.eup %3186  ;;  %2743 = vmatprep.mubr.bf16.mxu1 %v2207_v51  ;;  %3192 = vlog2.f32 %v2169_v19  ;;  %v2178_v27 = vadd.f32 1.0, %v3185_v56  ;;  %v2181_v7 = vmul.f32 -0.5, %v3185_v56  ;;  %v2173_v6 = vadd.f32 1.0, %v2172_v50 }
 0x377   : > { %v2144_v11 = vmul.f32 0.6931472, %v3187_v46  ;;  %v2184_v10 = vand.u32 2147483647, %v3185_v56  ;;  %vm2176_vm14 = vcmp.lt.f32.partialorder %v2175_v37, 0.0004427343 }
 0x378   : > { %3194 = vlog2.f32 %v2178_v27  ;;  %v3189_v43 = vpop.eup %3188  ;;  %v2182_v16 = vadd.f32 1.0, %v2181_v7  ;;  %v2174_v33 = vmul.f32 %v3183_v57, %v2173_v6 }
 0x379   : > { %v2150_v61 = vsel %vm2149_vm11, %v2147_v55, %v2144_v11  ;;  %v2153_v5 = vmul.f32 0.6931472, %v3189_v43  ;;  %vm2185_vm15 = vcmp.lt.f32.partialorder %v2184_v10, 0.0004427343 }
 0x37a   : > { %v2198_v45 = vadd.f32 %v2150_v61, %v1974_v60  ;;  %v3191_v35 = vpop.eup %3190  ;;  %v2183_v21 = vmul.f32 %v3185_v56, %v2182_v16 }
 0x37b   : > { %v2159_v25 = vsel %vm2158_vm12, %v2156_v36, %v2153_v5  ;;  %v2162_v0 = vmul.f32 0.6931472, %v3191_v35 }
 0x37c   : > { %v2208_v59 = vpack.c.bf16 %v2198_v45, %v2197_v20  ;;  %v2199_v41 = vadd.f32 %v2159_v25, %v1975_v22 }
 0x37d   : > { %v2168_v58 = vsel %vm2167_vm13, %v2165_v52, %v2162_v0 }
 0x37e   : > { %2744 = vmatmul.mubr.bf16.gmra.mrb[40].mxu1 %v2208_v59  ;;  %v2200_v34 = vadd.f32 %v2168_v58, %v1976_v63 }
 0x380   : > { %v3193_v15 = vpop.eup %3192  ;;  %v2209_v62 = vpack.c.bf16 %v2200_v34, %v2199_v41 }
 0x381   : > { %v2171_v48 = vmul.f32 0.6931472, %v3193_v15 }
 0x382   : > { %v3195_v32 = vpop.eup %3194  ;;  %2747 = vmatprep.mubr.bf16.mxu1 %v2209_v62 }
 0x383   : > { %v2177_v53 = vsel %vm2176_vm14, %v2174_v33, %v2171_v48  ;;  %v2180_v40 = vmul.f32 0.6931472, %v3195_v32 }
 0x384   : > { %v2201_v44 = vadd.f32 %v2177_v53, %v1977_v8 }
 0x385   : > { %v2186_v9 = vsel %vm2185_vm15, %v2183_v21, %v2180_v40 }
 0x386   : > { %v2202_v30 = vadd.f32 %v2186_v9, %v1978_v3 }
 0x388   : > { %v2210_v42 = vpack.c.bf16 %v2202_v30, %v2201_v44 }
 0x38a   : > { %2748 = vmatmul.mubr.bf16.gmra.mrb[44].mxu1 %v2210_v42 }
 0x42d   : > { %v2737_v26 = vpop.f32.mrb[32].mxu1 }
 0x42e   : > { %v2325_v38 = vadd.f32 %v2737_v26, %v2622_v49  ;;  %v2316_v24 = vpop.f32.mrb[33].mxu1 }
 0x42f   : > { %v2317_v14 = vadd.f32 %v2622_v49, %v2316_v24  ;;  %v2738_v57 = vpop.f32.mrb[34].mxu1 }
 0x430   : > { %2381 = vst [vmem:[%s4672_s6 + $0x10] sm:$0xff] %v2325_v38  ;;  %v2328_v4 = vadd.f32 %v2738_v57, %v2622_v49  ;;  %v2319_v31 = vpop.f32.mrb[35].mxu1 }
 0x431   : > { %2379 = vst [vmem:[%s4672_s6] sm:$0xff] %v2317_v14  ;;  %v2320_v54 = vadd.f32 %v2622_v49, %v2319_v31 }
 0x432   : > { %2382 = vst [vmem:[%s4672_s6 + $0x18] sm:$0xff] %v2328_v4 }
 0x433   : > { %2380 = vst [vmem:[%s4672_s6 + $0x8] sm:$0xff] %v2320_v54 }
 0x441   : > { %v2741_v39 = vpop.f32.mrb[36].mxu1 }
 0x442   : > { %v2341_v28 = vadd.f32 %v2741_v39, %v2622_v49  ;;  %v2332_v51 = vpop.f32.mrb[37].mxu1 }
 0x443   : > { %v2333_v23 = vadd.f32 %v2622_v49, %v2332_v51  ;;  %v2742_v19 = vpop.f32.mrb[38].mxu1 }
 0x444   : > { %2385 = vst [vmem:[%s4672_s6 + $0x30] sm:$0xff] %v2341_v28  ;;  %v2344_v56 = vadd.f32 %v2742_v19, %v2622_v49  ;;  %v2335_v47 = vpop.f32.mrb[39].mxu1 }
 0x445   : > { %2383 = vst [vmem:[%s4672_s6 + $0x20] sm:$0xff] %v2333_v23  ;;  %v2336_v13 = vadd.f32 %v2622_v49, %v2335_v47 }
 0x446   : > { %2386 = vst [vmem:[%s4672_s6 + $0x38] sm:$0xff] %v2344_v56 }
 0x447   : > { %2384 = vst [vmem:[%s4672_s6 + $0x28] sm:$0xff] %v2336_v13 }
 0x451   : > { %v2745_v46 = vpop.f32.mrb[40].mxu1 }
 0x452   : > { %v2357_v18 = vadd.f32 %v2745_v46, %v2622_v49  ;;  %v2348_v27 = vpop.f32.mrb[41].mxu1 }
 0x453   : > { %v2349_v17 = vadd.f32 %v2622_v49, %v2348_v27  ;;  %v2746_v11 = vpop.f32.mrb[42].mxu1 }
 0x454   : > { %2389 = vst [vmem:[%s4672_s6 + $0x50] sm:$0xff] %v2357_v18  ;;  %v2360_v55 = vadd.f32 %v2746_v11, %v2622_v49  ;;  %v2351_v2 = vpop.f32.mrb[43].mxu1 }
 0x455   : > { %2387 = vst [vmem:[%s4672_s6 + $0x40] sm:$0xff] %v2349_v17  ;;  %v2352_v60 = vadd.f32 %v2622_v49, %v2351_v2 }
 0x456   : > { %2390 = vst [vmem:[%s4672_s6 + $0x58] sm:$0xff] %v2360_v55 }
 0x457   : > { %2388 = vst [vmem:[%s4672_s6 + $0x48] sm:$0xff] %v2352_v60 }
 0x45d   : > { %v2749_v29 = vpop.f32.mrb[44].mxu1 }
 0x45e   : > { %v2373_v43 = vadd.f32 %v2749_v29, %v2622_v49  ;;  %v2364_v61 = vpop.f32.mrb[45].mxu1 }
 0x45f   : > { %v2365_v12 = vadd.f32 %v2622_v49, %v2364_v61  ;;  %v2750_v50 = vpop.f32.mrb[46].mxu1 }
 0x460   : > { %2393 = vst [vmem:[%s4672_s6 + $0x70] sm:$0xff] %v2373_v43  ;;  %v2376_v20 = vadd.f32 %v2750_v50, %v2622_v49  ;;  %v2367_v45 = vpop.f32.mrb[47].mxu1 }
 0x461   : > { %2391 = vst [vmem:[%s4672_s6 + $0x60] sm:$0xff] %v2365_v12  ;;  %v2368_v5 = vadd.f32 %v2622_v49, %v2367_v45 }
 0x462   : > { %2394 = vst [vmem:[%s4672_s6 + $0x78] sm:$0xff] %v2376_v20 }
 0x463   : > { %2392 = vst [vmem:[%s4672_s6 + $0x68] sm:$0xff] %v2368_v5 }
 0x464   : > { %3323 = shalt.err (!%p3320_p0)
}
 0x465   : > { %s3324_s28 = scalar_lea.hbm %s4692_s16, 2048  ;;  %s3328_s7 = scalar_lea.hbm %s4751_s5, 4096 }
 0x466   : > { %p3325_p4 = scmp.ne.s32.totalorder %s4692_s16, %s3324_s28  ;;  %p3329_p12 = scmp.lt.u32.totalorder %s4692_s16, %s4751_s5 }
 0x467   : > { %p3330_p1 = scmp.lt.u32.totalorder %s3328_s7, %s3324_s28  ;;  %p3332_p13 = scmp.lt.u32.totalorder %s3324_s28, %s4692_s16 }
 0x468   : > { %p3326_p8 = pnand %p3325_p4, %p3599_p3 }
 0x469   : > { %p3331_p7 = por %p3330_p1, %p3329_p12 }
 0x46a   : > { %p3327_p2 = pneg %p3326_p8 }
 0x46b   : > { %p3333_p6 = por %p3332_p13, %p3331_p7 }
 0x46d   : > { %p3334_p10 = pnand %p3333_p6, %p3327_p2 }
 0x46f   : > { %3337 = shalt.err (!%p3334_p10)
}
 0x470   : > { %s3413_s6 = smov 128   ;;  %s3414_s17 = smov 8  }
 0x471   : > { %2797 = dma.vmem_to_hbm [thread:$0]  (%p3599_p3), %s4694_s24, 2048, %s4692_s16, %s2396_s21, %s3413_s6, %s3413_s6, %s3414_s17  }
 0x472 PF: > { %s4893_s27 = sld [smem:[#allocation16_spill]]  ;;  %s2424_s11 = sand.u32 1, %s3380_s18  }
 0x473   : > { %p4895_p5 = scmp.ge.s32.totalorder %s3400_s23, 2  ;;  %s2425_s8 = scalar_lea.sflag [#allocation5], %s2424_s11 }
 0x478   : > { %p4894_p11 = scmp.ne.s32.totalorder %s4893_s27, 0 }
 0x47a   : > { %p2814_p9 = pnand %p4895_p5, %p4894_p11 }
 0x47c   : > { %3375 = dma.done.wait (!%p2814_p9), %s2425_s8, 2048  }
 0x47d   : > { %3377 = vsyncadd (!%p2814_p9), %s2425_s8, 4294965248  ;;  %s23_s23 = sadd.s32 1, %s3400_s23   ;;  %s4896_s18 = smov %s3384_s19 }
 0x47e   : > { %p20_p0 = scmp.ge.s32.totalorder %s23_s23, 4   ;;  %s4897_s19 = smov %s3388_s20 }
 0x47f   : > { %s4898_s20 = smov %s3608_s13  ;;  %s4899_s21 = smov %s3396_s22 }
 0x480   : > { %s4900_s22 = smov %s4902_s1  ;;  %22 = sbr.rel (!%p20_p0) target bundleno = 10 (0xa), region = 106 }
 0x487   :  { %2430 = vsyncpa [#allocation4], 1 }
 0x488   :  { %2432 = vsyncpa [#allocation4 + $0x1], 1 }
 0x489   :  { %2433 = vsyncpa [#allocation7], 1 }
 0x48a   :  { %2434 = vsyncpa [#allocation10], 1 }
 0x48b   :  { %2435 = vsyncpa [#allocation5], 1 }
 0x48c   :  { %2437 = vsyncpa [#allocation5 + $0x1], 1 }

</bundles_post_ra>
